<compile_context>
chip_gen: v7x
topology: tpu7x:2x2x1
jax: 0.10.0
libtpu: 0.0.40
codegen_flags: <defaults>
</compile_context>

<pallas_src>
import functools

import jax
import jax.numpy as jnp
from jax import lax
from jax.experimental import pallas as pl
from jax.experimental.pallas import tpu as pltpu


# -----------------------------------------------------------------------------
# Pallas kernel: one batch element per grid step, (C, H, W) tile in VMEM.
# -----------------------------------------------------------------------------
def _pool_block_kernel(x_ref, invc_ref, w1_ref, b1_ref, wdw_ref, bdw_ref,
                       w2_ref, b2_ref, o_ref, vpad_ref, hpad_ref, hp_ref,
                       *, kernel_size):
    _, C, H, W = x_ref.shape
    K = kernel_size
    P = K // 2
    C2 = 2 * C

    x = x_ref[0]                                           # (C, H, W) f32

    # ---- AvgPool2d(K, stride=1, pad=P, count_include_pad=False), separable --
    # Vertical pass: zero the P-row borders of the scratch, write x into the
    # interior, sum K sublane-shifted windows.
    vpad_ref[:, pl.ds(0, P), :] = jnp.zeros((C, P, W), jnp.float32)
    vpad_ref[:, pl.ds(P + H, P), :] = jnp.zeros((C, P, W), jnp.float32)
    vpad_ref[:, pl.ds(P, H), :] = x
    rowsum = vpad_ref[:, pl.ds(0, H), :]
    for d in range(1, K):
        rowsum = rowsum + vpad_ref[:, pl.ds(d, H), :]

    # Horizontal pass: same trick along the lane (W) axis.
    hpad_ref[:, :, pl.ds(0, P)] = jnp.zeros((C, H, P), jnp.float32)
    hpad_ref[:, :, pl.ds(P + W, P)] = jnp.zeros((C, H, P), jnp.float32)
    hpad_ref[:, :, pl.ds(P, W)] = rowsum
    psum = hpad_ref[:, :, pl.ds(0, W)]
    for d in range(1, K):
        psum = psum + hpad_ref[:, :, pl.ds(d, W)]

    # Multiply by the precomputed reciprocal valid-pixel count (grid invariant).
    x1 = psum * invc_ref[...][None, :, :] - x              # (C, H, W)

    # ---- Conv1x1 (C -> 2C) + bias + LeakyReLU(0.2) --------------------------
    # Unrolled scalar FMA chain on the VPU (C is tiny).  Results go straight
    # into the interior of the replication-padded depthwise scratch.
    x1_planes = [x1[c] for c in range(C)]
    for d in range(C2):
        h = x1_planes[0] * w1_ref[0, d]
        for c in range(1, C):
            h = h + x1_planes[c] * w1_ref[c, d]
        h = h + b1_ref[d]
        h = jnp.where(h >= 0.0, h, 0.2 * h)                # LeakyReLU(0.2)
        hp_ref[d, pl.ds(1, H), pl.ds(1, W)] = h

    # ---- ReplicationPad2d(1): fill the 1-pixel border from the edges --------
    hp_ref[:, pl.ds(0, 1), pl.ds(1, W)] = hp_ref[:, pl.ds(1, 1), pl.ds(1, W)]
    hp_ref[:, pl.ds(H + 1, 1), pl.ds(1, W)] = hp_ref[:, pl.ds(H, 1), pl.ds(1, W)]
    hp_ref[:, :, pl.ds(0, 1)] = hp_ref[:, :, pl.ds(1, 1)]
    hp_ref[:, :, pl.ds(W + 1, 1)] = hp_ref[:, :, pl.ds(W, 1)]

    # ---- Depthwise Conv3x3 (groups = 2C) + bias ------------------------------
    accs = []
    for ch in range(C2):
        a = hp_ref[ch, pl.ds(0, H), pl.ds(0, W)] * wdw_ref[0, ch]
        for t in range(1, 9):
            di, dj = t // 3, t % 3
            a = a + hp_ref[ch, pl.ds(di, H), pl.ds(dj, W)] * wdw_ref[t, ch]
        accs.append(a + bdw_ref[ch])

    # ---- GLU along the channel dim -------------------------------------------
    glus = [accs[c] * jax.nn.sigmoid(accs[C + c]) for c in range(C)]

    # ---- Conv1x1 (C -> C) + bias + residual ----------------------------------
    for d in range(C):
        o = glus[0] * w2_ref[0, d]
        for c in range(1, C):
            o = o + glus[c] * w2_ref[c, d]
        o = o + b2_ref[d]
        o_ref[0, d, :, :] = x[d] + o


# -----------------------------------------------------------------------------
# Wrapper (NCHW in / NCHW out, matching the PyTorch module; no transposes).
# -----------------------------------------------------------------------------
def pool_block_pallas(x_nchw, params, kernel_size=5):
    w1, b1, wdw, bdw, w2, b2 = params
    B, C, H, W = x_nchw.shape
    P = kernel_size // 2

    # Grid-invariant reciprocal of the count_include_pad=False divisor map.
    row = jnp.arange(H, dtype=jnp.int32)
    col = jnp.arange(W, dtype=jnp.int32)
    rcnt = jnp.minimum(row + P, H - 1) - jnp.maximum(row - P, 0) + 1
    ccnt = jnp.minimum(col + P, W - 1) - jnp.maximum(col - P, 0) + 1
    inv_cnt = 1.0 / (rcnt[:, None] * ccnt[None, :]).astype(jnp.float32)  # (H, W)

    x = x_nchw.astype(jnp.float32)
    kernel = functools.partial(_pool_block_kernel, kernel_size=kernel_size)
    smem_spec = pl.BlockSpec(memory_space=pltpu.MemorySpace.SMEM)

    out = pl.pallas_call(
        kernel,
        out_shape=jax.ShapeDtypeStruct((B, C, H, W), jnp.float32),
        grid_spec=pltpu.PrefetchScalarGridSpec(
            num_scalar_prefetch=0,
            grid=(B,),
            in_specs=[
                pl.BlockSpec((1, C, H, W), lambda b: (b, 0, 0, 0)),
                pl.BlockSpec((H, W), lambda b: (0, 0)),
                smem_spec, smem_spec, smem_spec, smem_spec, smem_spec, smem_spec,
            ],
            out_specs=pl.BlockSpec((1, C, H, W), lambda b: (b, 0, 0, 0)),
            scratch_shapes=[
                pltpu.VMEM((C, H + 2 * P, W), jnp.float32),       # zero row-pad
                pltpu.VMEM((C, H, W + 2 * P), jnp.float32),       # zero col-pad
                pltpu.VMEM((2 * C, H + 2, W + 2), jnp.float32),   # replication pad
            ],
        ),
        compiler_params=pltpu.CompilerParams(
            dimension_semantics=("parallel",)),
    )(x, inv_cnt, w1, b1, wdw, bdw, w2, b2)
    return out


# -----------------------------------------------------------------------------
# Pure-JAX reference (for correctness check), NCHW throughout.
# -----------------------------------------------------------------------------
def pool_block_ref(x_nchw, params, kernel_size=5):
    w1, b1, wdw, bdw, w2, b2 = params
    K, P = kernel_size, kernel_size // 2
    x = x_nchw.astype(jnp.float32)
    B, C, H, W = x.shape

    pad = [(0, 0), (0, 0), (P, P), (P, P)]
    ssum = lax.reduce_window(x, 0.0, lax.add, (1, 1, K, K), (1, 1, 1, 1), pad)
    scnt = lax.reduce_window(jnp.ones_like(x), 0.0, lax.add,
                             (1, 1, K, K), (1, 1, 1, 1), pad)
    x1 = ssum / scnt - x

    h1 = jnp.einsum("bchw,cd->bdhw", x1, w1) + b1[None, :, None, None]
    h1 = jnp.where(h1 >= 0, h1, 0.2 * h1)

    hp = jnp.pad(h1, ((0, 0), (0, 0), (1, 1), (1, 1)), mode="edge")
    acc = jnp.zeros((B, 2 * C, H, W), jnp.float32)
    for di in range(3):
        for dj in range(3):
            acc = acc + hp[:, :, di:di + H, dj:dj + W] * \
                wdw[di * 3 + dj][None, :, None, None]
    acc = acc + bdw[None, :, None, None]

    glu = acc[:, :C] * jax.nn.sigmoid(acc[:, C:])
    out = jnp.einsum("bchw,cd->bdhw", glu, w2) + b2[None, :, None, None]
    return x + out


# -----------------------------------------------------------------------------
def make_params(key, C):
    ks = jax.random.split(key, 6)
    w1 = 0.1 * jax.random.normal(ks[0], (C, 2 * C), jnp.float32)   # 1x1 conv, [in, out]
    b1 = 0.1 * jax.random.normal(ks[1], (2 * C,), jnp.float32)
    wdw = 0.1 * jax.random.normal(ks[2], (9, 2 * C), jnp.float32)  # depthwise 3x3, [tap, ch]
    bdw = 0.1 * jax.random.normal(ks[3], (2 * C,), jnp.float32)
    w2 = 0.1 * jax.random.normal(ks[4], (C, C), jnp.float32)       # 1x1 conv, [in, out]
    b2 = 0.1 * jax.random.normal(ks[5], (C,), jnp.float32)
    return (w1, b1, wdw, bdw, w2, b2)


if __name__ == "__main__":
    key = jax.random.PRNGKey(0)
    kx, kp = jax.random.split(key)

    B, C, H, W = 2, 4, 16, 16
    x = jax.random.normal(kx, (B, C, H, W), jnp.float32)   # NCHW, like PyTorch
    params = make_params(kp, C)

    y = jax.block_until_ready(pool_block_pallas(x, params))
    y_ref = jax.block_until_ready(pool_block_ref(x, params))

    assert y.shape == (B, C, H, W)
    err = jnp.max(jnp.abs(y - y_ref))
    assert jnp.allclose(y, y_ref, rtol=1e-4, atol=1e-4), f"max abs err {err}"

    print("KERNEL_OK")
</pallas_src>

<mosaic_0001>
module attributes {stable_mosaic.version = 11 : i64} {
  func.func @_pool_block_kernel(%arg0: i32, %arg1: memref<1x4x16x16xf32, #tpu.memory_space<vmem>>, %arg2: memref<16x16xf32, #tpu.memory_space<vmem>>, %arg3: memref<4x8xf32, #tpu.memory_space<smem>>, %arg4: memref<8xf32, #tpu.memory_space<smem>>, %arg5: memref<9x8xf32, #tpu.memory_space<smem>>, %arg6: memref<8xf32, #tpu.memory_space<smem>>, %arg7: memref<4x4xf32, #tpu.memory_space<smem>>, %arg8: memref<4xf32, #tpu.memory_space<smem>>, %arg9: memref<1x4x16x16xf32, #tpu.memory_space<vmem>>, %arg10: memref<4x20x16xf32, #tpu.memory_space<vmem>>, %arg11: memref<4x16x20xf32, #tpu.memory_space<vmem>>, %arg12: memref<8x18x18xf32, #tpu.memory_space<vmem>>) attributes {dimension_semantics = [#tpu.dimension_semantics<parallel>], iteration_bounds = array<i64: 2>, scalar_prefetch = 0 : i64, scratch_operands = 3 : i64, tpu.core_type = #tpu.core_type<tc>, window_params = [{transform_indices = @transform_0, window_bounds = array<i64: 1, 4, 16, 16>}, {pipeline_mode = #tpu.pipeline_mode<synchronous>, transform_indices = @transform_1, window_bounds = array<i64: 16, 16>}, {transform_indices = @transform_2, window_bounds = array<i64: 4, 8>}, {transform_indices = @transform_3, window_bounds = array<i64: 8>}, {transform_indices = @transform_4, window_bounds = array<i64: 9, 8>}, {transform_indices = @transform_5, window_bounds = array<i64: 8>}, {transform_indices = @transform_6, window_bounds = array<i64: 4, 4>}, {transform_indices = @transform_7, window_bounds = array<i64: 4>}, {transform_indices = @transform_8, window_bounds = array<i64: 1, 4, 16, 16>}]} {
    %c0 = arith.constant 0 : index
    %c0_0 = arith.constant 0 : index
    %c0_1 = arith.constant 0 : index
    %c0_2 = arith.constant 0 : index
    %0 = vector.load %arg1[%c0, %c0_0, %c0_1, %c0_2] : memref<1x4x16x16xf32, #tpu.memory_space<vmem>>, vector<1x4x16x16xf32>
    %1 = vector.shape_cast %0 : vector<1x4x16x16xf32> to vector<4x16x16xf32>
    %cst = arith.constant 0.000000e+00 : f32
    %2 = vector.broadcast %cst : f32 to vector<4x2x16xf32>
    %c0_3 = arith.constant 0 : index
    %c0_4 = arith.constant 0 : index
    %c0_5 = arith.constant 0 : index
    %3 = vector.load %arg10[%c0_3, %c0_4, %c0_5] : memref<4x20x16xf32, #tpu.memory_space<vmem>>, vector<4x2x16xf32>
    tpu.vector_store %arg10[%c0_3, %c0_4, %c0_5], %2 {strides = array<i32>} : memref<4x20x16xf32, #tpu.memory_space<vmem>>, vector<4x2x16xf32>,
    %cst_6 = arith.constant 0.000000e+00 : f32
    %4 = vector.broadcast %cst_6 : f32 to vector<4x2x16xf32>
    %c0_7 = arith.constant 0 : index
    %c18 = arith.constant 18 : index
    %c0_8 = arith.constant 0 : index
    %5 = vector.load %arg10[%c0_7, %c18, %c0_8] : memref<4x20x16xf32, #tpu.memory_space<vmem>>, vector<4x2x16xf32>
    tpu.vector_store %arg10[%c0_7, %c18, %c0_8], %4 {strides = array<i32>} : memref<4x20x16xf32, #tpu.memory_space<vmem>>, vector<4x2x16xf32>,
    %c0_9 = arith.constant 0 : index
    %c2 = arith.constant 2 : index
    %c0_10 = arith.constant 0 : index
    %6 = vector.load %arg10[%c0_9, %c2, %c0_10] : memref<4x20x16xf32, #tpu.memory_space<vmem>>, vector<4x16x16xf32>
    tpu.vector_store %arg10[%c0_9, %c2, %c0_10], %1 {strides = array<i32>} : memref<4x20x16xf32, #tpu.memory_space<vmem>>, vector<4x16x16xf32>,
    %c0_11 = arith.constant 0 : index
    %c0_12 = arith.constant 0 : index
    %c0_13 = arith.constant 0 : index
    %7 = vector.load %arg10[%c0_11, %c0_12, %c0_13] : memref<4x20x16xf32, #tpu.memory_space<vmem>>, vector<4x16x16xf32>
    %c0_14 = arith.constant 0 : index
    %c1 = arith.constant 1 : index
    %c0_15 = arith.constant 0 : index
    %8 = vector.load %arg10[%c0_14, %c1, %c0_15] : memref<4x20x16xf32, #tpu.memory_space<vmem>>, vector<4x16x16xf32>
    %9 = arith.addf %7, %8 : vector<4x16x16xf32>
    %c0_16 = arith.constant 0 : index
    %c2_17 = arith.constant 2 : index
    %c0_18 = arith.constant 0 : index
    %10 = vector.load %arg10[%c0_16, %c2_17, %c0_18] : memref<4x20x16xf32, #tpu.memory_space<vmem>>, vector<4x16x16xf32>
    %11 = arith.addf %9, %10 : vector<4x16x16xf32>
    %c0_19 = arith.constant 0 : index
    %c3 = arith.constant 3 : index
    %c0_20 = arith.constant 0 : index
    %12 = vector.load %arg10[%c0_19, %c3, %c0_20] : memref<4x20x16xf32, #tpu.memory_space<vmem>>, vector<4x16x16xf32>
    %13 = arith.addf %11, %12 : vector<4x16x16xf32>
    %c0_21 = arith.constant 0 : index
    %c4 = arith.constant 4 : index
    %c0_22 = arith.constant 0 : index
    %14 = vector.load %arg10[%c0_21, %c4, %c0_22] : memref<4x20x16xf32, #tpu.memory_space<vmem>>, vector<4x16x16xf32>
    %15 = arith.addf %13, %14 : vector<4x16x16xf32>
    %cst_23 = arith.constant 0.000000e+00 : f32
    %16 = vector.broadcast %cst_23 : f32 to vector<4x16x2xf32>
    %c0_24 = arith.constant 0 : index
    %c0_25 = arith.constant 0 : index
    %c0_26 = arith.constant 0 : index
    %17 = vector.load %arg11[%c0_24, %c0_25, %c0_26] : memref<4x16x20xf32, #tpu.memory_space<vmem>>, vector<4x16x2xf32>
    tpu.vector_store %arg11[%c0_24, %c0_25, %c0_26], %16 {strides = array<i32>} : memref<4x16x20xf32, #tpu.memory_space<vmem>>, vector<4x16x2xf32>,
    %cst_27 = arith.constant 0.000000e+00 : f32
    %18 = vector.broadcast %cst_27 : f32 to vector<4x16x2xf32>
    %c0_28 = arith.constant 0 : index
    %c0_29 = arith.constant 0 : index
    %c18_30 = arith.constant 18 : index
    %19 = vector.load %arg11[%c0_28, %c0_29, %c18_30] : memref<4x16x20xf32, #tpu.memory_space<vmem>>, vector<4x16x2xf32>
    tpu.vector_store %arg11[%c0_28, %c0_29, %c18_30], %18 {strides = array<i32>} : memref<4x16x20xf32, #tpu.memory_space<vmem>>, vector<4x16x2xf32>,
    %c0_31 = arith.constant 0 : index
    %c0_32 = arith.constant 0 : index
    %c2_33 = arith.constant 2 : index
    %20 = vector.load %arg11[%c0_31, %c0_32, %c2_33] : memref<4x16x20xf32, #tpu.memory_space<vmem>>, vector<4x16x16xf32>
    tpu.vector_store %arg11[%c0_31, %c0_32, %c2_33], %15 {strides = array<i32>} : memref<4x16x20xf32, #tpu.memory_space<vmem>>, vector<4x16x16xf32>,
    %c0_34 = arith.constant 0 : index
    %c0_35 = arith.constant 0 : index
    %c0_36 = arith.constant 0 : index
    %21 = vector.load %arg11[%c0_34, %c0_35, %c0_36] : memref<4x16x20xf32, #tpu.memory_space<vmem>>, vector<4x16x16xf32>
    %c0_37 = arith.constant 0 : index
    %c0_38 = arith.constant 0 : index
    %c1_39 = arith.constant 1 : index
    %22 = vector.load %arg11[%c0_37, %c0_38, %c1_39] : memref<4x16x20xf32, #tpu.memory_space<vmem>>, vector<4x16x16xf32>
    %23 = arith.addf %21, %22 : vector<4x16x16xf32>
    %c0_40 = arith.constant 0 : index
    %c0_41 = arith.constant 0 : index
    %c2_42 = arith.constant 2 : index
    %24 = vector.load %arg11[%c0_40, %c0_41, %c2_42] : memref<4x16x20xf32, #tpu.memory_space<vmem>>, vector<4x16x16xf32>
    %25 = arith.addf %23, %24 : vector<4x16x16xf32>
    %c0_43 = arith.constant 0 : index
    %c0_44 = arith.constant 0 : index
    %c3_45 = arith.constant 3 : index
    %26 = vector.load %arg11[%c0_43, %c0_44, %c3_45] : memref<4x16x20xf32, #tpu.memory_space<vmem>>, vector<4x16x16xf32>
    %27 = arith.addf %25, %26 : vector<4x16x16xf32>
    %c0_46 = arith.constant 0 : index
    %c0_47 = arith.constant 0 : index
    %c4_48 = arith.constant 4 : index
    %28 = vector.load %arg11[%c0_46, %c0_47, %c4_48] : memref<4x16x20xf32, #tpu.memory_space<vmem>>, vector<4x16x16xf32>
    %29 = arith.addf %27, %28 : vector<4x16x16xf32>
    %c0_49 = arith.constant 0 : index
    %c0_50 = arith.constant 0 : index
    %30 = vector.load %arg2[%c0_49, %c0_50] : memref<16x16xf32, #tpu.memory_space<vmem>>, vector<16x16xf32>
    %31 = vector.shape_cast %30 : vector<16x16xf32> to vector<1x16x16xf32>
    %32 = vector.broadcast %31 : vector<1x16x16xf32> to vector<4x16x16xf32>
    %33 = arith.mulf %29, %32 : vector<4x16x16xf32>
    %34 = arith.subf %33, %1 : vector<4x16x16xf32>
    %35 = vector.extract_strided_slice %34 {offsets = [0, 0, 0], sizes = [1, 16, 16], strides = [1, 1, 1]} : vector<4x16x16xf32> to vector<1x16x16xf32>
    %36 = vector.shape_cast %35 : vector<1x16x16xf32> to vector<16x16xf32>
    %37 = vector.extract_strided_slice %34 {offsets = [1, 0, 0], sizes = [1, 16, 16], strides = [1, 1, 1]} : vector<4x16x16xf32> to vector<1x16x16xf32>
    %38 = vector.shape_cast %37 : vector<1x16x16xf32> to vector<16x16xf32>
    %39 = vector.extract_strided_slice %34 {offsets = [2, 0, 0], sizes = [1, 16, 16], strides = [1, 1, 1]} : vector<4x16x16xf32> to vector<1x16x16xf32>
    %40 = vector.shape_cast %39 : vector<1x16x16xf32> to vector<16x16xf32>
    %41 = vector.extract_strided_slice %34 {offsets = [3, 0, 0], sizes = [1, 16, 16], strides = [1, 1, 1]} : vector<4x16x16xf32> to vector<1x16x16xf32>
    %42 = vector.shape_cast %41 : vector<1x16x16xf32> to vector<16x16xf32>
    %c0_51 = arith.constant 0 : index
    %c0_52 = arith.constant 0 : index
    %43 = memref.load %arg3[%c0_51, %c0_52] : memref<4x8xf32, #tpu.memory_space<smem>>
    %44 = vector.broadcast %43 : f32 to vector<16x16xf32>
    %45 = arith.mulf %36, %44 : vector<16x16xf32>
    %c1_53 = arith.constant 1 : index
    %c0_54 = arith.constant 0 : index
    %46 = memref.load %arg3[%c1_53, %c0_54] : memref<4x8xf32, #tpu.memory_space<smem>>
    %47 = vector.broadcast %46 : f32 to vector<16x16xf32>
    %48 = arith.mulf %38, %47 : vector<16x16xf32>
    %49 = arith.addf %45, %48 : vector<16x16xf32>
    %c2_55 = arith.constant 2 : index
    %c0_56 = arith.constant 0 : index
    %50 = memref.load %arg3[%c2_55, %c0_56] : memref<4x8xf32, #tpu.memory_space<smem>>
    %51 = vector.broadcast %50 : f32 to vector<16x16xf32>
    %52 = arith.mulf %40, %51 : vector<16x16xf32>
    %53 = arith.addf %49, %52 : vector<16x16xf32>
    %c3_57 = arith.constant 3 : index
    %c0_58 = arith.constant 0 : index
    %54 = memref.load %arg3[%c3_57, %c0_58] : memref<4x8xf32, #tpu.memory_space<smem>>
    %55 = vector.broadcast %54 : f32 to vector<16x16xf32>
    %56 = arith.mulf %42, %55 : vector<16x16xf32>
    %57 = arith.addf %53, %56 : vector<16x16xf32>
    %c0_59 = arith.constant 0 : index
    %58 = memref.load %arg4[%c0_59] : memref<8xf32, #tpu.memory_space<smem>>
    %59 = vector.broadcast %58 : f32 to vector<16x16xf32>
    %60 = arith.addf %57, %59 : vector<16x16xf32>
    %cst_60 = arith.constant 0.000000e+00 : f32
    %61 = vector.broadcast %cst_60 : f32 to vector<16x16xf32>
    %62 = arith.cmpf oge, %60, %61 : vector<16x16xf32>
    %cst_61 = arith.constant 2.000000e-01 : f32
    %63 = vector.broadcast %cst_61 : f32 to vector<16x16xf32>
    %64 = arith.mulf %63, %60 : vector<16x16xf32>
    %65 = arith.select %62, %60, %64 : vector<16x16xi1>, vector<16x16xf32>
    %c0_62 = arith.constant 0 : index
    %c1_63 = arith.constant 1 : index
    %c1_64 = arith.constant 1 : index
    %66 = vector.load %arg12[%c0_62, %c1_63, %c1_64] : memref<8x18x18xf32, #tpu.memory_space<vmem>>, vector<1x16x16xf32>
    %67 = vector.shape_cast %66 : vector<1x16x16xf32> to vector<16x16xf32>
    %68 = vector.shape_cast %65 : vector<16x16xf32> to vector<1x16x16xf32>
    tpu.vector_store %arg12[%c0_62, %c1_63, %c1_64], %68 {strides = array<i32>} : memref<8x18x18xf32, #tpu.memory_space<vmem>>, vector<1x16x16xf32>,
    %c0_65 = arith.constant 0 : index
    %c1_66 = arith.constant 1 : index
    %69 = memref.load %arg3[%c0_65, %c1_66] : memref<4x8xf32, #tpu.memory_space<smem>>
    %70 = vector.broadcast %69 : f32 to vector<16x16xf32>
    %71 = arith.mulf %36, %70 : vector<16x16xf32>
    %c1_67 = arith.constant 1 : index
    %c1_68 = arith.constant 1 : index
    %72 = memref.load %arg3[%c1_67, %c1_68] : memref<4x8xf32, #tpu.memory_space<smem>>
    %73 = vector.broadcast %72 : f32 to vector<16x16xf32>
    %74 = arith.mulf %38, %73 : vector<16x16xf32>
    %75 = arith.addf %71, %74 : vector<16x16xf32>
    %c2_69 = arith.constant 2 : index
    %c1_70 = arith.constant 1 : index
    %76 = memref.load %arg3[%c2_69, %c1_70] : memref<4x8xf32, #tpu.memory_space<smem>>
    %77 = vector.broadcast %76 : f32 to vector<16x16xf32>
    %78 = arith.mulf %40, %77 : vector<16x16xf32>
    %79 = arith.addf %75, %78 : vector<16x16xf32>
    %c3_71 = arith.constant 3 : index
    %c1_72 = arith.constant 1 : index
    %80 = memref.load %arg3[%c3_71, %c1_72] : memref<4x8xf32, #tpu.memory_space<smem>>
    %81 = vector.broadcast %80 : f32 to vector<16x16xf32>
    %82 = arith.mulf %42, %81 : vector<16x16xf32>
    %83 = arith.addf %79, %82 : vector<16x16xf32>
    %c1_73 = arith.constant 1 : index
    %84 = memref.load %arg4[%c1_73] : memref<8xf32, #tpu.memory_space<smem>>
    %85 = vector.broadcast %84 : f32 to vector<16x16xf32>
    %86 = arith.addf %83, %85 : vector<16x16xf32>
    %cst_74 = arith.constant 0.000000e+00 : f32
    %87 = vector.broadcast %cst_74 : f32 to vector<16x16xf32>
    %88 = arith.cmpf oge, %86, %87 : vector<16x16xf32>
    %cst_75 = arith.constant 2.000000e-01 : f32
    %89 = vector.broadcast %cst_75 : f32 to vector<16x16xf32>
    %90 = arith.mulf %89, %86 : vector<16x16xf32>
    %91 = arith.select %88, %86, %90 : vector<16x16xi1>, vector<16x16xf32>
    %c1_76 = arith.constant 1 : index
    %c1_77 = arith.constant 1 : index
    %c1_78 = arith.constant 1 : index
    %92 = vector.load %arg12[%c1_76, %c1_77, %c1_78] : memref<8x18x18xf32, #tpu.memory_space<vmem>>, vector<1x16x16xf32>
    %93 = vector.shape_cast %92 : vector<1x16x16xf32> to vector<16x16xf32>
    %94 = vector.shape_cast %91 : vector<16x16xf32> to vector<1x16x16xf32>
    tpu.vector_store %arg12[%c1_76, %c1_77, %c1_78], %94 {strides = array<i32>} : memref<8x18x18xf32, #tpu.memory_space<vmem>>, vector<1x16x16xf32>,
    %c0_79 = arith.constant 0 : index
    %c2_80 = arith.constant 2 : index
    %95 = memref.load %arg3[%c0_79, %c2_80] : memref<4x8xf32, #tpu.memory_space<smem>>
    %96 = vector.broadcast %95 : f32 to vector<16x16xf32>
    %97 = arith.mulf %36, %96 : vector<16x16xf32>
    %c1_81 = arith.constant 1 : index
    %c2_82 = arith.constant 2 : index
    %98 = memref.load %arg3[%c1_81, %c2_82] : memref<4x8xf32, #tpu.memory_space<smem>>
    %99 = vector.broadcast %98 : f32 to vector<16x16xf32>
    %100 = arith.mulf %38, %99 : vector<16x16xf32>
    %101 = arith.addf %97, %100 : vector<16x16xf32>
    %c2_83 = arith.constant 2 : index
    %c2_84 = arith.constant 2 : index
    %102 = memref.load %arg3[%c2_83, %c2_84] : memref<4x8xf32, #tpu.memory_space<smem>>
    %103 = vector.broadcast %102 : f32 to vector<16x16xf32>
    %104 = arith.mulf %40, %103 : vector<16x16xf32>
    %105 = arith.addf %101, %104 : vector<16x16xf32>
    %c3_85 = arith.constant 3 : index
    %c2_86 = arith.constant 2 : index
    %106 = memref.load %arg3[%c3_85, %c2_86] : memref<4x8xf32, #tpu.memory_space<smem>>
    %107 = vector.broadcast %106 : f32 to vector<16x16xf32>
    %108 = arith.mulf %42, %107 : vector<16x16xf32>
    %109 = arith.addf %105, %108 : vector<16x16xf32>
    %c2_87 = arith.constant 2 : index
    %110 = memref.load %arg4[%c2_87] : memref<8xf32, #tpu.memory_space<smem>>
    %111 = vector.broadcast %110 : f32 to vector<16x16xf32>
    %112 = arith.addf %109, %111 : vector<16x16xf32>
    %cst_88 = arith.constant 0.000000e+00 : f32
    %113 = vector.broadcast %cst_88 : f32 to vector<16x16xf32>
    %114 = arith.cmpf oge, %112, %113 : vector<16x16xf32>
    %cst_89 = arith.constant 2.000000e-01 : f32
    %115 = vector.broadcast %cst_89 : f32 to vector<16x16xf32>
    %116 = arith.mulf %115, %112 : vector<16x16xf32>
    %117 = arith.select %114, %112, %116 : vector<16x16xi1>, vector<16x16xf32>
    %c2_90 = arith.constant 2 : index
    %c1_91 = arith.constant 1 : index
    %c1_92 = arith.constant 1 : index
    %118 = vector.load %arg12[%c2_90, %c1_91, %c1_92] : memref<8x18x18xf32, #tpu.memory_space<vmem>>, vector<1x16x16xf32>
    %119 = vector.shape_cast %118 : vector<1x16x16xf32> to vector<16x16xf32>
    %120 = vector.shape_cast %117 : vector<16x16xf32> to vector<1x16x16xf32>
    tpu.vector_store %arg12[%c2_90, %c1_91, %c1_92], %120 {strides = array<i32>} : memref<8x18x18xf32, #tpu.memory_space<vmem>>, vector<1x16x16xf32>,
    %c0_93 = arith.constant 0 : index
    %c3_94 = arith.constant 3 : index
    %121 = memref.load %arg3[%c0_93, %c3_94] : memref<4x8xf32, #tpu.memory_space<smem>>
    %122 = vector.broadcast %121 : f32 to vector<16x16xf32>
    %123 = arith.mulf %36, %122 : vector<16x16xf32>
    %c1_95 = arith.constant 1 : index
    %c3_96 = arith.constant 3 : index
    %124 = memref.load %arg3[%c1_95, %c3_96] : memref<4x8xf32, #tpu.memory_space<smem>>
    %125 = vector.broadcast %124 : f32 to vector<16x16xf32>
    %126 = arith.mulf %38, %125 : vector<16x16xf32>
    %127 = arith.addf %123, %126 : vector<16x16xf32>
    %c2_97 = arith.constant 2 : index
    %c3_98 = arith.constant 3 : index
    %128 = memref.load %arg3[%c2_97, %c3_98] : memref<4x8xf32, #tpu.memory_space<smem>>
    %129 = vector.broadcast %128 : f32 to vector<16x16xf32>
    %130 = arith.mulf %40, %129 : vector<16x16xf32>
    %131 = arith.addf %127, %130 : vector<16x16xf32>
    %c3_99 = arith.constant 3 : index
    %c3_100 = arith.constant 3 : index
    %132 = memref.load %arg3[%c3_99, %c3_100] : memref<4x8xf32, #tpu.memory_space<smem>>
    %133 = vector.broadcast %132 : f32 to vector<16x16xf32>
    %134 = arith.mulf %42, %133 : vector<16x16xf32>
    %135 = arith.addf %131, %134 : vector<16x16xf32>
    %c3_101 = arith.constant 3 : index
    %136 = memref.load %arg4[%c3_101] : memref<8xf32, #tpu.memory_space<smem>>
    %137 = vector.broadcast %136 : f32 to vector<16x16xf32>
    %138 = arith.addf %135, %137 : vector<16x16xf32>
    %cst_102 = arith.constant 0.000000e+00 : f32
    %139 = vector.broadcast %cst_102 : f32 to vector<16x16xf32>
    %140 = arith.cmpf oge, %138, %139 : vector<16x16xf32>
    %cst_103 = arith.constant 2.000000e-01 : f32
    %141 = vector.broadcast %cst_103 : f32 to vector<16x16xf32>
    %142 = arith.mulf %141, %138 : vector<16x16xf32>
    %143 = arith.select %140, %138, %142 : vector<16x16xi1>, vector<16x16xf32>
    %c3_104 = arith.constant 3 : index
    %c1_105 = arith.constant 1 : index
    %c1_106 = arith.constant 1 : index
    %144 = vector.load %arg12[%c3_104, %c1_105, %c1_106] : memref<8x18x18xf32, #tpu.memory_space<vmem>>, vector<1x16x16xf32>
    %145 = vector.shape_cast %144 : vector<1x16x16xf32> to vector<16x16xf32>
    %146 = vector.shape_cast %143 : vector<16x16xf32> to vector<1x16x16xf32>
    tpu.vector_store %arg12[%c3_104, %c1_105, %c1_106], %146 {strides = array<i32>} : memref<8x18x18xf32, #tpu.memory_space<vmem>>, vector<1x16x16xf32>,
    %c0_107 = arith.constant 0 : index
    %c4_108 = arith.constant 4 : index
    %147 = memref.load %arg3[%c0_107, %c4_108] : memref<4x8xf32, #tpu.memory_space<smem>>
    %148 = vector.broadcast %147 : f32 to vector<16x16xf32>
    %149 = arith.mulf %36, %148 : vector<16x16xf32>
    %c1_109 = arith.constant 1 : index
    %c4_110 = arith.constant 4 : index
    %150 = memref.load %arg3[%c1_109, %c4_110] : memref<4x8xf32, #tpu.memory_space<smem>>
    %151 = vector.broadcast %150 : f32 to vector<16x16xf32>
    %152 = arith.mulf %38, %151 : vector<16x16xf32>
    %153 = arith.addf %149, %152 : vector<16x16xf32>
    %c2_111 = arith.constant 2 : index
    %c4_112 = arith.constant 4 : index
    %154 = memref.load %arg3[%c2_111, %c4_112] : memref<4x8xf32, #tpu.memory_space<smem>>
    %155 = vector.broadcast %154 : f32 to vector<16x16xf32>
    %156 = arith.mulf %40, %155 : vector<16x16xf32>
    %157 = arith.addf %153, %156 : vector<16x16xf32>
    %c3_113 = arith.constant 3 : index
    %c4_114 = arith.constant 4 : index
    %158 = memref.load %arg3[%c3_113, %c4_114] : memref<4x8xf32, #tpu.memory_space<smem>>
    %159 = vector.broadcast %158 : f32 to vector<16x16xf32>
    %160 = arith.mulf %42, %159 : vector<16x16xf32>
    %161 = arith.addf %157, %160 : vector<16x16xf32>
    %c4_115 = arith.constant 4 : index
    %162 = memref.load %arg4[%c4_115] : memref<8xf32, #tpu.memory_space<smem>>
    %163 = vector.broadcast %162 : f32 to vector<16x16xf32>
    %164 = arith.addf %161, %163 : vector<16x16xf32>
    %cst_116 = arith.constant 0.000000e+00 : f32
    %165 = vector.broadcast %cst_116 : f32 to vector<16x16xf32>
    %166 = arith.cmpf oge, %164, %165 : vector<16x16xf32>
    %cst_117 = arith.constant 2.000000e-01 : f32
    %167 = vector.broadcast %cst_117 : f32 to vector<16x16xf32>
    %168 = arith.mulf %167, %164 : vector<16x16xf32>
    %169 = arith.select %166, %164, %168 : vector<16x16xi1>, vector<16x16xf32>
    %c4_118 = arith.constant 4 : index
    %c1_119 = arith.constant 1 : index
    %c1_120 = arith.constant 1 : index
    %170 = vector.load %arg12[%c4_118, %c1_119, %c1_120] : memref<8x18x18xf32, #tpu.memory_space<vmem>>, vector<1x16x16xf32>
    %171 = vector.shape_cast %170 : vector<1x16x16xf32> to vector<16x16xf32>
    %172 = vector.shape_cast %169 : vector<16x16xf32> to vector<1x16x16xf32>
    tpu.vector_store %arg12[%c4_118, %c1_119, %c1_120], %172 {strides = array<i32>} : memref<8x18x18xf32, #tpu.memory_space<vmem>>, vector<1x16x16xf32>,
    %c0_121 = arith.constant 0 : index
    %c5 = arith.constant 5 : index
    %173 = memref.load %arg3[%c0_121, %c5] : memref<4x8xf32, #tpu.memory_space<smem>>
    %174 = vector.broadcast %173 : f32 to vector<16x16xf32>
    %175 = arith.mulf %36, %174 : vector<16x16xf32>
    %c1_122 = arith.constant 1 : index
    %c5_123 = arith.constant 5 : index
    %176 = memref.load %arg3[%c1_122, %c5_123] : memref<4x8xf32, #tpu.memory_space<smem>>
    %177 = vector.broadcast %176 : f32 to vector<16x16xf32>
    %178 = arith.mulf %38, %177 : vector<16x16xf32>
    %179 = arith.addf %175, %178 : vector<16x16xf32>
    %c2_124 = arith.constant 2 : index
    %c5_125 = arith.constant 5 : index
    %180 = memref.load %arg3[%c2_124, %c5_125] : memref<4x8xf32, #tpu.memory_space<smem>>
    %181 = vector.broadcast %180 : f32 to vector<16x16xf32>
    %182 = arith.mulf %40, %181 : vector<16x16xf32>
    %183 = arith.addf %179, %182 : vector<16x16xf32>
    %c3_126 = arith.constant 3 : index
    %c5_127 = arith.constant 5 : index
    %184 = memref.load %arg3[%c3_126, %c5_127] : memref<4x8xf32, #tpu.memory_space<smem>>
    %185 = vector.broadcast %184 : f32 to vector<16x16xf32>
    %186 = arith.mulf %42, %185 : vector<16x16xf32>
    %187 = arith.addf %183, %186 : vector<16x16xf32>
    %c5_128 = arith.constant 5 : index
    %188 = memref.load %arg4[%c5_128] : memref<8xf32, #tpu.memory_space<smem>>
    %189 = vector.broadcast %188 : f32 to vector<16x16xf32>
    %190 = arith.addf %187, %189 : vector<16x16xf32>
    %cst_129 = arith.constant 0.000000e+00 : f32
    %191 = vector.broadcast %cst_129 : f32 to vector<16x16xf32>
    %192 = arith.cmpf oge, %190, %191 : vector<16x16xf32>
    %cst_130 = arith.constant 2.000000e-01 : f32
    %193 = vector.broadcast %cst_130 : f32 to vector<16x16xf32>
    %194 = arith.mulf %193, %190 : vector<16x16xf32>
    %195 = arith.select %192, %190, %194 : vector<16x16xi1>, vector<16x16xf32>
    %c5_131 = arith.constant 5 : index
    %c1_132 = arith.constant 1 : index
    %c1_133 = arith.constant 1 : index
    %196 = vector.load %arg12[%c5_131, %c1_132, %c1_133] : memref<8x18x18xf32, #tpu.memory_space<vmem>>, vector<1x16x16xf32>
    %197 = vector.shape_cast %196 : vector<1x16x16xf32> to vector<16x16xf32>
    %198 = vector.shape_cast %195 : vector<16x16xf32> to vector<1x16x16xf32>
    tpu.vector_store %arg12[%c5_131, %c1_132, %c1_133], %198 {strides = array<i32>} : memref<8x18x18xf32, #tpu.memory_space<vmem>>, vector<1x16x16xf32>,
    %c0_134 = arith.constant 0 : index
    %c6 = arith.constant 6 : index
    %199 = memref.load %arg3[%c0_134, %c6] : memref<4x8xf32, #tpu.memory_space<smem>>
    %200 = vector.broadcast %199 : f32 to vector<16x16xf32>
    %201 = arith.mulf %36, %200 : vector<16x16xf32>
    %c1_135 = arith.constant 1 : index
    %c6_136 = arith.constant 6 : index
    %202 = memref.load %arg3[%c1_135, %c6_136] : memref<4x8xf32, #tpu.memory_space<smem>>
    %203 = vector.broadcast %202 : f32 to vector<16x16xf32>
    %204 = arith.mulf %38, %203 : vector<16x16xf32>
    %205 = arith.addf %201, %204 : vector<16x16xf32>
    %c2_137 = arith.constant 2 : index
    %c6_138 = arith.constant 6 : index
    %206 = memref.load %arg3[%c2_137, %c6_138] : memref<4x8xf32, #tpu.memory_space<smem>>
    %207 = vector.broadcast %206 : f32 to vector<16x16xf32>
    %208 = arith.mulf %40, %207 : vector<16x16xf32>
    %209 = arith.addf %205, %208 : vector<16x16xf32>
    %c3_139 = arith.constant 3 : index
    %c6_140 = arith.constant 6 : index
    %210 = memref.load %arg3[%c3_139, %c6_140] : memref<4x8xf32, #tpu.memory_space<smem>>
    %211 = vector.broadcast %210 : f32 to vector<16x16xf32>
    %212 = arith.mulf %42, %211 : vector<16x16xf32>
    %213 = arith.addf %209, %212 : vector<16x16xf32>
    %c6_141 = arith.constant 6 : index
    %214 = memref.load %arg4[%c6_141] : memref<8xf32, #tpu.memory_space<smem>>
    %215 = vector.broadcast %214 : f32 to vector<16x16xf32>
    %216 = arith.addf %213, %215 : vector<16x16xf32>
    %cst_142 = arith.constant 0.000000e+00 : f32
    %217 = vector.broadcast %cst_142 : f32 to vector<16x16xf32>
    %218 = arith.cmpf oge, %216, %217 : vector<16x16xf32>
    %cst_143 = arith.constant 2.000000e-01 : f32
    %219 = vector.broadcast %cst_143 : f32 to vector<16x16xf32>
    %220 = arith.mulf %219, %216 : vector<16x16xf32>
    %221 = arith.select %218, %216, %220 : vector<16x16xi1>, vector<16x16xf32>
    %c6_144 = arith.constant 6 : index
    %c1_145 = arith.constant 1 : index
    %c1_146 = arith.constant 1 : index
    %222 = vector.load %arg12[%c6_144, %c1_145, %c1_146] : memref<8x18x18xf32, #tpu.memory_space<vmem>>, vector<1x16x16xf32>
    %223 = vector.shape_cast %222 : vector<1x16x16xf32> to vector<16x16xf32>
    %224 = vector.shape_cast %221 : vector<16x16xf32> to vector<1x16x16xf32>
    tpu.vector_store %arg12[%c6_144, %c1_145, %c1_146], %224 {strides = array<i32>} : memref<8x18x18xf32, #tpu.memory_space<vmem>>, vector<1x16x16xf32>,
    %c0_147 = arith.constant 0 : index
    %c7 = arith.constant 7 : index
    %225 = memref.load %arg3[%c0_147, %c7] : memref<4x8xf32, #tpu.memory_space<smem>>
    %226 = vector.broadcast %225 : f32 to vector<16x16xf32>
    %227 = arith.mulf %36, %226 : vector<16x16xf32>
    %c1_148 = arith.constant 1 : index
    %c7_149 = arith.constant 7 : index
    %228 = memref.load %arg3[%c1_148, %c7_149] : memref<4x8xf32, #tpu.memory_space<smem>>
    %229 = vector.broadcast %228 : f32 to vector<16x16xf32>
    %230 = arith.mulf %38, %229 : vector<16x16xf32>
    %231 = arith.addf %227, %230 : vector<16x16xf32>
    %c2_150 = arith.constant 2 : index
    %c7_151 = arith.constant 7 : index
    %232 = memref.load %arg3[%c2_150, %c7_151] : memref<4x8xf32, #tpu.memory_space<smem>>
    %233 = vector.broadcast %232 : f32 to vector<16x16xf32>
    %234 = arith.mulf %40, %233 : vector<16x16xf32>
    %235 = arith.addf %231, %234 : vector<16x16xf32>
    %c3_152 = arith.constant 3 : index
    %c7_153 = arith.constant 7 : index
    %236 = memref.load %arg3[%c3_152, %c7_153] : memref<4x8xf32, #tpu.memory_space<smem>>
    %237 = vector.broadcast %236 : f32 to vector<16x16xf32>
    %238 = arith.mulf %42, %237 : vector<16x16xf32>
    %239 = arith.addf %235, %238 : vector<16x16xf32>
    %c7_154 = arith.constant 7 : index
    %240 = memref.load %arg4[%c7_154] : memref<8xf32, #tpu.memory_space<smem>>
    %241 = vector.broadcast %240 : f32 to vector<16x16xf32>
    %242 = arith.addf %239, %241 : vector<16x16xf32>
    %cst_155 = arith.constant 0.000000e+00 : f32
    %243 = vector.broadcast %cst_155 : f32 to vector<16x16xf32>
    %244 = arith.cmpf oge, %242, %243 : vector<16x16xf32>
    %cst_156 = arith.constant 2.000000e-01 : f32
    %245 = vector.broadcast %cst_156 : f32 to vector<16x16xf32>
    %246 = arith.mulf %245, %242 : vector<16x16xf32>
    %247 = arith.select %244, %242, %246 : vector<16x16xi1>, vector<16x16xf32>
    %c7_157 = arith.constant 7 : index
    %c1_158 = arith.constant 1 : index
    %c1_159 = arith.constant 1 : index
    %248 = vector.load %arg12[%c7_157, %c1_158, %c1_159] : memref<8x18x18xf32, #tpu.memory_space<vmem>>, vector<1x16x16xf32>
    %249 = vector.shape_cast %248 : vector<1x16x16xf32> to vector<16x16xf32>
    %250 = vector.shape_cast %247 : vector<16x16xf32> to vector<1x16x16xf32>
    tpu.vector_store %arg12[%c7_157, %c1_158, %c1_159], %250 {strides = array<i32>} : memref<8x18x18xf32, #tpu.memory_space<vmem>>, vector<1x16x16xf32>,
    %c0_160 = arith.constant 0 : index
    %c1_161 = arith.constant 1 : index
    %c1_162 = arith.constant 1 : index
    %251 = vector.load %arg12[%c0_160, %c1_161, %c1_162] : memref<8x18x18xf32, #tpu.memory_space<vmem>>, vector<8x1x16xf32>
    %c0_163 = arith.constant 0 : index
    %c0_164 = arith.constant 0 : index
    %c1_165 = arith.constant 1 : index
    %252 = vector.load %arg12[%c0_163, %c0_164, %c1_165] : memref<8x18x18xf32, #tpu.memory_space<vmem>>, vector<8x1x16xf32>
    tpu.vector_store %arg12[%c0_163, %c0_164, %c1_165], %251 {strides = array<i32>} : memref<8x18x18xf32, #tpu.memory_space<vmem>>, vector<8x1x16xf32>,
    %c0_166 = arith.constant 0 : index
    %c16 = arith.constant 16 : index
    %c1_167 = arith.constant 1 : index
    %253 = vector.load %arg12[%c0_166, %c16, %c1_167] : memref<8x18x18xf32, #tpu.memory_space<vmem>>, vector<8x1x16xf32>
    %c0_168 = arith.constant 0 : index
    %c17 = arith.constant 17 : index
    %c1_169 = arith.constant 1 : index
    %254 = vector.load %arg12[%c0_168, %c17, %c1_169] : memref<8x18x18xf32, #tpu.memory_space<vmem>>, vector<8x1x16xf32>
    tpu.vector_store %arg12[%c0_168, %c17, %c1_169], %253 {strides = array<i32>} : memref<8x18x18xf32, #tpu.memory_space<vmem>>, vector<8x1x16xf32>,
    %c0_170 = arith.constant 0 : index
    %c0_171 = arith.constant 0 : index
    %c1_172 = arith.constant 1 : index
    %255 = vector.load %arg12[%c0_170, %c0_171, %c1_172] : memref<8x18x18xf32, #tpu.memory_space<vmem>>, vector<8x18x1xf32>
    %c0_173 = arith.constant 0 : index
    %c0_174 = arith.constant 0 : index
    %c0_175 = arith.constant 0 : index
    %256 = vector.load %arg12[%c0_173, %c0_174, %c0_175] : memref<8x18x18xf32, #tpu.memory_space<vmem>>, vector<8x18x1xf32>
    tpu.vector_store %arg12[%c0_173, %c0_174, %c0_175], %255 {strides = array<i32>} : memref<8x18x18xf32, #tpu.memory_space<vmem>>, vector<8x18x1xf32>,
    %c0_176 = arith.constant 0 : index
    %c0_177 = arith.constant 0 : index
    %c16_178 = arith.constant 16 : index
    %257 = vector.load %arg12[%c0_176, %c0_177, %c16_178] : memref<8x18x18xf32, #tpu.memory_space<vmem>>, vector<8x18x1xf32>
    %c0_179 = arith.constant 0 : index
    %c0_180 = arith.constant 0 : index
    %c17_181 = arith.constant 17 : index
    %258 = vector.load %arg12[%c0_179, %c0_180, %c17_181] : memref<8x18x18xf32, #tpu.memory_space<vmem>>, vector<8x18x1xf32>
    tpu.vector_store %arg12[%c0_179, %c0_180, %c17_181], %257 {strides = array<i32>} : memref<8x18x18xf32, #tpu.memory_space<vmem>>, vector<8x18x1xf32>,
    %c0_182 = arith.constant 0 : index
    %c0_183 = arith.constant 0 : index
    %c0_184 = arith.constant 0 : index
    %259 = vector.load %arg12[%c0_182, %c0_183, %c0_184] : memref<8x18x18xf32, #tpu.memory_space<vmem>>, vector<1x16x16xf32>
    %260 = vector.shape_cast %259 : vector<1x16x16xf32> to vector<16x16xf32>
    %c0_185 = arith.constant 0 : index
    %c0_186 = arith.constant 0 : index
    %261 = memref.load %arg5[%c0_185, %c0_186] : memref<9x8xf32, #tpu.memory_space<smem>>
    %262 = vector.broadcast %261 : f32 to vector<16x16xf32>
    %263 = arith.mulf %260, %262 : vector<16x16xf32>
    %c0_187 = arith.constant 0 : index
    %c0_188 = arith.constant 0 : index
    %c1_189 = arith.constant 1 : index
    %264 = vector.load %arg12[%c0_187, %c0_188, %c1_189] : memref<8x18x18xf32, #tpu.memory_space<vmem>>, vector<1x16x16xf32>
    %265 = vector.shape_cast %264 : vector<1x16x16xf32> to vector<16x16xf32>
    %c1_190 = arith.constant 1 : index
    %c0_191 = arith.constant 0 : index
    %266 = memref.load %arg5[%c1_190, %c0_191] : memref<9x8xf32, #tpu.memory_space<smem>>
    %267 = vector.broadcast %266 : f32 to vector<16x16xf32>
    %268 = arith.mulf %265, %267 : vector<16x16xf32>
    %269 = arith.addf %263, %268 : vector<16x16xf32>
    %c0_192 = arith.constant 0 : index
    %c0_193 = arith.constant 0 : index
    %c2_194 = arith.constant 2 : index
    %270 = vector.load %arg12[%c0_192, %c0_193, %c2_194] : memref<8x18x18xf32, #tpu.memory_space<vmem>>, vector<1x16x16xf32>
    %271 = vector.shape_cast %270 : vector<1x16x16xf32> to vector<16x16xf32>
    %c2_195 = arith.constant 2 : index
    %c0_196 = arith.constant 0 : index
    %272 = memref.load %arg5[%c2_195, %c0_196] : memref<9x8xf32, #tpu.memory_space<smem>>
    %273 = vector.broadcast %272 : f32 to vector<16x16xf32>
    %274 = arith.mulf %271, %273 : vector<16x16xf32>
    %275 = arith.addf %269, %274 : vector<16x16xf32>
    %c0_197 = arith.constant 0 : index
    %c1_198 = arith.constant 1 : index
    %c0_199 = arith.constant 0 : index
    %276 = vector.load %arg12[%c0_197, %c1_198, %c0_199] : memref<8x18x18xf32, #tpu.memory_space<vmem>>, vector<1x16x16xf32>
    %277 = vector.shape_cast %276 : vector<1x16x16xf32> to vector<16x16xf32>
    %c3_200 = arith.constant 3 : index
    %c0_201 = arith.constant 0 : index
    %278 = memref.load %arg5[%c3_200, %c0_201] : memref<9x8xf32, #tpu.memory_space<smem>>
    %279 = vector.broadcast %278 : f32 to vector<16x16xf32>
    %280 = arith.mulf %277, %279 : vector<16x16xf32>
    %281 = arith.addf %275, %280 : vector<16x16xf32>
    %c0_202 = arith.constant 0 : index
    %c1_203 = arith.constant 1 : index
    %c1_204 = arith.constant 1 : index
    %282 = vector.load %arg12[%c0_202, %c1_203, %c1_204] : memref<8x18x18xf32, #tpu.memory_space<vmem>>, vector<1x16x16xf32>
    %283 = vector.shape_cast %282 : vector<1x16x16xf32> to vector<16x16xf32>
    %c4_205 = arith.constant 4 : index
    %c0_206 = arith.constant 0 : index
    %284 = memref.load %arg5[%c4_205, %c0_206] : memref<9x8xf32, #tpu.memory_space<smem>>
    %285 = vector.broadcast %284 : f32 to vector<16x16xf32>
    %286 = arith.mulf %283, %285 : vector<16x16xf32>
    %287 = arith.addf %281, %286 : vector<16x16xf32>
    %c0_207 = arith.constant 0 : index
    %c1_208 = arith.constant 1 : index
    %c2_209 = arith.constant 2 : index
    %288 = vector.load %arg12[%c0_207, %c1_208, %c2_209] : memref<8x18x18xf32, #tpu.memory_space<vmem>>, vector<1x16x16xf32>
    %289 = vector.shape_cast %288 : vector<1x16x16xf32> to vector<16x16xf32>
    %c5_210 = arith.constant 5 : index
    %c0_211 = arith.constant 0 : index
    %290 = memref.load %arg5[%c5_210, %c0_211] : memref<9x8xf32, #tpu.memory_space<smem>>
    %291 = vector.broadcast %290 : f32 to vector<16x16xf32>
    %292 = arith.mulf %289, %291 : vector<16x16xf32>
    %293 = arith.addf %287, %292 : vector<16x16xf32>
    %c0_212 = arith.constant 0 : index
    %c2_213 = arith.constant 2 : index
    %c0_214 = arith.constant 0 : index
    %294 = vector.load %arg12[%c0_212, %c2_213, %c0_214] : memref<8x18x18xf32, #tpu.memory_space<vmem>>, vector<1x16x16xf32>
    %295 = vector.shape_cast %294 : vector<1x16x16xf32> to vector<16x16xf32>
    %c6_215 = arith.constant 6 : index
    %c0_216 = arith.constant 0 : index
    %296 = memref.load %arg5[%c6_215, %c0_216] : memref<9x8xf32, #tpu.memory_space<smem>>
    %297 = vector.broadcast %296 : f32 to vector<16x16xf32>
    %298 = arith.mulf %295, %297 : vector<16x16xf32>
    %299 = arith.addf %293, %298 : vector<16x16xf32>
    %c0_217 = arith.constant 0 : index
    %c2_218 = arith.constant 2 : index
    %c1_219 = arith.constant 1 : index
    %300 = vector.load %arg12[%c0_217, %c2_218, %c1_219] : memref<8x18x18xf32, #tpu.memory_space<vmem>>, vector<1x16x16xf32>
    %301 = vector.shape_cast %300 : vector<1x16x16xf32> to vector<16x16xf32>
    %c7_220 = arith.constant 7 : index
    %c0_221 = arith.constant 0 : index
    %302 = memref.load %arg5[%c7_220, %c0_221] : memref<9x8xf32, #tpu.memory_space<smem>>
    %303 = vector.broadcast %302 : f32 to vector<16x16xf32>
    %304 = arith.mulf %301, %303 : vector<16x16xf32>
    %305 = arith.addf %299, %304 : vector<16x16xf32>
    %c0_222 = arith.constant 0 : index
    %c2_223 = arith.constant 2 : index
    %c2_224 = arith.constant 2 : index
    %306 = vector.load %arg12[%c0_222, %c2_223, %c2_224] : memref<8x18x18xf32, #tpu.memory_space<vmem>>, vector<1x16x16xf32>
    %307 = vector.shape_cast %306 : vector<1x16x16xf32> to vector<16x16xf32>
    %c8 = arith.constant 8 : index
    %c0_225 = arith.constant 0 : index
    %308 = memref.load %arg5[%c8, %c0_225] : memref<9x8xf32, #tpu.memory_space<smem>>
    %309 = vector.broadcast %308 : f32 to vector<16x16xf32>
    %310 = arith.mulf %307, %309 : vector<16x16xf32>
    %311 = arith.addf %305, %310 : vector<16x16xf32>
    %c0_226 = arith.constant 0 : index
    %312 = memref.load %arg6[%c0_226] : memref<8xf32, #tpu.memory_space<smem>>
    %313 = vector.broadcast %312 : f32 to vector<16x16xf32>
    %314 = arith.addf %311, %313 : vector<16x16xf32>
    %c1_227 = arith.constant 1 : index
    %c0_228 = arith.constant 0 : index
    %c0_229 = arith.constant 0 : index
    %315 = vector.load %arg12[%c1_227, %c0_228, %c0_229] : memref<8x18x18xf32, #tpu.memory_space<vmem>>, vector<1x16x16xf32>
    %316 = vector.shape_cast %315 : vector<1x16x16xf32> to vector<16x16xf32>
    %c0_230 = arith.constant 0 : index
    %c1_231 = arith.constant 1 : index
    %317 = memref.load %arg5[%c0_230, %c1_231] : memref<9x8xf32, #tpu.memory_space<smem>>
    %318 = vector.broadcast %317 : f32 to vector<16x16xf32>
    %319 = arith.mulf %316, %318 : vector<16x16xf32>
    %c1_232 = arith.constant 1 : index
    %c0_233 = arith.constant 0 : index
    %c1_234 = arith.constant 1 : index
    %320 = vector.load %arg12[%c1_232, %c0_233, %c1_234] : memref<8x18x18xf32, #tpu.memory_space<vmem>>, vector<1x16x16xf32>
    %321 = vector.shape_cast %320 : vector<1x16x16xf32> to vector<16x16xf32>
    %c1_235 = arith.constant 1 : index
    %c1_236 = arith.constant 1 : index
    %322 = memref.load %arg5[%c1_235, %c1_236] : memref<9x8xf32, #tpu.memory_space<smem>>
    %323 = vector.broadcast %322 : f32 to vector<16x16xf32>
    %324 = arith.mulf %321, %323 : vector<16x16xf32>
    %325 = arith.addf %319, %324 : vector<16x16xf32>
    %c1_237 = arith.constant 1 : index
    %c0_238 = arith.constant 0 : index
    %c2_239 = arith.constant 2 : index
    %326 = vector.load %arg12[%c1_237, %c0_238, %c2_239] : memref<8x18x18xf32, #tpu.memory_space<vmem>>, vector<1x16x16xf32>
    %327 = vector.shape_cast %326 : vector<1x16x16xf32> to vector<16x16xf32>
    %c2_240 = arith.constant 2 : index
    %c1_241 = arith.constant 1 : index
    %328 = memref.load %arg5[%c2_240, %c1_241] : memref<9x8xf32, #tpu.memory_space<smem>>
    %329 = vector.broadcast %328 : f32 to vector<16x16xf32>
    %330 = arith.mulf %327, %329 : vector<16x16xf32>
    %331 = arith.addf %325, %330 : vector<16x16xf32>
    %c1_242 = arith.constant 1 : index
    %c1_243 = arith.constant 1 : index
    %c0_244 = arith.constant 0 : index
    %332 = vector.load %arg12[%c1_242, %c1_243, %c0_244] : memref<8x18x18xf32, #tpu.memory_space<vmem>>, vector<1x16x16xf32>
    %333 = vector.shape_cast %332 : vector<1x16x16xf32> to vector<16x16xf32>
    %c3_245 = arith.constant 3 : index
    %c1_246 = arith.constant 1 : index
    %334 = memref.load %arg5[%c3_245, %c1_246] : memref<9x8xf32, #tpu.memory_space<smem>>
    %335 = vector.broadcast %334 : f32 to vector<16x16xf32>
    %336 = arith.mulf %333, %335 : vector<16x16xf32>
    %337 = arith.addf %331, %336 : vector<16x16xf32>
    %c1_247 = arith.constant 1 : index
    %c1_248 = arith.constant 1 : index
    %c1_249 = arith.constant 1 : index
    %338 = vector.load %arg12[%c1_247, %c1_248, %c1_249] : memref<8x18x18xf32, #tpu.memory_space<vmem>>, vector<1x16x16xf32>
    %339 = vector.shape_cast %338 : vector<1x16x16xf32> to vector<16x16xf32>
    %c4_250 = arith.constant 4 : index
    %c1_251 = arith.constant 1 : index
    %340 = memref.load %arg5[%c4_250, %c1_251] : memref<9x8xf32, #tpu.memory_space<smem>>
    %341 = vector.broadcast %340 : f32 to vector<16x16xf32>
    %342 = arith.mulf %339, %341 : vector<16x16xf32>
    %343 = arith.addf %337, %342 : vector<16x16xf32>
    %c1_252 = arith.constant 1 : index
    %c1_253 = arith.constant 1 : index
    %c2_254 = arith.constant 2 : index
    %344 = vector.load %arg12[%c1_252, %c1_253, %c2_254] : memref<8x18x18xf32, #tpu.memory_space<vmem>>, vector<1x16x16xf32>
    %345 = vector.shape_cast %344 : vector<1x16x16xf32> to vector<16x16xf32>
    %c5_255 = arith.constant 5 : index
    %c1_256 = arith.constant 1 : index
    %346 = memref.load %arg5[%c5_255, %c1_256] : memref<9x8xf32, #tpu.memory_space<smem>>
    %347 = vector.broadcast %346 : f32 to vector<16x16xf32>
    %348 = arith.mulf %345, %347 : vector<16x16xf32>
    %349 = arith.addf %343, %348 : vector<16x16xf32>
    %c1_257 = arith.constant 1 : index
    %c2_258 = arith.constant 2 : index
    %c0_259 = arith.constant 0 : index
    %350 = vector.load %arg12[%c1_257, %c2_258, %c0_259] : memref<8x18x18xf32, #tpu.memory_space<vmem>>, vector<1x16x16xf32>
    %351 = vector.shape_cast %350 : vector<1x16x16xf32> to vector<16x16xf32>
    %c6_260 = arith.constant 6 : index
    %c1_261 = arith.constant 1 : index
    %352 = memref.load %arg5[%c6_260, %c1_261] : memref<9x8xf32, #tpu.memory_space<smem>>
    %353 = vector.broadcast %352 : f32 to vector<16x16xf32>
    %354 = arith.mulf %351, %353 : vector<16x16xf32>
    %355 = arith.addf %349, %354 : vector<16x16xf32>
    %c1_262 = arith.constant 1 : index
    %c2_263 = arith.constant 2 : index
    %c1_264 = arith.constant 1 : index
    %356 = vector.load %arg12[%c1_262, %c2_263, %c1_264] : memref<8x18x18xf32, #tpu.memory_space<vmem>>, vector<1x16x16xf32>
    %357 = vector.shape_cast %356 : vector<1x16x16xf32> to vector<16x16xf32>
    %c7_265 = arith.constant 7 : index
    %c1_266 = arith.constant 1 : index
    %358 = memref.load %arg5[%c7_265, %c1_266] : memref<9x8xf32, #tpu.memory_space<smem>>
    %359 = vector.broadcast %358 : f32 to vector<16x16xf32>
    %360 = arith.mulf %357, %359 : vector<16x16xf32>
    %361 = arith.addf %355, %360 : vector<16x16xf32>
    %c1_267 = arith.constant 1 : index
    %c2_268 = arith.constant 2 : index
    %c2_269 = arith.constant 2 : index
    %362 = vector.load %arg12[%c1_267, %c2_268, %c2_269] : memref<8x18x18xf32, #tpu.memory_space<vmem>>, vector<1x16x16xf32>
    %363 = vector.shape_cast %362 : vector<1x16x16xf32> to vector<16x16xf32>
    %c8_270 = arith.constant 8 : index
    %c1_271 = arith.constant 1 : index
    %364 = memref.load %arg5[%c8_270, %c1_271] : memref<9x8xf32, #tpu.memory_space<smem>>
    %365 = vector.broadcast %364 : f32 to vector<16x16xf32>
    %366 = arith.mulf %363, %365 : vector<16x16xf32>
    %367 = arith.addf %361, %366 : vector<16x16xf32>
    %c1_272 = arith.constant 1 : index
    %368 = memref.load %arg6[%c1_272] : memref<8xf32, #tpu.memory_space<smem>>
    %369 = vector.broadcast %368 : f32 to vector<16x16xf32>
    %370 = arith.addf %367, %369 : vector<16x16xf32>
    %c2_273 = arith.constant 2 : index
    %c0_274 = arith.constant 0 : index
    %c0_275 = arith.constant 0 : index
    %371 = vector.load %arg12[%c2_273, %c0_274, %c0_275] : memref<8x18x18xf32, #tpu.memory_space<vmem>>, vector<1x16x16xf32>
    %372 = vector.shape_cast %371 : vector<1x16x16xf32> to vector<16x16xf32>
    %c0_276 = arith.constant 0 : index
    %c2_277 = arith.constant 2 : index
    %373 = memref.load %arg5[%c0_276, %c2_277] : memref<9x8xf32, #tpu.memory_space<smem>>
    %374 = vector.broadcast %373 : f32 to vector<16x16xf32>
    %375 = arith.mulf %372, %374 : vector<16x16xf32>
    %c2_278 = arith.constant 2 : index
    %c0_279 = arith.constant 0 : index
    %c1_280 = arith.constant 1 : index
    %376 = vector.load %arg12[%c2_278, %c0_279, %c1_280] : memref<8x18x18xf32, #tpu.memory_space<vmem>>, vector<1x16x16xf32>
    %377 = vector.shape_cast %376 : vector<1x16x16xf32> to vector<16x16xf32>
    %c1_281 = arith.constant 1 : index
    %c2_282 = arith.constant 2 : index
    %378 = memref.load %arg5[%c1_281, %c2_282] : memref<9x8xf32, #tpu.memory_space<smem>>
    %379 = vector.broadcast %378 : f32 to vector<16x16xf32>
    %380 = arith.mulf %377, %379 : vector<16x16xf32>
    %381 = arith.addf %375, %380 : vector<16x16xf32>
    %c2_283 = arith.constant 2 : index
    %c0_284 = arith.constant 0 : index
    %c2_285 = arith.constant 2 : index
    %382 = vector.load %arg12[%c2_283, %c0_284, %c2_285] : memref<8x18x18xf32, #tpu.memory_space<vmem>>, vector<1x16x16xf32>
    %383 = vector.shape_cast %382 : vector<1x16x16xf32> to vector<16x16xf32>
    %c2_286 = arith.constant 2 : index
    %c2_287 = arith.constant 2 : index
    %384 = memref.load %arg5[%c2_286, %c2_287] : memref<9x8xf32, #tpu.memory_space<smem>>
    %385 = vector.broadcast %384 : f32 to vector<16x16xf32>
    %386 = arith.mulf %383, %385 : vector<16x16xf32>
    %387 = arith.addf %381, %386 : vector<16x16xf32>
    %c2_288 = arith.constant 2 : index
    %c1_289 = arith.constant 1 : index
    %c0_290 = arith.constant 0 : index
    %388 = vector.load %arg12[%c2_288, %c1_289, %c0_290] : memref<8x18x18xf32, #tpu.memory_space<vmem>>, vector<1x16x16xf32>
    %389 = vector.shape_cast %388 : vector<1x16x16xf32> to vector<16x16xf32>
    %c3_291 = arith.constant 3 : index
    %c2_292 = arith.constant 2 : index
    %390 = memref.load %arg5[%c3_291, %c2_292] : memref<9x8xf32, #tpu.memory_space<smem>>
    %391 = vector.broadcast %390 : f32 to vector<16x16xf32>
    %392 = arith.mulf %389, %391 : vector<16x16xf32>
    %393 = arith.addf %387, %392 : vector<16x16xf32>
    %c2_293 = arith.constant 2 : index
    %c1_294 = arith.constant 1 : index
    %c1_295 = arith.constant 1 : index
    %394 = vector.load %arg12[%c2_293, %c1_294, %c1_295] : memref<8x18x18xf32, #tpu.memory_space<vmem>>, vector<1x16x16xf32>
    %395 = vector.shape_cast %394 : vector<1x16x16xf32> to vector<16x16xf32>
    %c4_296 = arith.constant 4 : index
    %c2_297 = arith.constant 2 : index
    %396 = memref.load %arg5[%c4_296, %c2_297] : memref<9x8xf32, #tpu.memory_space<smem>>
    %397 = vector.broadcast %396 : f32 to vector<16x16xf32>
    %398 = arith.mulf %395, %397 : vector<16x16xf32>
    %399 = arith.addf %393, %398 : vector<16x16xf32>
    %c2_298 = arith.constant 2 : index
    %c1_299 = arith.constant 1 : index
    %c2_300 = arith.constant 2 : index
    %400 = vector.load %arg12[%c2_298, %c1_299, %c2_300] : memref<8x18x18xf32, #tpu.memory_space<vmem>>, vector<1x16x16xf32>
    %401 = vector.shape_cast %400 : vector<1x16x16xf32> to vector<16x16xf32>
    %c5_301 = arith.constant 5 : index
    %c2_302 = arith.constant 2 : index
    %402 = memref.load %arg5[%c5_301, %c2_302] : memref<9x8xf32, #tpu.memory_space<smem>>
    %403 = vector.broadcast %402 : f32 to vector<16x16xf32>
    %404 = arith.mulf %401, %403 : vector<16x16xf32>
    %405 = arith.addf %399, %404 : vector<16x16xf32>
    %c2_303 = arith.constant 2 : index
    %c2_304 = arith.constant 2 : index
    %c0_305 = arith.constant 0 : index
    %406 = vector.load %arg12[%c2_303, %c2_304, %c0_305] : memref<8x18x18xf32, #tpu.memory_space<vmem>>, vector<1x16x16xf32>
    %407 = vector.shape_cast %406 : vector<1x16x16xf32> to vector<16x16xf32>
    %c6_306 = arith.constant 6 : index
    %c2_307 = arith.constant 2 : index
    %408 = memref.load %arg5[%c6_306, %c2_307] : memref<9x8xf32, #tpu.memory_space<smem>>
    %409 = vector.broadcast %408 : f32 to vector<16x16xf32>
    %410 = arith.mulf %407, %409 : vector<16x16xf32>
    %411 = arith.addf %405, %410 : vector<16x16xf32>
    %c2_308 = arith.constant 2 : index
    %c2_309 = arith.constant 2 : index
    %c1_310 = arith.constant 1 : index
    %412 = vector.load %arg12[%c2_308, %c2_309, %c1_310] : memref<8x18x18xf32, #tpu.memory_space<vmem>>, vector<1x16x16xf32>
    %413 = vector.shape_cast %412 : vector<1x16x16xf32> to vector<16x16xf32>
    %c7_311 = arith.constant 7 : index
    %c2_312 = arith.constant 2 : index
    %414 = memref.load %arg5[%c7_311, %c2_312] : memref<9x8xf32, #tpu.memory_space<smem>>
    %415 = vector.broadcast %414 : f32 to vector<16x16xf32>
    %416 = arith.mulf %413, %415 : vector<16x16xf32>
    %417 = arith.addf %411, %416 : vector<16x16xf32>
    %c2_313 = arith.constant 2 : index
    %c2_314 = arith.constant 2 : index
    %c2_315 = arith.constant 2 : index
    %418 = vector.load %arg12[%c2_313, %c2_314, %c2_315] : memref<8x18x18xf32, #tpu.memory_space<vmem>>, vector<1x16x16xf32>
    %419 = vector.shape_cast %418 : vector<1x16x16xf32> to vector<16x16xf32>
    %c8_316 = arith.constant 8 : index
    %c2_317 = arith.constant 2 : index
    %420 = memref.load %arg5[%c8_316, %c2_317] : memref<9x8xf32, #tpu.memory_space<smem>>
    %421 = vector.broadcast %420 : f32 to vector<16x16xf32>
    %422 = arith.mulf %419, %421 : vector<16x16xf32>
    %423 = arith.addf %417, %422 : vector<16x16xf32>
    %c2_318 = arith.constant 2 : index
    %424 = memref.load %arg6[%c2_318] : memref<8xf32, #tpu.memory_space<smem>>
    %425 = vector.broadcast %424 : f32 to vector<16x16xf32>
    %426 = arith.addf %423, %425 : vector<16x16xf32>
    %c3_319 = arith.constant 3 : index
    %c0_320 = arith.constant 0 : index
    %c0_321 = arith.constant 0 : index
    %427 = vector.load %arg12[%c3_319, %c0_320, %c0_321] : memref<8x18x18xf32, #tpu.memory_space<vmem>>, vector<1x16x16xf32>
    %428 = vector.shape_cast %427 : vector<1x16x16xf32> to vector<16x16xf32>
    %c0_322 = arith.constant 0 : index
    %c3_323 = arith.constant 3 : index
    %429 = memref.load %arg5[%c0_322, %c3_323] : memref<9x8xf32, #tpu.memory_space<smem>>
    %430 = vector.broadcast %429 : f32 to vector<16x16xf32>
    %431 = arith.mulf %428, %430 : vector<16x16xf32>
    %c3_324 = arith.constant 3 : index
    %c0_325 = arith.constant 0 : index
    %c1_326 = arith.constant 1 : index
    %432 = vector.load %arg12[%c3_324, %c0_325, %c1_326] : memref<8x18x18xf32, #tpu.memory_space<vmem>>, vector<1x16x16xf32>
    %433 = vector.shape_cast %432 : vector<1x16x16xf32> to vector<16x16xf32>
    %c1_327 = arith.constant 1 : index
    %c3_328 = arith.constant 3 : index
    %434 = memref.load %arg5[%c1_327, %c3_328] : memref<9x8xf32, #tpu.memory_space<smem>>
    %435 = vector.broadcast %434 : f32 to vector<16x16xf32>
    %436 = arith.mulf %433, %435 : vector<16x16xf32>
    %437 = arith.addf %431, %436 : vector<16x16xf32>
    %c3_329 = arith.constant 3 : index
    %c0_330 = arith.constant 0 : index
    %c2_331 = arith.constant 2 : index
    %438 = vector.load %arg12[%c3_329, %c0_330, %c2_331] : memref<8x18x18xf32, #tpu.memory_space<vmem>>, vector<1x16x16xf32>
    %439 = vector.shape_cast %438 : vector<1x16x16xf32> to vector<16x16xf32>
    %c2_332 = arith.constant 2 : index
    %c3_333 = arith.constant 3 : index
    %440 = memref.load %arg5[%c2_332, %c3_333] : memref<9x8xf32, #tpu.memory_space<smem>>
    %441 = vector.broadcast %440 : f32 to vector<16x16xf32>
    %442 = arith.mulf %439, %441 : vector<16x16xf32>
    %443 = arith.addf %437, %442 : vector<16x16xf32>
    %c3_334 = arith.constant 3 : index
    %c1_335 = arith.constant 1 : index
    %c0_336 = arith.constant 0 : index
    %444 = vector.load %arg12[%c3_334, %c1_335, %c0_336] : memref<8x18x18xf32, #tpu.memory_space<vmem>>, vector<1x16x16xf32>
    %445 = vector.shape_cast %444 : vector<1x16x16xf32> to vector<16x16xf32>
    %c3_337 = arith.constant 3 : index
    %c3_338 = arith.constant 3 : index
    %446 = memref.load %arg5[%c3_337, %c3_338] : memref<9x8xf32, #tpu.memory_space<smem>>
    %447 = vector.broadcast %446 : f32 to vector<16x16xf32>
    %448 = arith.mulf %445, %447 : vector<16x16xf32>
    %449 = arith.addf %443, %448 : vector<16x16xf32>
    %c3_339 = arith.constant 3 : index
    %c1_340 = arith.constant 1 : index
    %c1_341 = arith.constant 1 : index
    %450 = vector.load %arg12[%c3_339, %c1_340, %c1_341] : memref<8x18x18xf32, #tpu.memory_space<vmem>>, vector<1x16x16xf32>
    %451 = vector.shape_cast %450 : vector<1x16x16xf32> to vector<16x16xf32>
    %c4_342 = arith.constant 4 : index
    %c3_343 = arith.constant 3 : index
    %452 = memref.load %arg5[%c4_342, %c3_343] : memref<9x8xf32, #tpu.memory_space<smem>>
    %453 = vector.broadcast %452 : f32 to vector<16x16xf32>
    %454 = arith.mulf %451, %453 : vector<16x16xf32>
    %455 = arith.addf %449, %454 : vector<16x16xf32>
    %c3_344 = arith.constant 3 : index
    %c1_345 = arith.constant 1 : index
    %c2_346 = arith.constant 2 : index
    %456 = vector.load %arg12[%c3_344, %c1_345, %c2_346] : memref<8x18x18xf32, #tpu.memory_space<vmem>>, vector<1x16x16xf32>
    %457 = vector.shape_cast %456 : vector<1x16x16xf32> to vector<16x16xf32>
    %c5_347 = arith.constant 5 : index
    %c3_348 = arith.constant 3 : index
    %458 = memref.load %arg5[%c5_347, %c3_348] : memref<9x8xf32, #tpu.memory_space<smem>>
    %459 = vector.broadcast %458 : f32 to vector<16x16xf32>
    %460 = arith.mulf %457, %459 : vector<16x16xf32>
    %461 = arith.addf %455, %460 : vector<16x16xf32>
    %c3_349 = arith.constant 3 : index
    %c2_350 = arith.constant 2 : index
    %c0_351 = arith.constant 0 : index
    %462 = vector.load %arg12[%c3_349, %c2_350, %c0_351] : memref<8x18x18xf32, #tpu.memory_space<vmem>>, vector<1x16x16xf32>
    %463 = vector.shape_cast %462 : vector<1x16x16xf32> to vector<16x16xf32>
    %c6_352 = arith.constant 6 : index
    %c3_353 = arith.constant 3 : index
    %464 = memref.load %arg5[%c6_352, %c3_353] : memref<9x8xf32, #tpu.memory_space<smem>>
    %465 = vector.broadcast %464 : f32 to vector<16x16xf32>
    %466 = arith.mulf %463, %465 : vector<16x16xf32>
    %467 = arith.addf %461, %466 : vector<16x16xf32>
    %c3_354 = arith.constant 3 : index
    %c2_355 = arith.constant 2 : index
    %c1_356 = arith.constant 1 : index
    %468 = vector.load %arg12[%c3_354, %c2_355, %c1_356] : memref<8x18x18xf32, #tpu.memory_space<vmem>>, vector<1x16x16xf32>
    %469 = vector.shape_cast %468 : vector<1x16x16xf32> to vector<16x16xf32>
    %c7_357 = arith.constant 7 : index
    %c3_358 = arith.constant 3 : index
    %470 = memref.load %arg5[%c7_357, %c3_358] : memref<9x8xf32, #tpu.memory_space<smem>>
    %471 = vector.broadcast %470 : f32 to vector<16x16xf32>
    %472 = arith.mulf %469, %471 : vector<16x16xf32>
    %473 = arith.addf %467, %472 : vector<16x16xf32>
    %c3_359 = arith.constant 3 : index
    %c2_360 = arith.constant 2 : index
    %c2_361 = arith.constant 2 : index
    %474 = vector.load %arg12[%c3_359, %c2_360, %c2_361] : memref<8x18x18xf32, #tpu.memory_space<vmem>>, vector<1x16x16xf32>
    %475 = vector.shape_cast %474 : vector<1x16x16xf32> to vector<16x16xf32>
    %c8_362 = arith.constant 8 : index
    %c3_363 = arith.constant 3 : index
    %476 = memref.load %arg5[%c8_362, %c3_363] : memref<9x8xf32, #tpu.memory_space<smem>>
    %477 = vector.broadcast %476 : f32 to vector<16x16xf32>
    %478 = arith.mulf %475, %477 : vector<16x16xf32>
    %479 = arith.addf %473, %478 : vector<16x16xf32>
    %c3_364 = arith.constant 3 : index
    %480 = memref.load %arg6[%c3_364] : memref<8xf32, #tpu.memory_space<smem>>
    %481 = vector.broadcast %480 : f32 to vector<16x16xf32>
    %482 = arith.addf %479, %481 : vector<16x16xf32>
    %c4_365 = arith.constant 4 : index
    %c0_366 = arith.constant 0 : index
    %c0_367 = arith.constant 0 : index
    %483 = vector.load %arg12[%c4_365, %c0_366, %c0_367] : memref<8x18x18xf32, #tpu.memory_space<vmem>>, vector<1x16x16xf32>
    %484 = vector.shape_cast %483 : vector<1x16x16xf32> to vector<16x16xf32>
    %c0_368 = arith.constant 0 : index
    %c4_369 = arith.constant 4 : index
    %485 = memref.load %arg5[%c0_368, %c4_369] : memref<9x8xf32, #tpu.memory_space<smem>>
    %486 = vector.broadcast %485 : f32 to vector<16x16xf32>
    %487 = arith.mulf %484, %486 : vector<16x16xf32>
    %c4_370 = arith.constant 4 : index
    %c0_371 = arith.constant 0 : index
    %c1_372 = arith.constant 1 : index
    %488 = vector.load %arg12[%c4_370, %c0_371, %c1_372] : memref<8x18x18xf32, #tpu.memory_space<vmem>>, vector<1x16x16xf32>
    %489 = vector.shape_cast %488 : vector<1x16x16xf32> to vector<16x16xf32>
    %c1_373 = arith.constant 1 : index
    %c4_374 = arith.constant 4 : index
    %490 = memref.load %arg5[%c1_373, %c4_374] : memref<9x8xf32, #tpu.memory_space<smem>>
    %491 = vector.broadcast %490 : f32 to vector<16x16xf32>
    %492 = arith.mulf %489, %491 : vector<16x16xf32>
    %493 = arith.addf %487, %492 : vector<16x16xf32>
    %c4_375 = arith.constant 4 : index
    %c0_376 = arith.constant 0 : index
    %c2_377 = arith.constant 2 : index
    %494 = vector.load %arg12[%c4_375, %c0_376, %c2_377] : memref<8x18x18xf32, #tpu.memory_space<vmem>>, vector<1x16x16xf32>
    %495 = vector.shape_cast %494 : vector<1x16x16xf32> to vector<16x16xf32>
    %c2_378 = arith.constant 2 : index
    %c4_379 = arith.constant 4 : index
    %496 = memref.load %arg5[%c2_378, %c4_379] : memref<9x8xf32, #tpu.memory_space<smem>>
    %497 = vector.broadcast %496 : f32 to vector<16x16xf32>
    %498 = arith.mulf %495, %497 : vector<16x16xf32>
    %499 = arith.addf %493, %498 : vector<16x16xf32>
    %c4_380 = arith.constant 4 : index
    %c1_381 = arith.constant 1 : index
    %c0_382 = arith.constant 0 : index
    %500 = vector.load %arg12[%c4_380, %c1_381, %c0_382] : memref<8x18x18xf32, #tpu.memory_space<vmem>>, vector<1x16x16xf32>
    %501 = vector.shape_cast %500 : vector<1x16x16xf32> to vector<16x16xf32>
    %c3_383 = arith.constant 3 : index
    %c4_384 = arith.constant 4 : index
    %502 = memref.load %arg5[%c3_383, %c4_384] : memref<9x8xf32, #tpu.memory_space<smem>>
    %503 = vector.broadcast %502 : f32 to vector<16x16xf32>
    %504 = arith.mulf %501, %503 : vector<16x16xf32>
    %505 = arith.addf %499, %504 : vector<16x16xf32>
    %c4_385 = arith.constant 4 : index
    %c1_386 = arith.constant 1 : index
    %c1_387 = arith.constant 1 : index
    %506 = vector.load %arg12[%c4_385, %c1_386, %c1_387] : memref<8x18x18xf32, #tpu.memory_space<vmem>>, vector<1x16x16xf32>
    %507 = vector.shape_cast %506 : vector<1x16x16xf32> to vector<16x16xf32>
    %c4_388 = arith.constant 4 : index
    %c4_389 = arith.constant 4 : index
    %508 = memref.load %arg5[%c4_388, %c4_389] : memref<9x8xf32, #tpu.memory_space<smem>>
    %509 = vector.broadcast %508 : f32 to vector<16x16xf32>
    %510 = arith.mulf %507, %509 : vector<16x16xf32>
    %511 = arith.addf %505, %510 : vector<16x16xf32>
    %c4_390 = arith.constant 4 : index
    %c1_391 = arith.constant 1 : index
    %c2_392 = arith.constant 2 : index
    %512 = vector.load %arg12[%c4_390, %c1_391, %c2_392] : memref<8x18x18xf32, #tpu.memory_space<vmem>>, vector<1x16x16xf32>
    %513 = vector.shape_cast %512 : vector<1x16x16xf32> to vector<16x16xf32>
    %c5_393 = arith.constant 5 : index
    %c4_394 = arith.constant 4 : index
    %514 = memref.load %arg5[%c5_393, %c4_394] : memref<9x8xf32, #tpu.memory_space<smem>>
    %515 = vector.broadcast %514 : f32 to vector<16x16xf32>
    %516 = arith.mulf %513, %515 : vector<16x16xf32>
    %517 = arith.addf %511, %516 : vector<16x16xf32>
    %c4_395 = arith.constant 4 : index
    %c2_396 = arith.constant 2 : index
    %c0_397 = arith.constant 0 : index
    %518 = vector.load %arg12[%c4_395, %c2_396, %c0_397] : memref<8x18x18xf32, #tpu.memory_space<vmem>>, vector<1x16x16xf32>
    %519 = vector.shape_cast %518 : vector<1x16x16xf32> to vector<16x16xf32>
    %c6_398 = arith.constant 6 : index
    %c4_399 = arith.constant 4 : index
    %520 = memref.load %arg5[%c6_398, %c4_399] : memref<9x8xf32, #tpu.memory_space<smem>>
    %521 = vector.broadcast %520 : f32 to vector<16x16xf32>
    %522 = arith.mulf %519, %521 : vector<16x16xf32>
    %523 = arith.addf %517, %522 : vector<16x16xf32>
    %c4_400 = arith.constant 4 : index
    %c2_401 = arith.constant 2 : index
    %c1_402 = arith.constant 1 : index
    %524 = vector.load %arg12[%c4_400, %c2_401, %c1_402] : memref<8x18x18xf32, #tpu.memory_space<vmem>>, vector<1x16x16xf32>
    %525 = vector.shape_cast %524 : vector<1x16x16xf32> to vector<16x16xf32>
    %c7_403 = arith.constant 7 : index
    %c4_404 = arith.constant 4 : index
    %526 = memref.load %arg5[%c7_403, %c4_404] : memref<9x8xf32, #tpu.memory_space<smem>>
    %527 = vector.broadcast %526 : f32 to vector<16x16xf32>
    %528 = arith.mulf %525, %527 : vector<16x16xf32>
    %529 = arith.addf %523, %528 : vector<16x16xf32>
    %c4_405 = arith.constant 4 : index
    %c2_406 = arith.constant 2 : index
    %c2_407 = arith.constant 2 : index
    %530 = vector.load %arg12[%c4_405, %c2_406, %c2_407] : memref<8x18x18xf32, #tpu.memory_space<vmem>>, vector<1x16x16xf32>
    %531 = vector.shape_cast %530 : vector<1x16x16xf32> to vector<16x16xf32>
    %c8_408 = arith.constant 8 : index
    %c4_409 = arith.constant 4 : index
    %532 = memref.load %arg5[%c8_408, %c4_409] : memref<9x8xf32, #tpu.memory_space<smem>>
    %533 = vector.broadcast %532 : f32 to vector<16x16xf32>
    %534 = arith.mulf %531, %533 : vector<16x16xf32>
    %535 = arith.addf %529, %534 : vector<16x16xf32>
    %c4_410 = arith.constant 4 : index
    %536 = memref.load %arg6[%c4_410] : memref<8xf32, #tpu.memory_space<smem>>
    %537 = vector.broadcast %536 : f32 to vector<16x16xf32>
    %538 = arith.addf %535, %537 : vector<16x16xf32>
    %c5_411 = arith.constant 5 : index
    %c0_412 = arith.constant 0 : index
    %c0_413 = arith.constant 0 : index
    %539 = vector.load %arg12[%c5_411, %c0_412, %c0_413] : memref<8x18x18xf32, #tpu.memory_space<vmem>>, vector<1x16x16xf32>
    %540 = vector.shape_cast %539 : vector<1x16x16xf32> to vector<16x16xf32>
    %c0_414 = arith.constant 0 : index
    %c5_415 = arith.constant 5 : index
    %541 = memref.load %arg5[%c0_414, %c5_415] : memref<9x8xf32, #tpu.memory_space<smem>>
    %542 = vector.broadcast %541 : f32 to vector<16x16xf32>
    %543 = arith.mulf %540, %542 : vector<16x16xf32>
    %c5_416 = arith.constant 5 : index
    %c0_417 = arith.constant 0 : index
    %c1_418 = arith.constant 1 : index
    %544 = vector.load %arg12[%c5_416, %c0_417, %c1_418] : memref<8x18x18xf32, #tpu.memory_space<vmem>>, vector<1x16x16xf32>
    %545 = vector.shape_cast %544 : vector<1x16x16xf32> to vector<16x16xf32>
    %c1_419 = arith.constant 1 : index
    %c5_420 = arith.constant 5 : index
    %546 = memref.load %arg5[%c1_419, %c5_420] : memref<9x8xf32, #tpu.memory_space<smem>>
    %547 = vector.broadcast %546 : f32 to vector<16x16xf32>
    %548 = arith.mulf %545, %547 : vector<16x16xf32>
    %549 = arith.addf %543, %548 : vector<16x16xf32>
    %c5_421 = arith.constant 5 : index
    %c0_422 = arith.constant 0 : index
    %c2_423 = arith.constant 2 : index
    %550 = vector.load %arg12[%c5_421, %c0_422, %c2_423] : memref<8x18x18xf32, #tpu.memory_space<vmem>>, vector<1x16x16xf32>
    %551 = vector.shape_cast %550 : vector<1x16x16xf32> to vector<16x16xf32>
    %c2_424 = arith.constant 2 : index
    %c5_425 = arith.constant 5 : index
    %552 = memref.load %arg5[%c2_424, %c5_425] : memref<9x8xf32, #tpu.memory_space<smem>>
    %553 = vector.broadcast %552 : f32 to vector<16x16xf32>
    %554 = arith.mulf %551, %553 : vector<16x16xf32>
    %555 = arith.addf %549, %554 : vector<16x16xf32>
    %c5_426 = arith.constant 5 : index
    %c1_427 = arith.constant 1 : index
    %c0_428 = arith.constant 0 : index
    %556 = vector.load %arg12[%c5_426, %c1_427, %c0_428] : memref<8x18x18xf32, #tpu.memory_space<vmem>>, vector<1x16x16xf32>
    %557 = vector.shape_cast %556 : vector<1x16x16xf32> to vector<16x16xf32>
    %c3_429 = arith.constant 3 : index
    %c5_430 = arith.constant 5 : index
    %558 = memref.load %arg5[%c3_429, %c5_430] : memref<9x8xf32, #tpu.memory_space<smem>>
    %559 = vector.broadcast %558 : f32 to vector<16x16xf32>
    %560 = arith.mulf %557, %559 : vector<16x16xf32>
    %561 = arith.addf %555, %560 : vector<16x16xf32>
    %c5_431 = arith.constant 5 : index
    %c1_432 = arith.constant 1 : index
    %c1_433 = arith.constant 1 : index
    %562 = vector.load %arg12[%c5_431, %c1_432, %c1_433] : memref<8x18x18xf32, #tpu.memory_space<vmem>>, vector<1x16x16xf32>
    %563 = vector.shape_cast %562 : vector<1x16x16xf32> to vector<16x16xf32>
    %c4_434 = arith.constant 4 : index
    %c5_435 = arith.constant 5 : index
    %564 = memref.load %arg5[%c4_434, %c5_435] : memref<9x8xf32, #tpu.memory_space<smem>>
    %565 = vector.broadcast %564 : f32 to vector<16x16xf32>
    %566 = arith.mulf %563, %565 : vector<16x16xf32>
    %567 = arith.addf %561, %566 : vector<16x16xf32>
    %c5_436 = arith.constant 5 : index
    %c1_437 = arith.constant 1 : index
    %c2_438 = arith.constant 2 : index
    %568 = vector.load %arg12[%c5_436, %c1_437, %c2_438] : memref<8x18x18xf32, #tpu.memory_space<vmem>>, vector<1x16x16xf32>
    %569 = vector.shape_cast %568 : vector<1x16x16xf32> to vector<16x16xf32>
    %c5_439 = arith.constant 5 : index
    %c5_440 = arith.constant 5 : index
    %570 = memref.load %arg5[%c5_439, %c5_440] : memref<9x8xf32, #tpu.memory_space<smem>>
    %571 = vector.broadcast %570 : f32 to vector<16x16xf32>
    %572 = arith.mulf %569, %571 : vector<16x16xf32>
    %573 = arith.addf %567, %572 : vector<16x16xf32>
    %c5_441 = arith.constant 5 : index
    %c2_442 = arith.constant 2 : index
    %c0_443 = arith.constant 0 : index
    %574 = vector.load %arg12[%c5_441, %c2_442, %c0_443] : memref<8x18x18xf32, #tpu.memory_space<vmem>>, vector<1x16x16xf32>
    %575 = vector.shape_cast %574 : vector<1x16x16xf32> to vector<16x16xf32>
    %c6_444 = arith.constant 6 : index
    %c5_445 = arith.constant 5 : index
    %576 = memref.load %arg5[%c6_444, %c5_445] : memref<9x8xf32, #tpu.memory_space<smem>>
    %577 = vector.broadcast %576 : f32 to vector<16x16xf32>
    %578 = arith.mulf %575, %577 : vector<16x16xf32>
    %579 = arith.addf %573, %578 : vector<16x16xf32>
    %c5_446 = arith.constant 5 : index
    %c2_447 = arith.constant 2 : index
    %c1_448 = arith.constant 1 : index
    %580 = vector.load %arg12[%c5_446, %c2_447, %c1_448] : memref<8x18x18xf32, #tpu.memory_space<vmem>>, vector<1x16x16xf32>
    %581 = vector.shape_cast %580 : vector<1x16x16xf32> to vector<16x16xf32>
    %c7_449 = arith.constant 7 : index
    %c5_450 = arith.constant 5 : index
    %582 = memref.load %arg5[%c7_449, %c5_450] : memref<9x8xf32, #tpu.memory_space<smem>>
    %583 = vector.broadcast %582 : f32 to vector<16x16xf32>
    %584 = arith.mulf %581, %583 : vector<16x16xf32>
    %585 = arith.addf %579, %584 : vector<16x16xf32>
    %c5_451 = arith.constant 5 : index
    %c2_452 = arith.constant 2 : index
    %c2_453 = arith.constant 2 : index
    %586 = vector.load %arg12[%c5_451, %c2_452, %c2_453] : memref<8x18x18xf32, #tpu.memory_space<vmem>>, vector<1x16x16xf32>
    %587 = vector.shape_cast %586 : vector<1x16x16xf32> to vector<16x16xf32>
    %c8_454 = arith.constant 8 : index
    %c5_455 = arith.constant 5 : index
    %588 = memref.load %arg5[%c8_454, %c5_455] : memref<9x8xf32, #tpu.memory_space<smem>>
    %589 = vector.broadcast %588 : f32 to vector<16x16xf32>
    %590 = arith.mulf %587, %589 : vector<16x16xf32>
    %591 = arith.addf %585, %590 : vector<16x16xf32>
    %c5_456 = arith.constant 5 : index
    %592 = memref.load %arg6[%c5_456] : memref<8xf32, #tpu.memory_space<smem>>
    %593 = vector.broadcast %592 : f32 to vector<16x16xf32>
    %594 = arith.addf %591, %593 : vector<16x16xf32>
    %c6_457 = arith.constant 6 : index
    %c0_458 = arith.constant 0 : index
    %c0_459 = arith.constant 0 : index
    %595 = vector.load %arg12[%c6_457, %c0_458, %c0_459] : memref<8x18x18xf32, #tpu.memory_space<vmem>>, vector<1x16x16xf32>
    %596 = vector.shape_cast %595 : vector<1x16x16xf32> to vector<16x16xf32>
    %c0_460 = arith.constant 0 : index
    %c6_461 = arith.constant 6 : index
    %597 = memref.load %arg5[%c0_460, %c6_461] : memref<9x8xf32, #tpu.memory_space<smem>>
    %598 = vector.broadcast %597 : f32 to vector<16x16xf32>
    %599 = arith.mulf %596, %598 : vector<16x16xf32>
    %c6_462 = arith.constant 6 : index
    %c0_463 = arith.constant 0 : index
    %c1_464 = arith.constant 1 : index
    %600 = vector.load %arg12[%c6_462, %c0_463, %c1_464] : memref<8x18x18xf32, #tpu.memory_space<vmem>>, vector<1x16x16xf32>
    %601 = vector.shape_cast %600 : vector<1x16x16xf32> to vector<16x16xf32>
    %c1_465 = arith.constant 1 : index
    %c6_466 = arith.constant 6 : index
    %602 = memref.load %arg5[%c1_465, %c6_466] : memref<9x8xf32, #tpu.memory_space<smem>>
    %603 = vector.broadcast %602 : f32 to vector<16x16xf32>
    %604 = arith.mulf %601, %603 : vector<16x16xf32>
    %605 = arith.addf %599, %604 : vector<16x16xf32>
    %c6_467 = arith.constant 6 : index
    %c0_468 = arith.constant 0 : index
    %c2_469 = arith.constant 2 : index
    %606 = vector.load %arg12[%c6_467, %c0_468, %c2_469] : memref<8x18x18xf32, #tpu.memory_space<vmem>>, vector<1x16x16xf32>
    %607 = vector.shape_cast %606 : vector<1x16x16xf32> to vector<16x16xf32>
    %c2_470 = arith.constant 2 : index
    %c6_471 = arith.constant 6 : index
    %608 = memref.load %arg5[%c2_470, %c6_471] : memref<9x8xf32, #tpu.memory_space<smem>>
    %609 = vector.broadcast %608 : f32 to vector<16x16xf32>
    %610 = arith.mulf %607, %609 : vector<16x16xf32>
    %611 = arith.addf %605, %610 : vector<16x16xf32>
    %c6_472 = arith.constant 6 : index
    %c1_473 = arith.constant 1 : index
    %c0_474 = arith.constant 0 : index
    %612 = vector.load %arg12[%c6_472, %c1_473, %c0_474] : memref<8x18x18xf32, #tpu.memory_space<vmem>>, vector<1x16x16xf32>
    %613 = vector.shape_cast %612 : vector<1x16x16xf32> to vector<16x16xf32>
    %c3_475 = arith.constant 3 : index
    %c6_476 = arith.constant 6 : index
    %614 = memref.load %arg5[%c3_475, %c6_476] : memref<9x8xf32, #tpu.memory_space<smem>>
    %615 = vector.broadcast %614 : f32 to vector<16x16xf32>
    %616 = arith.mulf %613, %615 : vector<16x16xf32>
    %617 = arith.addf %611, %616 : vector<16x16xf32>
    %c6_477 = arith.constant 6 : index
    %c1_478 = arith.constant 1 : index
    %c1_479 = arith.constant 1 : index
    %618 = vector.load %arg12[%c6_477, %c1_478, %c1_479] : memref<8x18x18xf32, #tpu.memory_space<vmem>>, vector<1x16x16xf32>
    %619 = vector.shape_cast %618 : vector<1x16x16xf32> to vector<16x16xf32>
    %c4_480 = arith.constant 4 : index
    %c6_481 = arith.constant 6 : index
    %620 = memref.load %arg5[%c4_480, %c6_481] : memref<9x8xf32, #tpu.memory_space<smem>>
    %621 = vector.broadcast %620 : f32 to vector<16x16xf32>
    %622 = arith.mulf %619, %621 : vector<16x16xf32>
    %623 = arith.addf %617, %622 : vector<16x16xf32>
    %c6_482 = arith.constant 6 : index
    %c1_483 = arith.constant 1 : index
    %c2_484 = arith.constant 2 : index
    %624 = vector.load %arg12[%c6_482, %c1_483, %c2_484] : memref<8x18x18xf32, #tpu.memory_space<vmem>>, vector<1x16x16xf32>
    %625 = vector.shape_cast %624 : vector<1x16x16xf32> to vector<16x16xf32>
    %c5_485 = arith.constant 5 : index
    %c6_486 = arith.constant 6 : index
    %626 = memref.load %arg5[%c5_485, %c6_486] : memref<9x8xf32, #tpu.memory_space<smem>>
    %627 = vector.broadcast %626 : f32 to vector<16x16xf32>
    %628 = arith.mulf %625, %627 : vector<16x16xf32>
    %629 = arith.addf %623, %628 : vector<16x16xf32>
    %c6_487 = arith.constant 6 : index
    %c2_488 = arith.constant 2 : index
    %c0_489 = arith.constant 0 : index
    %630 = vector.load %arg12[%c6_487, %c2_488, %c0_489] : memref<8x18x18xf32, #tpu.memory_space<vmem>>, vector<1x16x16xf32>
    %631 = vector.shape_cast %630 : vector<1x16x16xf32> to vector<16x16xf32>
    %c6_490 = arith.constant 6 : index
    %c6_491 = arith.constant 6 : index
    %632 = memref.load %arg5[%c6_490, %c6_491] : memref<9x8xf32, #tpu.memory_space<smem>>
    %633 = vector.broadcast %632 : f32 to vector<16x16xf32>
    %634 = arith.mulf %631, %633 : vector<16x16xf32>
    %635 = arith.addf %629, %634 : vector<16x16xf32>
    %c6_492 = arith.constant 6 : index
    %c2_493 = arith.constant 2 : index
    %c1_494 = arith.constant 1 : index
    %636 = vector.load %arg12[%c6_492, %c2_493, %c1_494] : memref<8x18x18xf32, #tpu.memory_space<vmem>>, vector<1x16x16xf32>
    %637 = vector.shape_cast %636 : vector<1x16x16xf32> to vector<16x16xf32>
    %c7_495 = arith.constant 7 : index
    %c6_496 = arith.constant 6 : index
    %638 = memref.load %arg5[%c7_495, %c6_496] : memref<9x8xf32, #tpu.memory_space<smem>>
    %639 = vector.broadcast %638 : f32 to vector<16x16xf32>
    %640 = arith.mulf %637, %639 : vector<16x16xf32>
    %641 = arith.addf %635, %640 : vector<16x16xf32>
    %c6_497 = arith.constant 6 : index
    %c2_498 = arith.constant 2 : index
    %c2_499 = arith.constant 2 : index
    %642 = vector.load %arg12[%c6_497, %c2_498, %c2_499] : memref<8x18x18xf32, #tpu.memory_space<vmem>>, vector<1x16x16xf32>
    %643 = vector.shape_cast %642 : vector<1x16x16xf32> to vector<16x16xf32>
    %c8_500 = arith.constant 8 : index
    %c6_501 = arith.constant 6 : index
    %644 = memref.load %arg5[%c8_500, %c6_501] : memref<9x8xf32, #tpu.memory_space<smem>>
    %645 = vector.broadcast %644 : f32 to vector<16x16xf32>
    %646 = arith.mulf %643, %645 : vector<16x16xf32>
    %647 = arith.addf %641, %646 : vector<16x16xf32>
    %c6_502 = arith.constant 6 : index
    %648 = memref.load %arg6[%c6_502] : memref<8xf32, #tpu.memory_space<smem>>
    %649 = vector.broadcast %648 : f32 to vector<16x16xf32>
    %650 = arith.addf %647, %649 : vector<16x16xf32>
    %c7_503 = arith.constant 7 : index
    %c0_504 = arith.constant 0 : index
    %c0_505 = arith.constant 0 : index
    %651 = vector.load %arg12[%c7_503, %c0_504, %c0_505] : memref<8x18x18xf32, #tpu.memory_space<vmem>>, vector<1x16x16xf32>
    %652 = vector.shape_cast %651 : vector<1x16x16xf32> to vector<16x16xf32>
    %c0_506 = arith.constant 0 : index
    %c7_507 = arith.constant 7 : index
    %653 = memref.load %arg5[%c0_506, %c7_507] : memref<9x8xf32, #tpu.memory_space<smem>>
    %654 = vector.broadcast %653 : f32 to vector<16x16xf32>
    %655 = arith.mulf %652, %654 : vector<16x16xf32>
    %c7_508 = arith.constant 7 : index
    %c0_509 = arith.constant 0 : index
    %c1_510 = arith.constant 1 : index
    %656 = vector.load %arg12[%c7_508, %c0_509, %c1_510] : memref<8x18x18xf32, #tpu.memory_space<vmem>>, vector<1x16x16xf32>
    %657 = vector.shape_cast %656 : vector<1x16x16xf32> to vector<16x16xf32>
    %c1_511 = arith.constant 1 : index
    %c7_512 = arith.constant 7 : index
    %658 = memref.load %arg5[%c1_511, %c7_512] : memref<9x8xf32, #tpu.memory_space<smem>>
    %659 = vector.broadcast %658 : f32 to vector<16x16xf32>
    %660 = arith.mulf %657, %659 : vector<16x16xf32>
    %661 = arith.addf %655, %660 : vector<16x16xf32>
    %c7_513 = arith.constant 7 : index
    %c0_514 = arith.constant 0 : index
    %c2_515 = arith.constant 2 : index
    %662 = vector.load %arg12[%c7_513, %c0_514, %c2_515] : memref<8x18x18xf32, #tpu.memory_space<vmem>>, vector<1x16x16xf32>
    %663 = vector.shape_cast %662 : vector<1x16x16xf32> to vector<16x16xf32>
    %c2_516 = arith.constant 2 : index
    %c7_517 = arith.constant 7 : index
    %664 = memref.load %arg5[%c2_516, %c7_517] : memref<9x8xf32, #tpu.memory_space<smem>>
    %665 = vector.broadcast %664 : f32 to vector<16x16xf32>
    %666 = arith.mulf %663, %665 : vector<16x16xf32>
    %667 = arith.addf %661, %666 : vector<16x16xf32>
    %c7_518 = arith.constant 7 : index
    %c1_519 = arith.constant 1 : index
    %c0_520 = arith.constant 0 : index
    %668 = vector.load %arg12[%c7_518, %c1_519, %c0_520] : memref<8x18x18xf32, #tpu.memory_space<vmem>>, vector<1x16x16xf32>
    %669 = vector.shape_cast %668 : vector<1x16x16xf32> to vector<16x16xf32>
    %c3_521 = arith.constant 3 : index
    %c7_522 = arith.constant 7 : index
    %670 = memref.load %arg5[%c3_521, %c7_522] : memref<9x8xf32, #tpu.memory_space<smem>>
    %671 = vector.broadcast %670 : f32 to vector<16x16xf32>
    %672 = arith.mulf %669, %671 : vector<16x16xf32>
    %673 = arith.addf %667, %672 : vector<16x16xf32>
    %c7_523 = arith.constant 7 : index
    %c1_524 = arith.constant 1 : index
    %c1_525 = arith.constant 1 : index
    %674 = vector.load %arg12[%c7_523, %c1_524, %c1_525] : memref<8x18x18xf32, #tpu.memory_space<vmem>>, vector<1x16x16xf32>
    %675 = vector.shape_cast %674 : vector<1x16x16xf32> to vector<16x16xf32>
    %c4_526 = arith.constant 4 : index
    %c7_527 = arith.constant 7 : index
    %676 = memref.load %arg5[%c4_526, %c7_527] : memref<9x8xf32, #tpu.memory_space<smem>>
    %677 = vector.broadcast %676 : f32 to vector<16x16xf32>
    %678 = arith.mulf %675, %677 : vector<16x16xf32>
    %679 = arith.addf %673, %678 : vector<16x16xf32>
    %c7_528 = arith.constant 7 : index
    %c1_529 = arith.constant 1 : index
    %c2_530 = arith.constant 2 : index
    %680 = vector.load %arg12[%c7_528, %c1_529, %c2_530] : memref<8x18x18xf32, #tpu.memory_space<vmem>>, vector<1x16x16xf32>
    %681 = vector.shape_cast %680 : vector<1x16x16xf32> to vector<16x16xf32>
    %c5_531 = arith.constant 5 : index
    %c7_532 = arith.constant 7 : index
    %682 = memref.load %arg5[%c5_531, %c7_532] : memref<9x8xf32, #tpu.memory_space<smem>>
    %683 = vector.broadcast %682 : f32 to vector<16x16xf32>
    %684 = arith.mulf %681, %683 : vector<16x16xf32>
    %685 = arith.addf %679, %684 : vector<16x16xf32>
    %c7_533 = arith.constant 7 : index
    %c2_534 = arith.constant 2 : index
    %c0_535 = arith.constant 0 : index
    %686 = vector.load %arg12[%c7_533, %c2_534, %c0_535] : memref<8x18x18xf32, #tpu.memory_space<vmem>>, vector<1x16x16xf32>
    %687 = vector.shape_cast %686 : vector<1x16x16xf32> to vector<16x16xf32>
    %c6_536 = arith.constant 6 : index
    %c7_537 = arith.constant 7 : index
    %688 = memref.load %arg5[%c6_536, %c7_537] : memref<9x8xf32, #tpu.memory_space<smem>>
    %689 = vector.broadcast %688 : f32 to vector<16x16xf32>
    %690 = arith.mulf %687, %689 : vector<16x16xf32>
    %691 = arith.addf %685, %690 : vector<16x16xf32>
    %c7_538 = arith.constant 7 : index
    %c2_539 = arith.constant 2 : index
    %c1_540 = arith.constant 1 : index
    %692 = vector.load %arg12[%c7_538, %c2_539, %c1_540] : memref<8x18x18xf32, #tpu.memory_space<vmem>>, vector<1x16x16xf32>
    %693 = vector.shape_cast %692 : vector<1x16x16xf32> to vector<16x16xf32>
    %c7_541 = arith.constant 7 : index
    %c7_542 = arith.constant 7 : index
    %694 = memref.load %arg5[%c7_541, %c7_542] : memref<9x8xf32, #tpu.memory_space<smem>>
    %695 = vector.broadcast %694 : f32 to vector<16x16xf32>
    %696 = arith.mulf %693, %695 : vector<16x16xf32>
    %697 = arith.addf %691, %696 : vector<16x16xf32>
    %c7_543 = arith.constant 7 : index
    %c2_544 = arith.constant 2 : index
    %c2_545 = arith.constant 2 : index
    %698 = vector.load %arg12[%c7_543, %c2_544, %c2_545] : memref<8x18x18xf32, #tpu.memory_space<vmem>>, vector<1x16x16xf32>
    %699 = vector.shape_cast %698 : vector<1x16x16xf32> to vector<16x16xf32>
    %c8_546 = arith.constant 8 : index
    %c7_547 = arith.constant 7 : index
    %700 = memref.load %arg5[%c8_546, %c7_547] : memref<9x8xf32, #tpu.memory_space<smem>>
    %701 = vector.broadcast %700 : f32 to vector<16x16xf32>
    %702 = arith.mulf %699, %701 : vector<16x16xf32>
    %703 = arith.addf %697, %702 : vector<16x16xf32>
    %c7_548 = arith.constant 7 : index
    %704 = memref.load %arg6[%c7_548] : memref<8xf32, #tpu.memory_space<smem>>
    %705 = vector.broadcast %704 : f32 to vector<16x16xf32>
    %706 = arith.addf %703, %705 : vector<16x16xf32>
    %707 = arith.negf %538 : vector<16x16xf32>
    %708 = math.exp %707 : vector<16x16xf32>
    %cst_549 = arith.constant 1.000000e+00 : f32
    %709 = vector.broadcast %cst_549 : f32 to vector<16x16xf32>
    %710 = arith.addf %709, %708 : vector<16x16xf32>
    %711 = arith.divf %709, %710 : vector<16x16xf32>
    %712 = arith.mulf %314, %711 : vector<16x16xf32>
    %713 = arith.negf %594 : vector<16x16xf32>
    %714 = math.exp %713 : vector<16x16xf32>
    %cst_550 = arith.constant 1.000000e+00 : f32
    %715 = vector.broadcast %cst_550 : f32 to vector<16x16xf32>
    %716 = arith.addf %715, %714 : vector<16x16xf32>
    %717 = arith.divf %715, %716 : vector<16x16xf32>
    %718 = arith.mulf %370, %717 : vector<16x16xf32>
    %719 = arith.negf %650 : vector<16x16xf32>
    %720 = math.exp %719 : vector<16x16xf32>
    %cst_551 = arith.constant 1.000000e+00 : f32
    %721 = vector.broadcast %cst_551 : f32 to vector<16x16xf32>
    %722 = arith.addf %721, %720 : vector<16x16xf32>
    %723 = arith.divf %721, %722 : vector<16x16xf32>
    %724 = arith.mulf %426, %723 : vector<16x16xf32>
    %725 = arith.negf %706 : vector<16x16xf32>
    %726 = math.exp %725 : vector<16x16xf32>
    %cst_552 = arith.constant 1.000000e+00 : f32
    %727 = vector.broadcast %cst_552 : f32 to vector<16x16xf32>
    %728 = arith.addf %727, %726 : vector<16x16xf32>
    %729 = arith.divf %727, %728 : vector<16x16xf32>
    %730 = arith.mulf %482, %729 : vector<16x16xf32>
    %c0_553 = arith.constant 0 : index
    %c0_554 = arith.constant 0 : index
    %731 = memref.load %arg7[%c0_553, %c0_554] : memref<4x4xf32, #tpu.memory_space<smem>>
    %732 = vector.broadcast %731 : f32 to vector<16x16xf32>
    %733 = arith.mulf %712, %732 : vector<16x16xf32>
    %c1_555 = arith.constant 1 : index
    %c0_556 = arith.constant 0 : index
    %734 = memref.load %arg7[%c1_555, %c0_556] : memref<4x4xf32, #tpu.memory_space<smem>>
    %735 = vector.broadcast %734 : f32 to vector<16x16xf32>
    %736 = arith.mulf %718, %735 : vector<16x16xf32>
    %737 = arith.addf %733, %736 : vector<16x16xf32>
    %c2_557 = arith.constant 2 : index
    %c0_558 = arith.constant 0 : index
    %738 = memref.load %arg7[%c2_557, %c0_558] : memref<4x4xf32, #tpu.memory_space<smem>>
    %739 = vector.broadcast %738 : f32 to vector<16x16xf32>
    %740 = arith.mulf %724, %739 : vector<16x16xf32>
    %741 = arith.addf %737, %740 : vector<16x16xf32>
    %c3_559 = arith.constant 3 : index
    %c0_560 = arith.constant 0 : index
    %742 = memref.load %arg7[%c3_559, %c0_560] : memref<4x4xf32, #tpu.memory_space<smem>>
    %743 = vector.broadcast %742 : f32 to vector<16x16xf32>
    %744 = arith.mulf %730, %743 : vector<16x16xf32>
    %745 = arith.addf %741, %744 : vector<16x16xf32>
    %c0_561 = arith.constant 0 : index
    %746 = memref.load %arg8[%c0_561] : memref<4xf32, #tpu.memory_space<smem>>
    %747 = vector.broadcast %746 : f32 to vector<16x16xf32>
    %748 = arith.addf %745, %747 : vector<16x16xf32>
    %749 = vector.extract_strided_slice %1 {offsets = [0, 0, 0], sizes = [1, 16, 16], strides = [1, 1, 1]} : vector<4x16x16xf32> to vector<1x16x16xf32>
    %750 = vector.shape_cast %749 : vector<1x16x16xf32> to vector<16x16xf32>
    %751 = arith.addf %750, %748 : vector<16x16xf32>
    %c0_562 = arith.constant 0 : index
    %c0_563 = arith.constant 0 : index
    %c0_564 = arith.constant 0 : index
    %c0_565 = arith.constant 0 : index
    %752 = vector.load %arg9[%c0_562, %c0_563, %c0_564, %c0_565] : memref<1x4x16x16xf32, #tpu.memory_space<vmem>>, vector<1x1x16x16xf32>
    %753 = vector.shape_cast %752 : vector<1x1x16x16xf32> to vector<16x16xf32>
    %754 = vector.shape_cast %751 : vector<16x16xf32> to vector<1x1x16x16xf32>
    tpu.vector_store %arg9[%c0_562, %c0_563, %c0_564, %c0_565], %754 {strides = array<i32>} : memref<1x4x16x16xf32, #tpu.memory_space<vmem>>, vector<1x1x16x16xf32>,
    %c0_566 = arith.constant 0 : index
    %c1_567 = arith.constant 1 : index
    %755 = memref.load %arg7[%c0_566, %c1_567] : memref<4x4xf32, #tpu.memory_space<smem>>
    %756 = vector.broadcast %755 : f32 to vector<16x16xf32>
    %757 = arith.mulf %712, %756 : vector<16x16xf32>
    %c1_568 = arith.constant 1 : index
    %c1_569 = arith.constant 1 : index
    %758 = memref.load %arg7[%c1_568, %c1_569] : memref<4x4xf32, #tpu.memory_space<smem>>
    %759 = vector.broadcast %758 : f32 to vector<16x16xf32>
    %760 = arith.mulf %718, %759 : vector<16x16xf32>
    %761 = arith.addf %757, %760 : vector<16x16xf32>
    %c2_570 = arith.constant 2 : index
    %c1_571 = arith.constant 1 : index
    %762 = memref.load %arg7[%c2_570, %c1_571] : memref<4x4xf32, #tpu.memory_space<smem>>
    %763 = vector.broadcast %762 : f32 to vector<16x16xf32>
    %764 = arith.mulf %724, %763 : vector<16x16xf32>
    %765 = arith.addf %761, %764 : vector<16x16xf32>
    %c3_572 = arith.constant 3 : index
    %c1_573 = arith.constant 1 : index
    %766 = memref.load %arg7[%c3_572, %c1_573] : memref<4x4xf32, #tpu.memory_space<smem>>
    %767 = vector.broadcast %766 : f32 to vector<16x16xf32>
    %768 = arith.mulf %730, %767 : vector<16x16xf32>
    %769 = arith.addf %765, %768 : vector<16x16xf32>
    %c1_574 = arith.constant 1 : index
    %770 = memref.load %arg8[%c1_574] : memref<4xf32, #tpu.memory_space<smem>>
    %771 = vector.broadcast %770 : f32 to vector<16x16xf32>
    %772 = arith.addf %769, %771 : vector<16x16xf32>
    %773 = vector.extract_strided_slice %1 {offsets = [1, 0, 0], sizes = [1, 16, 16], strides = [1, 1, 1]} : vector<4x16x16xf32> to vector<1x16x16xf32>
    %774 = vector.shape_cast %773 : vector<1x16x16xf32> to vector<16x16xf32>
    %775 = arith.addf %774, %772 : vector<16x16xf32>
    %c0_575 = arith.constant 0 : index
    %c1_576 = arith.constant 1 : index
    %c0_577 = arith.constant 0 : index
    %c0_578 = arith.constant 0 : index
    %776 = vector.load %arg9[%c0_575, %c1_576, %c0_577, %c0_578] : memref<1x4x16x16xf32, #tpu.memory_space<vmem>>, vector<1x1x16x16xf32>
    %777 = vector.shape_cast %776 : vector<1x1x16x16xf32> to vector<16x16xf32>
    %778 = vector.shape_cast %775 : vector<16x16xf32> to vector<1x1x16x16xf32>
    tpu.vector_store %arg9[%c0_575, %c1_576, %c0_577, %c0_578], %778 {strides = array<i32>} : memref<1x4x16x16xf32, #tpu.memory_space<vmem>>, vector<1x1x16x16xf32>,
    %c0_579 = arith.constant 0 : index
    %c2_580 = arith.constant 2 : index
    %779 = memref.load %arg7[%c0_579, %c2_580] : memref<4x4xf32, #tpu.memory_space<smem>>
    %780 = vector.broadcast %779 : f32 to vector<16x16xf32>
    %781 = arith.mulf %712, %780 : vector<16x16xf32>
    %c1_581 = arith.constant 1 : index
    %c2_582 = arith.constant 2 : index
    %782 = memref.load %arg7[%c1_581, %c2_582] : memref<4x4xf32, #tpu.memory_space<smem>>
    %783 = vector.broadcast %782 : f32 to vector<16x16xf32>
    %784 = arith.mulf %718, %783 : vector<16x16xf32>
    %785 = arith.addf %781, %784 : vector<16x16xf32>
    %c2_583 = arith.constant 2 : index
    %c2_584 = arith.constant 2 : index
    %786 = memref.load %arg7[%c2_583, %c2_584] : memref<4x4xf32, #tpu.memory_space<smem>>
    %787 = vector.broadcast %786 : f32 to vector<16x16xf32>
    %788 = arith.mulf %724, %787 : vector<16x16xf32>
    %789 = arith.addf %785, %788 : vector<16x16xf32>
    %c3_585 = arith.constant 3 : index
    %c2_586 = arith.constant 2 : index
    %790 = memref.load %arg7[%c3_585, %c2_586] : memref<4x4xf32, #tpu.memory_space<smem>>
    %791 = vector.broadcast %790 : f32 to vector<16x16xf32>
    %792 = arith.mulf %730, %791 : vector<16x16xf32>
    %793 = arith.addf %789, %792 : vector<16x16xf32>
    %c2_587 = arith.constant 2 : index
    %794 = memref.load %arg8[%c2_587] : memref<4xf32, #tpu.memory_space<smem>>
    %795 = vector.broadcast %794 : f32 to vector<16x16xf32>
    %796 = arith.addf %793, %795 : vector<16x16xf32>
    %797 = vector.extract_strided_slice %1 {offsets = [2, 0, 0], sizes = [1, 16, 16], strides = [1, 1, 1]} : vector<4x16x16xf32> to vector<1x16x16xf32>
    %798 = vector.shape_cast %797 : vector<1x16x16xf32> to vector<16x16xf32>
    %799 = arith.addf %798, %796 : vector<16x16xf32>
    %c0_588 = arith.constant 0 : index
    %c2_589 = arith.constant 2 : index
    %c0_590 = arith.constant 0 : index
    %c0_591 = arith.constant 0 : index
    %800 = vector.load %arg9[%c0_588, %c2_589, %c0_590, %c0_591] : memref<1x4x16x16xf32, #tpu.memory_space<vmem>>, vector<1x1x16x16xf32>
    %801 = vector.shape_cast %800 : vector<1x1x16x16xf32> to vector<16x16xf32>
    %802 = vector.shape_cast %799 : vector<16x16xf32> to vector<1x1x16x16xf32>
    tpu.vector_store %arg9[%c0_588, %c2_589, %c0_590, %c0_591], %802 {strides = array<i32>} : memref<1x4x16x16xf32, #tpu.memory_space<vmem>>, vector<1x1x16x16xf32>,
    %c0_592 = arith.constant 0 : index
    %c3_593 = arith.constant 3 : index
    %803 = memref.load %arg7[%c0_592, %c3_593] : memref<4x4xf32, #tpu.memory_space<smem>>
    %804 = vector.broadcast %803 : f32 to vector<16x16xf32>
    %805 = arith.mulf %712, %804 : vector<16x16xf32>
    %c1_594 = arith.constant 1 : index
    %c3_595 = arith.constant 3 : index
    %806 = memref.load %arg7[%c1_594, %c3_595] : memref<4x4xf32, #tpu.memory_space<smem>>
    %807 = vector.broadcast %806 : f32 to vector<16x16xf32>
    %808 = arith.mulf %718, %807 : vector<16x16xf32>
    %809 = arith.addf %805, %808 : vector<16x16xf32>
    %c2_596 = arith.constant 2 : index
    %c3_597 = arith.constant 3 : index
    %810 = memref.load %arg7[%c2_596, %c3_597] : memref<4x4xf32, #tpu.memory_space<smem>>
    %811 = vector.broadcast %810 : f32 to vector<16x16xf32>
    %812 = arith.mulf %724, %811 : vector<16x16xf32>
    %813 = arith.addf %809, %812 : vector<16x16xf32>
    %c3_598 = arith.constant 3 : index
    %c3_599 = arith.constant 3 : index
    %814 = memref.load %arg7[%c3_598, %c3_599] : memref<4x4xf32, #tpu.memory_space<smem>>
    %815 = vector.broadcast %814 : f32 to vector<16x16xf32>
    %816 = arith.mulf %730, %815 : vector<16x16xf32>
    %817 = arith.addf %813, %816 : vector<16x16xf32>
    %c3_600 = arith.constant 3 : index
    %818 = memref.load %arg8[%c3_600] : memref<4xf32, #tpu.memory_space<smem>>
    %819 = vector.broadcast %818 : f32 to vector<16x16xf32>
    %820 = arith.addf %817, %819 : vector<16x16xf32>
    %821 = vector.extract_strided_slice %1 {offsets = [3, 0, 0], sizes = [1, 16, 16], strides = [1, 1, 1]} : vector<4x16x16xf32> to vector<1x16x16xf32>
    %822 = vector.shape_cast %821 : vector<1x16x16xf32> to vector<16x16xf32>
    %823 = arith.addf %822, %820 : vector<16x16xf32>
    %c0_601 = arith.constant 0 : index
    %c3_602 = arith.constant 3 : index
    %c0_603 = arith.constant 0 : index
    %c0_604 = arith.constant 0 : index
    %824 = vector.load %arg9[%c0_601, %c3_602, %c0_603, %c0_604] : memref<1x4x16x16xf32, #tpu.memory_space<vmem>>, vector<1x1x16x16xf32>
    %825 = vector.shape_cast %824 : vector<1x1x16x16xf32> to vector<16x16xf32>
    %826 = vector.shape_cast %823 : vector<16x16xf32> to vector<1x1x16x16xf32>
    tpu.vector_store %arg9[%c0_601, %c3_602, %c0_603, %c0_604], %826 {strides = array<i32>} : memref<1x4x16x16xf32, #tpu.memory_space<vmem>>, vector<1x1x16x16xf32>,
    return
  }
  func.func @transform_0(%arg0: i32) -> (i32, i32, i32, i32) {
    %c0_i32 = arith.constant 0 : i32
    %c0_i32_0 = arith.constant 0 : i32
    %c0_i32_1 = arith.constant 0 : i32
    %c0_i32_2 = arith.constant 0 : i32
    return %arg0, %c0_i32, %c0_i32_0, %c0_i32_1 : i32, i32, i32, i32
  }
  func.func @transform_1(%arg0: i32) -> (i32, i32) {
    %c0_i32 = arith.constant 0 : i32
    %c0_i32_0 = arith.constant 0 : i32
    %c0_i32_1 = arith.constant 0 : i32
    return %c0_i32, %c0_i32_0 : i32, i32
  }
  func.func @transform_2(%arg0: i32) -> (i32, i32) {
    %c0_i32 = arith.constant 0 : i32
    %c0_i32_0 = arith.constant 0 : i32
    %c0_i32_1 = arith.constant 0 : i32
    return %c0_i32, %c0_i32_0 : i32, i32
  }
  func.func @transform_3(%arg0: i32) -> i32 {
    %c0_i32 = arith.constant 0 : i32
    %c0_i32_0 = arith.constant 0 : i32
    return %c0_i32 : i32
  }
  func.func @transform_4(%arg0: i32) -> (i32, i32) {
    %c0_i32 = arith.constant 0 : i32
    %c0_i32_0 = arith.constant 0 : i32
    %c0_i32_1 = arith.constant 0 : i32
    return %c0_i32, %c0_i32_0 : i32, i32
  }
  func.func @transform_5(%arg0: i32) -> i32 {
    %c0_i32 = arith.constant 0 : i32
    %c0_i32_0 = arith.constant 0 : i32
    return %c0_i32 : i32
  }
  func.func @transform_6(%arg0: i32) -> (i32, i32) {
    %c0_i32 = arith.constant 0 : i32
    %c0_i32_0 = arith.constant 0 : i32
    %c0_i32_1 = arith.constant 0 : i32
    return %c0_i32, %c0_i32_0 : i32, i32
  }
  func.func @transform_7(%arg0: i32) -> i32 {
    %c0_i32 = arith.constant 0 : i32
    %c0_i32_0 = arith.constant 0 : i32
    return %c0_i32 : i32
  }
  func.func @transform_8(%arg0: i32) -> (i32, i32, i32, i32) {
    %c0_i32 = arith.constant 0 : i32
    %c0_i32_0 = arith.constant 0 : i32
    %c0_i32_1 = arith.constant 0 : i32
    %c0_i32_2 = arith.constant 0 : i32
    return %arg0, %c0_i32, %c0_i32_0, %c0_i32_1 : i32, i32, i32, i32
  }
}

</mosaic_0001>

<bundles_post_ra>
// kernel: tpu_custom_call.1
= control target key start
LH: loop header
LB: loop body
LE: loop exit
PB: predicated region body
PF: predicated region fallthrough
CT: control target
= control target key end

     0   :  { %s5170_s0 = inlined_call_operand.hbm [shape: f32[2,4,16,16], index: 0, kind: input, shape index: {}]   ;;  %s5171_s1 = inlined_call_operand.vmem [shape: f32[16,16], index: 1, kind: input, shape index: {}]   ;;  %s5172_s2 = inlined_call_operand.vmem [shape: f32[4,8], index: 2, kind: input, shape index: {}]   ;;  %s5173_s3 = inlined_call_operand.vmem [shape: f32[8], index: 3, kind: input, shape index: {}]   ;;  %s5174_s4 = inlined_call_operand.vmem [shape: f32[9,8], index: 4, kind: input, shape index: {}]   ;;  %s5175_s5 = inlined_call_operand.vmem [shape: f32[8], index: 5, kind: input, shape index: {}]   ;;  %s5176_s6 = inlined_call_operand.vmem [shape: f32[4,4], index: 6, kind: input, shape index: {}]   ;;  %s5177_s7 = inlined_call_operand.vmem [shape: f32[4], index: 7, kind: input, shape index: {}]   ;;  %s5178_s8 = inlined_call_operand.hbm [shape: f32[2,4,16,16], index: 8, kind: output, shape index: {}]  }
   0x1   :  { %5261 = sst [smem:[#allocation57_spill]] %s5170_s0 }
   0x2   :  { %5262 = sst [smem:[#allocation58_spill]] %s5171_s1 }
   0x3   :  { %5263 = sst [smem:[#allocation59_spill]] %s5172_s2 }
   0x4   :  { %5264 = sst [smem:[#allocation60_spill]] %s5173_s3 }
   0x5   :  { %5265 = sst [smem:[#allocation61_spill]] %s5174_s4 }
   0x6   :  { %5266 = sst [smem:[#allocation62_spill]] %s5175_s5 }
   0x7   :  { %5267 = sst [smem:[#allocation63_spill]] %s5176_s6 }
   0x8   :  { %5268 = sst [smem:[#allocation64_spill]] %s5177_s7 }
   0x9   :  { %5269 = sst [smem:[#allocation65_spill]] %s5178_s8 }
   0xa   :  { %13 = vsyncpa [#allocation6], 0 }
   0xb   :  { %15 = vsyncpa [#allocation6 + $0x1], 0 }
   0xc   :  { %16 = vsyncpa [#allocation8], 0 }
   0xd   :  { %17 = vsyncpa [#allocation11], 0 }
   0xe   :  { %18 = vsyncpa [#allocation14], 0 }
   0xf   :  { %19 = vsyncpa [#allocation17], 0 }
  0x10   :  { %20 = vsyncpa [#allocation7], 0 }
  0x11   :  { %22 = vsyncpa [#allocation7 + $0x1], 0  ;;  %s3191_s27 = smov 0   ;;  %s3193_s28 = smov 0  }
  0x12   :  { %s3195_s29 = smov 0   ;;  %s3197_s30 = smov 0  }
  0x13 LB: > { %5270 = sst [smem:[#allocation25_spill]] %s3113_s27  ;;  %s5274_s3 = sld [smem:[#allocation60_spill]]  ;;  %s3125_s30 = sphi %s3197_s30, %s5409_s30   ;;  %s3121_s29 = sphi %s3195_s29, %s5412_s29   ;;  %s3117_s28 = sphi %s3193_s28, %s5411_s28   ;;  %s3113_s27 = sphi %s3191_s27, %s5410_s27  }
  0x14   : > { %5271 = sst [smem:[#allocation26_spill]] %s3117_s28  ;;  %s3215_s12 = sadd.s32 4294967295, %s3125_s30  }
  0x15   : > { %5272 = sst [smem:[#allocation27_spill]] %s3121_s29  ;;  %p2598_p0 = scmp.ge.s32.totalorder %s3125_s30, 1 }
  0x16   : > { %5273 = sst [smem:[#allocation28_spill]] %s3125_s30  ;;  %p5179_p1 = scmp.eq.s32.totalorder %s3215_s12, 0 }
  0x17   : > { %5275 = sst [smem:[#allocation29_spill]] %s3215_s12  ;;  %p232_p2 = scmp.lt.s32.totalorder %s3125_s30, 3 }
  0x18   : > { %s5277_s5 = sld [smem:[#allocation62_spill]]  ;;  %s5278_s2 = sld [smem:[#allocation59_spill]] }
  0x19   : > { %s259_s11 = sshll.u32 %s5274_s3, 4  ;;  %p3220_p3 = pnand %p2598_p0, %p232_p2  ;;  %s260_s11 = int_to_ptr.vmem [resolvable:$true] %s259_s11 }
  0x1a   : > { %s5280_s4 = sld [smem:[#allocation61_spill]]  ;;  %s2923_s24 = scalar_lea.vmem %s260_s11, 16 }
  0x1b   : > { %s5276_s13 = scalar_select %p3220_p3, 1, 0 }
  0x1c   : > { %p2801_p5 = pneg %p3220_p3  ;;  %p2924_p7 = scmp.ne.s32.totalorder %s260_s11, %s2923_s24 }
  0x1d   : > { %p2931_p11 = scmp.lt.s32.totalorder %s260_s11, %s260_s11  ;;  %p2932_p12 = scmp.lt.s32.totalorder %s2923_s24, %s2923_s24 }
  0x1e   : > { %s283_s16 = sshll.u32 %s5277_s5, 4  ;;  %s248_s19 = sshll.u32 %s5278_s2, 4  ;;  %s284_s16 = int_to_ptr.vmem [resolvable:$true] %s283_s16  ;;  %s3239_s19 = int_to_ptr.vmem [resolvable:$true] %s248_s19 }
  0x1f   : > { %p3235_p6 = pnand %p2801_p5, %p5179_p1  ;;  %p2933_p13 = por %p2932_p12, %p2931_p11 }
  0x20   : > { %s269_s23 = sshll.u32 %s5280_s4, 4  ;;  %s3244_s23 = int_to_ptr.vmem [resolvable:$true] %s269_s23 }
  0x21   : > { %p3248_p8 = pneg %p3235_p6 }
  0x23   : > { %p2926_p9 = pnand %p3248_p8, %p2924_p7 }
  0x25   : > { %p2927_p10 = pneg %p2926_p9 }
  0x27   : > { %p2934_p0 = pnand %p2933_p13, %p2927_p10 }
  0x29   : > { %2937 = shalt.err (!%p2934_p0)
}
  0x2a   : > { %s3127_s26 = smov [#allocation10]   ;;  %s2938_s9 = scalar_lea.vmem %s284_s16, 16 }
  0x2b   : > { %2807 = dma.vmem_to_smem (!%p3235_p6), %s260_s11, 16, %s3127_s26, [#allocation11]  }
  0x2c   : > { %p2939_p2 = scmp.ne.s32.totalorder %s284_s16, %s2938_s9  ;;  %p2946_p1 = scmp.lt.s32.totalorder %s284_s16, %s284_s16 }
  0x2d   : > { %p2947_p3 = scmp.lt.s32.totalorder %s2938_s9, %s2938_s9 }
  0x2e   : > { %p2941_p5 = pnand %p2939_p2, %p3248_p8 }
  0x2f   : > { %p2948_p7 = por %p2947_p3, %p2946_p1 }
  0x30   : > { %p2942_p4 = pneg %p2941_p5 }
  0x32   : > { %p2949_p9 = pnand %p2948_p7, %p2942_p4 }
  0x34   : > { %2952 = shalt.err (!%p2949_p9)
}
  0x35   : > { %s3128_s10 = smov [#allocation13]   ;;  %s2953_s14 = scalar_lea.vmem %s3239_s19, 64 }
  0x36   : > { %2813 = dma.vmem_to_smem (!%p3235_p6), %s284_s16, 16, %s3128_s10, [#allocation14]  }
  0x37   : > { %p2954_p10 = scmp.ne.s32.totalorder %s3239_s19, %s2953_s14  ;;  %p2961_p13 = scmp.lt.s32.totalorder %s3239_s19, %s3239_s19 }
  0x38   : > { %p2962_p0 = scmp.lt.s32.totalorder %s2953_s14, %s2953_s14 }
  0x39   : > { %p2956_p11 = pnand %p2954_p10, %p3248_p8 }
  0x3a   : > { %p2963_p2 = por %p2962_p0, %p2961_p13 }
  0x3b   : > { %p2957_p12 = pneg %p2956_p11 }
  0x3d   : > { %p2964_p1 = pnand %p2963_p2, %p2957_p12 }
  0x3f   : > { %2967 = shalt.err (!%p2964_p1)
}
  0x40   : > { %s3129_s11 = smov [#allocation9]   ;;  %s2968_s15 = scalar_lea.vmem %s3244_s23, 256 }
  0x41   : > { %2804 = dma.vmem_to_smem (!%p3235_p6), %s3239_s19, 64, %s3129_s11, [#allocation8]  }
  0x42   : > { %p2969_p3 = scmp.ne.s32.totalorder %s3244_s23, %s2968_s15  ;;  %p2976_p7 = scmp.lt.s32.totalorder %s3244_s23, %s3244_s23 }
  0x43   : > { %p2977_p9 = scmp.lt.s32.totalorder %s2968_s15, %s2968_s15 }
  0x44   : > { %p2971_p4 = pnand %p2969_p3, %p3248_p8 }
  0x45   : > { %p2978_p10 = por %p2977_p9, %p2976_p7 }
  0x46   : > { %p2972_p5 = pneg %p2971_p4 }
  0x48   : > { %p2979_p11 = pnand %p2978_p10, %p2972_p5 }
  0x4a   : > { %2982 = shalt.err (!%p2979_p11)
}
  0x4b   : > { %s3130_s16 = smov [#allocation12]   ;;  %s5181_s17 = smov 128  }
  0x4c   : > { %s5182_s18 = smov 8   ;;  %s5282_s6 = sld [smem:[#allocation63_spill]] }
  0x4d   : > { %2810 = dma.vmem_to_smem (!%p3235_p6), %s3244_s23, 256, %s3130_s16, [#allocation11], %s5181_s17, %s5181_s17, %s5182_s18  }
  0x4e   : > { %s5283_s7 = sld [smem:[#allocation64_spill]] }
  0x52   : > { %s294_s22 = sshll.u32 %s5282_s6, 4  ;;  %s295_s22 = int_to_ptr.vmem [resolvable:$true] %s294_s22 }
  0x53   : > { %s2983_s10 = scalar_lea.vmem %s295_s22, 64  ;;  %p2991_p2 = scmp.lt.s32.totalorder %s295_s22, %s295_s22 }
  0x54   : > { %s305_s9 = sshll.u32 %s5283_s7, 4  ;;  %p2984_p12 = scmp.ne.s32.totalorder %s295_s22, %s2983_s10  ;;  %s306_s9 = int_to_ptr.vmem [resolvable:$true] %s305_s9 }
  0x55   : > { %p2992_p1 = scmp.lt.s32.totalorder %s2983_s10, %s2983_s10 }
  0x56   : > { %p2986_p13 = pnand %p2984_p12, %p3248_p8 }
  0x57   : > { %p2993_p3 = por %p2992_p1, %p2991_p2 }
  0x58   : > { %p2987_p0 = pneg %p2986_p13 }
  0x5a   : > { %p2994_p4 = pnand %p2993_p3, %p2987_p0 }
  0x5c   : > { %2997 = shalt.err (!%p2994_p4)
}
  0x5d   : > { %s3133_s23 = smov [#allocation15]   ;;  %s2998_s14 = scalar_lea.vmem %s306_s9, 16 }
  0x5e   : > { %2816 = dma.vmem_to_smem (!%p3235_p6), %s295_s22, 64, %s3133_s23, [#allocation14]  }
  0x5f   : > { %p2999_p5 = scmp.ne.s32.totalorder %s306_s9, %s2998_s14  ;;  %p3006_p10 = scmp.lt.s32.totalorder %s306_s9, %s306_s9 }
  0x60   : > { %p3007_p11 = scmp.lt.s32.totalorder %s2998_s14, %s2998_s14 }
  0x61   : > { %p3001_p7 = pnand %p2999_p5, %p3248_p8 }
  0x62   : > { %p3008_p12 = por %p3007_p11, %p3006_p10 }
  0x63   : > { %p3002_p9 = pneg %p3001_p7 }
  0x65   : > { %p3009_p13 = pnand %p3008_p12, %p3002_p9 }
  0x67   : > { %3012 = shalt.err (!%p3009_p13)
}
  0x68   : > { %s3134_s11 = smov [#allocation16]   ;;  %s2597_s25 = sadd.s32 4294967294, %s3125_s30  }
  0x69   : > { %2819 = dma.vmem_to_smem (!%p3235_p6), %s306_s9, 16, %s3134_s11, [#allocation17]  }
  0x6a   : > { %s3297_s15 = sadd.s32 1, %s3125_s30   ;;  %s35_s16 = sadd.s32 1, %s3121_s29 }
  0x6b   : > { %5284 = sst [smem:[#allocation30_spill]] %s3297_s15  ;;  %s32_s20 = ssub.s32 %s3125_s30, %s3297_s15 }
  0x6c   : > { %p33_p8 = scmp.eq.s32.totalorder %s32_s20, 0  ;;  %p42_p0 = scmp.ne.s32.totalorder %s3121_s29, %s3117_s28 }
  0x6d   : > { %p43_p2 = scmp.eq.s32.totalorder %s3125_s30, 0  ;;  %p48_p1 = scmp.ne.s32.totalorder %s3117_s28, %s3113_s27 }
  0x6e   : > { %s3308_s19 = scalar_select %p33_p8, %s3121_s29, %s35_s16  }
  0x6f   : > { %p3310_p3 = por %p43_p2, %p42_p0  ;;  %p5287_p4 = scmp.eq.s32.totalorder %s3215_s12, 0 }
  0x70   : > { %5285 = sst [smem:[#allocation31_spill]] %s3308_s19  ;;  %p219_p5 = scmp.eq.s32.totalorder %s3215_s12, 1 }
  0x71   : > { %p3316_p6 = por %p5287_p4, %p48_p1  ;;  %p225_p7 = scmp.eq.s32.totalorder %s2597_s25, 1 }
  0x72   : > { %p2834_p9 = scmp.lt.s32.totalorder %s3125_s30, 2  ;;  %s316_s24 = sand.u32 1, %s3121_s29  }
  0x73   : > { %p3323_p10 = por %p219_p5, %p42_p0  ;;  %p3327_p11 = por %p225_p7, %p48_p1 }
  0x74   : > { %s2606_s10 = sshll.u32 %s316_s24, 6  ;;  %s2771_s23 = sshll.u32 %s3125_s30, 10 }
  0x75   : > { %s5289_s26 = scalar_select %p3323_p10, 1, 0 }
  0x76   : > { %s5291_s9 = scalar_select %p3327_p11, 1, 0 }
  0x77   : > { %5290 = sst [smem:[#allocation32_spill]] %s5289_s26  ;;  %s320_s25 = scalar_lea.vmem [#allocation5], %s2606_s10 }
  0x78   : > { %5292 = sst [smem:[#allocation33_spill]] %s5291_s9  ;;  %s5293_s0 = sld [smem:[#allocation57_spill]] }
  0x79   : > { %s327_s16 = sshll.u32 %s320_s25, 4  ;;  %p3341_p12 = pnand %p2834_p9, %p3310_p3  ;;  %s3337_s16 = int_to_ptr.vmem [resolvable:$true] %s327_s16 }
  0x7a   : > { %s3345_s18 = scalar_lea.sflag [#allocation6], %s316_s24 }
  0x7b   : > { %p3015_p8 = pneg %p3341_p12 }
  0x7e   : > { %s3335_s20 = scalar_lea.hbm %s5293_s0, %s2771_s23  ;;  %s3018_s21 = scalar_lea.hbm %s5293_s0, 2048 }
  0x7f   : > { %s3013_s14 = scalar_lea.hbm %s3335_s20, 1024  ;;  %p3019_p1 = scmp.lt.u32.totalorder %s3335_s20, %s5293_s0 }
  0x80   : > { %p3014_p13 = scmp.ne.s32.totalorder %s3335_s20, %s3013_s14  ;;  %p3020_p3 = scmp.lt.u32.totalorder %s3018_s21, %s3013_s14 }
  0x81   : > { %p3022_p5 = scmp.lt.u32.totalorder %s3013_s14, %s3335_s20 }
  0x82   : > { %p3016_p0 = pnand %p3015_p8, %p3014_p13  ;;  %p3021_p4 = por %p3020_p3, %p3019_p1 }
  0x84   : > { %p3017_p2 = pneg %p3016_p0  ;;  %p3023_p7 = por %p3022_p5, %p3021_p4 }
  0x86   : > { %p3024_p9 = pnand %p3023_p7, %p3017_p2 }
  0x88   : > { %3027 = shalt.err (!%p3024_p9)
}
  0x89   : > { %s3028_s24 = scalar_lea.vmem %s3337_s16, 1024  ;;  %s3135_s10 = smov [#allocation5]  }
  0x8a   : > { %p3029_p13 = scmp.ne.s32.totalorder %s3337_s16, %s3028_s24  ;;  %s3033_s23 = sshll.u32 %s3135_s10, 4  ;;  %s3034_s23 = int_to_ptr.vmem [resolvable:$false] %s3033_s23 }
  0x8b   : > { %s3035_s11 = scalar_lea.vmem %s3034_s23, 2048  ;;  %p3036_p10 = scmp.lt.s32.totalorder %s3337_s16, %s3034_s23 }
  0x8c   : > { %p3031_p0 = pnand %p3029_p13, %p3015_p8  ;;  %p3037_p1 = scmp.lt.s32.totalorder %s3035_s11, %s3028_s24 }
  0x8e   : > { %p3032_p11 = pneg %p3031_p0  ;;  %p3038_p3 = por %p3037_p1, %p3036_p10 }
  0x90   : > { %p3039_p4 = pnand %p3038_p3, %p3032_p11 }
  0x92   : > { %3042 = shalt.err (!%p3039_p4)
}
  0x93   : > { %s5295_s14 = smov 8   ;;  %s5296_s21 = smov 128  }
  0x94   : > { %2823 = dma.hbm_to_vmem [thread:$0]  (!%p3341_p12), %s3335_s20, 1024, %s3337_s16, %s3345_s18, %s5296_s21, %s5296_s21, %s5295_s14  }
  0x95   : > { %p5297_p8 = scmp.ne.s32.totalorder %s5276_s13, 0 }
  0x97   : > { %339 = sbr.rel (%p5297_p8) target bundleno = 1263 (0x4ef), region = 52 }
  0x9e   : > { %s3379_s25 = sand.u32 1, %s3117_s28  }
  0x9f   : > { %5298 = sst [smem:[#allocation34_spill]] %s3379_s25  ;;  %s5184_s24 = sshll.u32 %s3379_s25, 6 }
  0xa0   : > { %s342_s10 = scalar_lea.sflag [#allocation6], %s3379_s25  ;;  %s3385_s17 = scalar_lea.vmem [#allocation5], %s5184_s24 }
  0xa1   : > { %3088 = dma.done.wait (%p3316_p6), %s342_s10, 1024  }
  0xa2   : > { %3090 = vsyncadd (%p3316_p6), %s342_s10, 4294966272  ;;  %p5299_p10 = scmp.eq.s32.totalorder %s3215_s12, 0 }
  0xa4   : > { %3092 = dma.done.wait (%p5299_p10), [#allocation8], 64   ;;  %p5300_p11 = pmov %p5299_p10 }
  0xa5   : > { %p5301_p12 = pmov %p5299_p10 }
  0xa6   : > { %3094 = vsyncadd (%p5300_p11), [#allocation8], 4294967232 }
  0xa7   : > { %3096 = dma.done.wait (%p5301_p12), [#allocation11], 272   ;;  %p5302_p2 = pmov %p5299_p10 }
  0xa9   : > { %3098 = vsyncadd (%p5302_p2), [#allocation11], 4294967024  ;;  %p5303_p5 = pmov %p5302_p2 }
  0xaa   : > { %p5304_p7 = pmov %p5302_p2 }
  0xab   : > { %3100 = dma.done.wait (%p5303_p5), [#allocation14], 80  }
  0xac   : > { %3102 = vsyncadd (%p5304_p7), [#allocation14], 4294967216  ;;  %p5305_p6 = pmov %p5302_p2 }
  0xad   : > { %p5306_p9 = pmov %p5302_p2 }
  0xae   : > { %3104 = dma.done.wait (%p5305_p6), [#allocation17], 16  }
  0xaf   : > { %3106 = vsyncadd (%p5306_p9), [#allocation17], 4294967280 }
  0xb0   : > { %374 = sfence }
  0xb1   : > { %v3408_v0 = vld [vmem:[%s3385_s17] sm:$0xff]  ;;  %v3411_v1 = vld [vmem:[%s3385_s17 + $0x8] sm:$0xff]  ;;  %vm411_vm0 = vcmask 123904   ;;  %vm420_vm1 = vcmask 130048   ;;  %v3136_v2 = vmov 0.0   ;;  %v3424_v5 = vld [vmem:[%s3385_s17 + $0x10] sm:$0xff] }
  0xb2   : > { %412 = vst.msk [vmem:[#allocation2] sm:$0x3] %vm411_vm0, %v3136_v2  ;;  %413 = vst.msk [vmem:[#allocation2 + $0x18] sm:$0x3] %vm411_vm0, %v3136_v2  ;;  %v3418_v3 = vld [vmem:[%s3385_s17 + $0x20] sm:$0xff]  ;;  %v3421_v4 = vld [vmem:[%s3385_s17 + $0x28] sm:$0xff] }
  0xb3   : > { %421 = vst.msk [vmem:[#allocation2 + $0x2] sm:$0xff] %vm420_vm1, %v3408_v0  ;;  %422 = vst.msk [vmem:[#allocation2 + $0xa] sm:$0xff] %vm420_vm1, %v3411_v1  ;;  %vm501_vm2 = vcmask 15360   ;;  %vm510_vm3 = vcmask 162960   ;;  %v3431_v6 = vld [vmem:[%s3385_s17 + $0x18] sm:$0xff]  ;;  %v3436_v7 = vld [vmem:[%s3385_s17 + $0x30] sm:$0xff] }
  0xb4   : > { %414 = vst.msk [vmem:[#allocation2 + $0x30] sm:$0x3] %vm411_vm0, %v3136_v2  ;;  %415 = vst.msk [vmem:[#allocation2 + $0x48] sm:$0x3] %vm411_vm0, %v3136_v2  ;;  %v3439_v8 = vld [vmem:[%s3385_s17 + $0x38] sm:$0xff]  ;;  %s3137_s13 = smov 2  }
  0xb5   : > { %416 = vst.msk [vmem:[#allocation2 + $0x12] sm:$0x3] %vm411_vm0, %v3136_v2  ;;  %417 = vst.msk [vmem:[#allocation2 + $0x2a] sm:$0x3] %vm411_vm0, %v3136_v2  ;;  %vm551_vm4 = vcmask 146448   ;;  %s5187_s18 = smov 127  }
  0xb6   : > { %418 = vst.msk [vmem:[#allocation2 + $0x42] sm:$0x3] %vm411_vm0, %v3136_v2  ;;  %419 = vst.msk [vmem:[#allocation2 + $0x5a] sm:$0x3] %vm411_vm0, %v3136_v2  ;;  %s5185_s22 = smov 126   ;;  %s3140_s20 = smov 125  }
  0xb7   : > { %425 = vst.msk [vmem:[#allocation2 + $0x32] sm:$0xff] %vm420_vm1, %v3418_v3  ;;  %426 = vst.msk [vmem:[#allocation2 + $0x3a] sm:$0xff] %vm420_vm1, %v3421_v4  ;;  %s3141_s16 = smov 124   ;;  %s3541_s23 = sld [smem:[#allocation9 + $0x5]] }
  0xb8   : > { %423 = vst.msk [vmem:[#allocation2 + $0x1a] sm:$0xff] %vm420_vm1, %v3424_v5  ;;  %424 = vst.msk [vmem:[#allocation2 + $0x22] sm:$0xff] %vm420_vm1, %v3431_v6  ;;  %s3543_s11 = sld [smem:[#allocation9 + $0x85]]  ;;  %s3545_s14 = sld [smem:[#allocation9 + $0x4]] }
  0xb9   : > { %502 = vst.msk [vmem:[#allocation3] sm:$0xff] %vm501_vm2, %v3136_v2  ;;  %503 = vst.msk [vmem:[#allocation3 + $0x8] sm:$0xff] %vm501_vm2, %v3136_v2  ;;  %s3547_s21 = sld [smem:[#allocation9 + $0x84]]  ;;  %s3549_s10 = sld [smem:[#allocation9 + $0x7]] }
  0xba   : > { %504 = vst.msk [vmem:[#allocation3 + $0x10] sm:$0xff] %vm501_vm2, %v3136_v2  ;;  %505 = vst.msk [vmem:[#allocation3 + $0x18] sm:$0xff] %vm501_vm2, %v3136_v2  ;;  %v429_v9 = vld [vmem:[#allocation2] sm:$0xff]  ;;  %v430_v45 = vld [vmem:[#allocation2 + $0x8] sm:$0xff]  ;;  %s3551_s17 = sld [smem:[#allocation9 + $0x87]]  ;;  %s3559_s24 = sld [smem:[#allocation9 + $0x80]] }
  0xbb   : > { %506 = vst.msk [vmem:[#allocation3 + $0x20] sm:$0xff] %vm501_vm2, %v3136_v2  ;;  %507 = vst.msk [vmem:[#allocation3 + $0x28] sm:$0xff] %vm501_vm2, %v3136_v2  ;;  %v437_v10 = vld [vmem:[#allocation2 + $0x1] sm:$0xff]  ;;  %v438_v46 = vld [vmem:[#allocation2 + $0x9] sm:$0xff]  ;;  %s3569_s0 = sld [smem:[#allocation9 + $0x81]]  ;;  %s3571_s2 = sld [smem:[#allocation9 + $0x104]] }
  0xbc   : > { %508 = vst.msk [vmem:[#allocation3 + $0x30] sm:$0xff] %vm501_vm2, %v3136_v2  ;;  %509 = vst.msk [vmem:[#allocation3 + $0x38] sm:$0xff] %vm501_vm2, %v3136_v2  ;;  %v453_v11 = vld [vmem:[#allocation2 + $0x2] sm:$0xff]  ;;  %v445_v12 = vadd.f32 %v437_v10, %v429_v9  ;;  %v446_v49 = vadd.f32 %v438_v46, %v430_v45  ;;  %v454_v50 = vld [vmem:[#allocation2 + $0xa] sm:$0xff]  ;;  %s3573_s3 = sld [smem:[#allocation9 + $0x107]]  ;;  %s3575_s4 = sld [smem:[#allocation9 + $0x106]] }
  0xbd   : > { %427 = vst.msk [vmem:[#allocation2 + $0x4a] sm:$0xff] %vm420_vm1, %v3436_v7  ;;  %428 = vst.msk [vmem:[#allocation2 + $0x52] sm:$0xff] %vm420_vm1, %v3439_v8  ;;  %v469_v14 = vld [vmem:[#allocation2 + $0x3] sm:$0xff]  ;;  %v470_v51 = vld [vmem:[#allocation2 + $0xb] sm:$0xff]  ;;  %5307 = sst [smem:[#allocation35_spill]] %s3541_s23  ;;  %s3579_s6 = sld [smem:[#allocation9 + $0x100]] }
  0xbe   : > { %511 = vst.msk [vmem:[#allocation3] sm:$0xff] %vm510_vm3, %v3136_v2  ;;  %515 = vst.msk [vmem:[#allocation3 + $0x20] sm:$0xff] %vm510_vm3, %v3136_v2  ;;  %v433_v13 = vld [vmem:[#allocation2 + $0x30] sm:$0xff]  ;;  %v461_v17 = vadd.f32 %v453_v11, %v445_v12  ;;  %v485_v18 = vld [vmem:[#allocation2 + $0x4] sm:$0xff]  ;;  %v462_v59 = vadd.f32 %v454_v50, %v446_v49  ;;  %5308 = sst [smem:[#allocation36_spill]] %s3545_s14  ;;  %s3577_s5 = sld [smem:[#allocation9 + $0x2]] }
  0xbf   : > { %512 = vst.msk [vmem:[#allocation3 + $0x8] sm:$0xff] %vm510_vm3, %v3136_v2  ;;  %513 = vst.msk [vmem:[#allocation3 + $0x10] sm:$0xff] %vm510_vm3, %v3136_v2  ;;  %v441_v15 = vld [vmem:[#allocation2 + $0x31] sm:$0xff]  ;;  %v439_v21 = vld [vmem:[#allocation2 + $0x19] sm:$0xff]  ;;  %s3581_s7 = sld [smem:[#allocation9 + $0x82]]  ;;  %s3589_s19 = sld [smem:[#allocation9 + $0x185]] }
  0xc0   : > { %514 = vst.msk [vmem:[#allocation3 + $0x18] sm:$0xff] %vm510_vm3, %v3136_v2  ;;  %516 = vst.msk [vmem:[#allocation3 + $0x28] sm:$0xff] %vm510_vm3, %v3136_v2  ;;  %v457_v16 = vld [vmem:[#allocation2 + $0x32] sm:$0xff]  ;;  %v449_v19 = vadd.f32 %v441_v15, %v433_v13  ;;  %v455_v24 = vld [vmem:[#allocation2 + $0x1a] sm:$0xff]  ;;  %v477_v26 = vadd.f32 %v469_v14, %v461_v17  ;;  %v478_v12 = vadd.f32 %v470_v51, %v462_v59  ;;  %5309 = sst [smem:[#allocation37_spill]] %s3551_s17  ;;  %s3593_s28 = sld [smem:[#allocation9 + $0x187]] }
  0xc1   : > { %517 = vst.msk [vmem:[#allocation3 + $0x30] sm:$0xff] %vm510_vm3, %v3136_v2  ;;  %518 = vst.msk [vmem:[#allocation3 + $0x38] sm:$0xff] %vm510_vm3, %v3136_v2  ;;  %v431_v20 = vld [vmem:[#allocation2 + $0x18] sm:$0xff]  ;;  %v432_v35 = vld [vmem:[#allocation2 + $0x20] sm:$0xff]  ;;  %5314 = sst [smem:[#allocation42_spill]] %s3569_s0  ;;  %s3591_s29 = sld [smem:[#allocation9 + $0x184]] }
  0xc2   : > { %v473_v22 = vld [vmem:[#allocation2 + $0x33] sm:$0xff]  ;;  %v447_v23 = vadd.f32 %v439_v21, %v431_v20  ;;  %v471_v25 = vld [vmem:[#allocation2 + $0x1b] sm:$0xff]  ;;  %v465_v27 = vadd.f32 %v457_v16, %v449_v19  ;;  %v493_v36 = vadd.f32 %v485_v18, %v477_v26  ;;  %v472_v48 = vld [vmem:[#allocation2 + $0x23] sm:$0xff]  ;;  %s3595_s15 = sld [smem:[#allocation9 + $0x186]]  ;;  %s3597_s30 = sld [smem:[#allocation10 + $0x5]] }
  0xc3   : > { %v489_v31 = vld [vmem:[#allocation2 + $0x34] sm:$0xff]  ;;  %v487_v33 = vld [vmem:[#allocation2 + $0x1c] sm:$0xff]  ;;  %v488_v58 = vld [vmem:[#allocation2 + $0x24] sm:$0xff]  ;;  %s3599_s9 = sld [smem:[#allocation9 + $0x101]]  ;;  %s3601_s27 = sld [smem:[#allocation10 + $0x4]] }
  0xc4   : > { %v435_v28 = vld [vmem:[#allocation2 + $0x48] sm:$0xff]  ;;  %v463_v32 = vadd.f32 %v455_v24, %v447_v23  ;;  %v481_v37 = vadd.f32 %v473_v22, %v465_v27  ;;  %527 = vrot.lane.b32.xlu0 %v493_v36, %s3137_s13  ;;  %v434_v55 = vld [vmem:[#allocation2 + $0x38] sm:$0xff]  ;;  %v436_v62 = vld [vmem:[#allocation2 + $0x50] sm:$0xff]  ;;  %5315 = sst [smem:[#allocation43_spill]] %s3577_s5  ;;  %s3603_s8 = sld [smem:[#allocation9 + $0x3]] }
  0xc5   : > { %v443_v29 = vld [vmem:[#allocation2 + $0x49] sm:$0xff]  ;;  %v440_v39 = vld [vmem:[#allocation2 + $0x21] sm:$0xff]  ;;  %v442_v56 = vld [vmem:[#allocation2 + $0x39] sm:$0xff]  ;;  %5316 = sst [smem:[#allocation44_spill]] %s3581_s7  ;;  %s3605_s26 = sld [smem:[#allocation10 + $0x7]] }
  0xc6   : > { %v459_v30 = vld [vmem:[#allocation2 + $0x4a] sm:$0xff]  ;;  %v451_v34 = vadd.f32 %v443_v29, %v435_v28  ;;  %v456_v40 = vld [vmem:[#allocation2 + $0x22] sm:$0xff]  ;;  %v479_v41 = vadd.f32 %v471_v25, %v463_v32  ;;  %v448_v44 = vadd.f32 %v440_v39, %v432_v35  ;;  %v497_v47 = vadd.f32 %v489_v31, %v481_v37  ;;  %v458_v57 = vld [vmem:[#allocation2 + $0x3a] sm:$0xff]  ;;  %s3607_s12 = sld [smem:[#allocation10 + $0x6]]  ;;  %s3612_s25 = sld [smem:[#allocation9 + $0x180]] }
  0xc7   : > { %v475_v38 = vld [vmem:[#allocation2 + $0x4b] sm:$0xff]  ;;  %v450_v61 = vadd.f32 %v442_v56, %v434_v55  ;;  %v474_v9 = vld [vmem:[#allocation2 + $0x3b] sm:$0xff]  ;;  %v476_v16 = vld [vmem:[#allocation2 + $0x53] sm:$0xff]  ;;  %s5325_s1 = sld [smem:[#allocation58_spill]] }
  0xc8   : > { %v467_v42 = vadd.f32 %v459_v30, %v451_v34  ;;  %v491_v43 = vld [vmem:[#allocation2 + $0x4c] sm:$0xff]  ;;  %v495_v52 = vadd.f32 %v487_v33, %v479_v41  ;;  %v464_v54 = vadd.f32 %v456_v40, %v448_v44  ;;  %535 = vrot.lane.b32.xlu1 %v497_v47, %s3137_s13  ;;  %v490_v15 = vld [vmem:[#allocation2 + $0x3c] sm:$0xff]  ;;  %v492_v21 = vld [vmem:[#allocation2 + $0x54] sm:$0xff]  ;;  %5317 = sst [smem:[#allocation45_spill]] %s3595_s15 }
  0xc9   : > { %v486_v60 = vld [vmem:[#allocation2 + $0xc] sm:$0xff]  ;;  %v466_v13 = vadd.f32 %v458_v57, %v450_v61  ;;  %5318 = sst [smem:[#allocation46_spill]] %s3597_s30  ;;  %s4057_s30 = sld [smem:[#allocation12 + $0x80]] }
  0xca   : > { %v483_v53 = vadd.f32 %v475_v38, %v467_v42  ;;  %v480_v2 = vadd.f32 %v472_v48, %v464_v54  ;;  %v444_v10 = vld [vmem:[#allocation2 + $0x51] sm:$0xff]  ;;  %531 = vrot.lane.b32.xlu0 %v495_v52, %s3137_s13  ;;  %v494_v18 = vadd.f32 %v486_v60, %v478_v12  ;;  %5319 = sst [smem:[#allocation47_spill]] %s3599_s9  ;;  %v5230_v12 = vstv %s3547_s21  ;;  %s3633_s9 = sld [smem:[#allocation10 + $0x1]] }
  0xcb   : > { %v460_v11 = vld [vmem:[#allocation2 + $0x52] sm:$0xff]  ;;  %v452_v14 = vadd.f32 %v444_v10, %v436_v62  ;;  %v482_v19 = vadd.f32 %v474_v9, %v466_v13  ;;  %5320 = sst [smem:[#allocation48_spill]] %s3601_s27  ;;  %v938_v62 = vstv %s3541_s23  ;;  %s3614_s27 = sld [smem:[#allocation9 + $0x83]]  ;;  %v5229_v13 = vstv %s3549_s10 }
  0xcc   : > { %v499_v63 = vadd.f32 %v491_v43, %v483_v53  ;;  %v496_v17 = vadd.f32 %v488_v58, %v480_v2  ;;  %5321 = sst [smem:[#allocation49_spill]] %s3603_s8  ;;  %v5232_v2 = vstv %s3545_s14  ;;  %s3625_s14 = sld [smem:[#allocation9 + $0x102]] }
  0xcd   : > { %v468_v20 = vadd.f32 %v460_v11, %v452_v14  ;;  %v498_v22 = vadd.f32 %v490_v15, %v482_v19  ;;  %5322 = sst [smem:[#allocation50_spill]] %s3605_s26  ;;  %v3619_v9 = vld [vmem:[%s5325_s1] sm:$0xff]  ;;  %s3623_s23 = sld [smem:[#allocation10]]  ;;  %v5231_v14 = vstv %s3551_s17 }
  0xce   : > { %539 = vrot.lane.b32.xlu1 %v499_v63, %s3137_s13  ;;  %529 = vrot.lane.b32.xlu0 %v494_v18, %s3137_s13  ;;  %5323 = sst [smem:[#allocation51_spill]] %s3607_s12  ;;  %v5235_v63 = vstv %s3543_s11  ;;  %s3631_s8 = sld [smem:[#allocation9 + $0x181]] }
  0xcf   : > { %v484_v23 = vadd.f32 %v476_v16, %v468_v20  ;;  %s3643_s1 = sld [smem:[#allocation9 + $0x182]]  ;;  %s3651_s17 = sld [smem:[#allocation9 + $0x183]] }
  0xd0   : > { %5328 = sst [smem:[#allocation55_spill]] %s3633_s9  ;;  %s5335_s12 = sld [smem:[#allocation37_spill]] }
  0xd1   : > { %v500_v24 = vadd.f32 %v492_v21, %v484_v23  ;;  %5324 = sst [smem:[#allocation52_spill]] %s3614_s27  ;;  %v5238_v21 = vstv %s3559_s24  ;;  %v5241_v23 = vstv %s3569_s0  ;;  %s5345_s0 = sld [smem:[#allocation51_spill]] }
  0xd2   : > { %533 = vrot.lane.b32.xlu1 %v496_v17, %s3137_s13  ;;  %537 = vrot.lane.b32.xlu0 %v498_v22, %s3137_s13  ;;  %5327 = sst [smem:[#allocation54_spill]] %s3625_s14  ;;  %s4175_s9 = sld [smem:[#allocation12 + $0x400]] }
  0xd3   : > { %5326 = sst [smem:[#allocation53_spill]] %s3623_s23  ;;  %s4121_s23 = sld [smem:[#allocation12 + $0x85]] }
  0xd6   : > { %541 = vrot.lane.b32.xlu1 %v500_v24, %s3137_s13  ;;  %s3553_s13 = sld [smem:[#allocation9 + $0x6]]  ;;  %v905_v24 = vstv %s3571_s2  ;;  %s5359_s2 = sld [smem:[#allocation53_spill]] }
  0xdc   : > { %5310 = sst [smem:[#allocation38_spill]] %s3553_s13  ;;  %v5236_v15 = vstv %s3553_s13  ;;  %s5331_s13 = sld [smem:[#allocation49_spill]] }
  0xdd   : > { %s5336_s26 = sld [smem:[#allocation38_spill]] }
 0x136   : > { %v528_v25 = vpop.permute.xlu0 %527 }
 0x137   : > { %552 = vst.msk [vmem:[#allocation3] sm:$0xff] %vm551_vm4, %v528_v25  ;;  %v1034_v25 = vstv %s3573_s3  ;;  %s5361_s3 = sld [smem:[#allocation42_spill]] }
 0x13a   : > { %v536_v26 = vpop.permute.xlu1 %535 }
 0x13b   : > { %556 = vst.msk [vmem:[#allocation3 + $0x20] sm:$0xff] %vm551_vm4, %v536_v26  ;;  %v991_v26 = vstv %s3575_s4  ;;  %s5365_s4 = sld [smem:[#allocation55_spill]] }
 0x13c   : > { %v532_v27 = vpop.permute.xlu0 %531 }
 0x13d   : > { %554 = vst.msk [vmem:[#allocation3 + $0x10] sm:$0xff] %vm551_vm4, %v532_v27  ;;  %v5239_v27 = vstv %s3577_s5  ;;  %s5343_s5 = sld [smem:[#allocation48_spill]] }
 0x13e   : > { %v3467_v29 = vld [vmem:[#allocation3] sm:$0xff] }
 0x13f   : > { %576 = vrot.lane.b32.xlu0 %v3467_v29, %s5187_s18 }
 0x140   : > { %v540_v28 = vpop.permute.xlu1 %539  ;;  %v530_v30 = vpop.permute.xlu0 %529 }
 0x141   : > { %558 = vst.msk [vmem:[#allocation3 + $0x30] sm:$0xff] %vm551_vm4, %v540_v28  ;;  %553 = vst.msk [vmem:[#allocation3 + $0x8] sm:$0xff] %vm551_vm4, %v530_v30  ;;  %v733_v30 = vstv %s3579_s6  ;;  %s5372_s6 = sld [smem:[#allocation43_spill]] }
 0x142   : > { %v3472_v31 = vld [vmem:[#allocation3 + $0x20] sm:$0xff] }
 0x143   : > { %584 = vrot.lane.b32.xlu0 %v3472_v31, %s5187_s18 }
 0x144   : > { %v534_v32 = vpop.permute.xlu1 %533  ;;  %v3475_v33 = vld [vmem:[#allocation3 + $0x10] sm:$0xff]  ;;  %v538_v34 = vpop.permute.xlu0 %537 }
 0x145   : > { %555 = vst.msk [vmem:[#allocation3 + $0x18] sm:$0xff] %vm551_vm4, %v534_v32  ;;  %580 = vrot.lane.b32.xlu1 %v3475_v33, %s5187_s18  ;;  %557 = vst.msk [vmem:[#allocation3 + $0x28] sm:$0xff] %vm551_vm4, %v538_v34  ;;  %v5240_v32 = vstv %s3581_s7  ;;  %v954_v34 = vstv %s3589_s19  ;;  %s5342_s7 = sld [smem:[#allocation46_spill]]  ;;  %s4070_s19 = sld [smem:[#allocation12 + $0x101]] }
 0x147   : > { %612 = vrot.lane.b32.xlu0 %v3475_v33, %s5185_s22 }
 0x148   : > { %v542_v35 = vpop.permute.xlu1 %541  ;;  %v3487_v36 = vld [vmem:[#allocation3 + $0x30] sm:$0xff]  ;;  %v3497_v38 = vld [vmem:[#allocation3 + $0x8] sm:$0xff] }
 0x149   : > { %559 = vst.msk [vmem:[#allocation3 + $0x38] sm:$0xff] %vm551_vm4, %v542_v35  ;;  %608 = vrot.lane.b32.xlu1 %v3467_v29, %s5185_s22  ;;  %v911_v35 = vstv %s3591_s29  ;;  %s4362_s29 = sld [smem:[#allocation12 + $0x205]] }
 0x14b   : > { %616 = vrot.lane.b32.xlu0 %v3472_v31, %s5185_s22 }
 0x14c   : > { %v3495_v37 = vld [vmem:[#allocation3 + $0x18] sm:$0xff]  ;;  %v3508_v39 = vld [vmem:[#allocation3 + $0x28] sm:$0xff] }
 0x14d   : > { %588 = vrot.lane.b32.xlu1 %v3487_v36, %s5187_s18 }
 0x14f   : > { %644 = vrot.lane.b32.xlu0 %v3475_v33, %s3140_s20 }
 0x150   : > { %v3517_v40 = vld [vmem:[#allocation3 + $0x38] sm:$0xff] }
 0x151   : > { %640 = vrot.lane.b32.xlu1 %v3467_v29, %s3140_s20 }
 0x153   : > { %582 = vrot.lane.b32.xlu0 %v3495_v37, %s5187_s18 }
 0x155   : > { %578 = vrot.lane.b32.xlu1 %v3497_v38, %s5187_s18 }
 0x157   : > { %648 = vrot.lane.b32.xlu0 %v3472_v31, %s3140_s20 }
 0x159   : > { %620 = vrot.lane.b32.xlu1 %v3487_v36, %s5185_s22 }
 0x15b   : > { %676 = vrot.lane.b32.xlu0 %v3475_v33, %s3141_s16 }
 0x15d   : > { %672 = vrot.lane.b32.xlu1 %v3467_v29, %s3141_s16 }
 0x15f   : > { %610 = vrot.lane.b32.xlu0 %v3497_v38, %s5185_s22 }
 0x161   : > { %586 = vrot.lane.b32.xlu1 %v3508_v39, %s5187_s18 }
 0x163   : > { %652 = vrot.lane.b32.xlu0 %v3487_v36, %s3140_s20 }
 0x165   : > { %614 = vrot.lane.b32.xlu1 %v3495_v37, %s5185_s22 }
 0x167   : > { %590 = vrot.lane.b32.xlu0 %v3517_v40, %s5187_s18  ;;  %s3567_s18 = sld [smem:[#allocation9 + $0x105]] }
 0x169   : > { %680 = vrot.lane.b32.xlu1 %v3472_v31, %s3141_s16 }
 0x16b   : > { %642 = vrot.lane.b32.xlu0 %v3497_v38, %s3140_s20 }
 0x16d   : > { %618 = vrot.lane.b32.xlu1 %v3508_v39, %s5185_s22  ;;  %5313 = sst [smem:[#allocation41_spill]] %s3567_s18  ;;  %v948_v20 = vstv %s3567_s18 }
 0x16f   : > { %684 = vrot.lane.b32.xlu0 %v3487_v36, %s3141_s16 }
 0x171   : > { %646 = vrot.lane.b32.xlu1 %v3495_v37, %s3140_s20 }
 0x173   : > { %650 = vrot.lane.b32.xlu0 %v3508_v39, %s3140_s20 }
 0x175   : > { %622 = vrot.lane.b32.xlu1 %v3517_v40, %s5185_s22  ;;  %s3561_s22 = sld [smem:[#allocation9 + $0x1]] }
 0x177   : > { %678 = vrot.lane.b32.xlu0 %v3495_v37, %s3141_s16 }
 0x179   : > { %674 = vrot.lane.b32.xlu1 %v3497_v38, %s3141_s16 }
 0x17b   : > { %682 = vrot.lane.b32.xlu0 %v3508_v39, %s3141_s16  ;;  %v766_v22 = vstv %s3561_s22  ;;  %s4110_s22 = sld [smem:[#allocation12 + $0x84]] }
 0x17d   : > { %654 = vrot.lane.b32.xlu1 %v3517_v40, %s3140_s20  ;;  %s3555_s20 = sld [smem:[#allocation9 + $0x86]] }
 0x181   : > { %686 = vrot.lane.b32.xlu1 %v3517_v40, %s3141_s16  ;;  %s3557_s16 = sld [smem:[#allocation9]] }
 0x183   : > { %5311 = sst [smem:[#allocation39_spill]] %s3555_s20  ;;  %v5237_v16 = vstv %s3555_s20 }
 0x184   : > { %s5330_s20 = sld [smem:[#allocation47_spill]] }
 0x185   : > { %s5337_s18 = sld [smem:[#allocation39_spill]] }
 0x187   : > { %5312 = sst [smem:[#allocation40_spill]] %s3557_s16  ;;  %v723_v17 = vstv %s3557_s16  ;;  %s3645_s16 = sld [smem:[#allocation9 + $0x103]] }
 0x18d   : > { %5329 = sst [smem:[#allocation56_spill]] %s3645_s16 }
 0x1b1   : > { %v577_v41 = vpop.permute.xlu0 %576 }
 0x1b2   : > { %v600_v52 = vadd.f32 %v577_v41, %v3467_v29  ;;  %v1040_v41 = vstv %s3593_s28  ;;  %s5380_s28 = sld [smem:[#allocation52_spill]] }
 0x1b5   : > { %v3535_v43 = vpop.permute.xlu0 %584 }
 0x1b7   : > { %v581_v42 = vpop.permute.xlu1 %580 }
 0x1b8   : > { %v602_v53 = vadd.f32 %v581_v42, %v3475_v33  ;;  %v604_v33 = vadd.f32 %v3535_v43, %v3472_v31 }
 0x1b9   : > { %v613_v45 = vpop.permute.xlu0 %612 }
 0x1ba   : > { %v634_v57 = vadd.f32 %v613_v45, %v602_v53 }
 0x1bb   : > { %v609_v44 = vpop.permute.xlu1 %608 }
 0x1bc   : > { %v632_v56 = vadd.f32 %v609_v44, %v600_v52  ;;  %v852_v52 = vstv %s5331_s13  ;;  %s3771_s13 = sld [smem:[#allocation10 + $0x2]] }
 0x1bd   : > { %v3539_v47 = vpop.permute.xlu0 %616 }
 0x1be   : > { %v636_v53 = vadd.f32 %v3539_v47, %v604_v33  ;;  %v819_v47 = vstv %s3625_s14  ;;  %s5341_s14 = sld [smem:[#allocation58_spill]] }
 0x1bf   : > { %v3537_v46 = vpop.permute.xlu1 %588 }
 0x1c0   : > { %v606_v33 = vadd.f32 %v3537_v46, %v3487_v36 }
 0x1c1   : > { %v645_v49 = vpop.permute.xlu0 %644 }
 0x1c2   : > { %v666_v59 = vadd.f32 %v645_v49, %v634_v57  ;;  %v776_v49 = vstv %s5330_s20  ;;  %s5344_s20 = sld [smem:[#allocation50_spill]] }
 0x1c3   : > { %v641_v48 = vpop.permute.xlu1 %640 }
 0x1c4   : > { %v664_v58 = vadd.f32 %v641_v48, %v632_v56  ;;  %v997_v48 = vstv %s3595_s15  ;;  %s5334_s15 = sld [smem:[#allocation36_spill]]  ;;  %v862_v56 = vstv %s3645_s16  ;;  %s3142_s16 = smov 1  }
 0x1c5   : > { %v3565_v51 = vpop.permute.xlu0 %582 }
 0x1c7   : > { %v3563_v50 = vpop.permute.xlu1 %578 }
 0x1c9   : > { %v3587_v55 = vpop.permute.xlu0 %648 }
 0x1cb   : > { %v3585_v54 = vpop.permute.xlu1 %620 }
 0x1cc   : > { %v638_v36 = vadd.f32 %v3585_v54, %v606_v33 }
 0x1cd   : > { %v677_v61 = vpop.permute.xlu0 %676 }
 0x1ce   : > { %v698_v11 = vadd.f32 %v677_v61, %v666_v59  ;;  %v739_v59 = vstv %s3612_s25  ;;  %v668_v61 = vadd.f32 %v3587_v55, %v636_v53  ;;  %v601_v55 = vadd.f32 %v3563_v50, %v3497_v38  ;;  %s5387_s25 = smov 126  }
 0x1cf   : > { %v673_v60 = vpop.permute.xlu1 %672  ;;  %v603_v53 = vadd.f32 %v3565_v51, %v3495_v37 }
 0x1d0   : > { %v696_v10 = vadd.f32 %v673_v60, %v664_v58  ;;  %v708_v29 = vmul.f32 %v3619_v9, %v698_v11  ;;  %v5243_v60 = vstv %s3614_s27  ;;  %s4309_s27 = sld [smem:[#allocation12 + $0x382]] }
 0x1d1   : > { %v3637_v19 = vpop.permute.xlu0 %610 }
 0x1d2   : > { %v706_v28 = vmul.f32 %v3619_v9, %v696_v10  ;;  %v716_v58 = vsub.f32 %v708_v29, %v3424_v5 }
 0x1d3   : > { %v3635_v18 = vpop.permute.xlu1 %586 }
 0x1d4   : > { %v714_v57 = vsub.f32 %v706_v28, %v3408_v0  ;;  %v943_v29 = vmul.f32 %v5235_v63, %v716_v58  ;;  %v900_v38 = vmul.f32 %v5230_v12, %v716_v58  ;;  %v1029_v37 = vmul.f32 %v5231_v14, %v716_v58 }
 0x1d5   : > { %v653_v44 = vpop.permute.xlu0 %652  ;;  %v728_v33 = vmul.f32 %v5238_v21, %v716_v58  ;;  %v605_v45 = vadd.f32 %v3635_v18, %v3508_v39  ;;  %v814_v39 = vmul.f32 %v5240_v32, %v716_v58 }
 0x1d6   : > { %v939_v46 = vmul.f32 %v938_v62, %v714_v57  ;;  %v896_v31 = vmul.f32 %v5232_v2, %v714_v57  ;;  %v1025_v50 = vmul.f32 %v5229_v13, %v714_v57  ;;  %v633_v13 = vadd.f32 %v3637_v19, %v601_v55 }
 0x1d7   : > { %v615_v42 = vpop.permute.xlu1 %614  ;;  %v670_v2 = vadd.f32 %v653_v44, %v638_v36  ;;  %v810_v21 = vmul.f32 %v5239_v27, %v714_v57  ;;  %v853_v18 = vmul.f32 %v852_v52, %v714_v57  ;;  %v857_v19 = vmul.f32 %v5243_v60, %v716_v58 }
 0x1d8   : > { %v635_v12 = vadd.f32 %v615_v42, %v603_v53  ;;  %v945_v63 = vadd.f32 %v943_v29, %v939_v46  ;;  %v1031_v29 = vadd.f32 %v1029_v37, %v1025_v50 }
 0x1d9   : > { %v591_v28 = vpop.permute.xlu0 %590  ;;  %v816_v37 = vadd.f32 %v814_v39, %v810_v21 }
 0x1da   : > { %v607_v36 = vadd.f32 %v591_v28, %v3517_v40  ;;  %v859_v40 = vadd.f32 %v857_v19, %v853_v18 }
 0x1db   : > { %v681_v43 = vpop.permute.xlu1 %680 }
 0x1dc   : > { %v700_v10 = vadd.f32 %v681_v43, %v668_v61  ;;  %v982_v43 = vmul.f32 %v5236_v15, %v714_v57  ;;  %v986_v61 = vmul.f32 %v5237_v16, %v716_v58  ;;  %v767_v15 = vmul.f32 %v766_v22, %v714_v57 }
 0x1dd   : > { %v643_v54 = vpop.permute.xlu0 %642  ;;  %v771_v16 = vmul.f32 %v5241_v23, %v716_v58 }
 0x1de   : > { %v710_v11 = vmul.f32 %v3619_v9, %v700_v10  ;;  %v724_v10 = vmul.f32 %v723_v17, %v714_v57  ;;  %v988_v55 = vadd.f32 %v986_v61, %v982_v43  ;;  %v665_v28 = vadd.f32 %v643_v54, %v633_v13 }
 0x1df   : > { %v619_v51 = vpop.permute.xlu1 %618  ;;  %v773_v50 = vadd.f32 %v771_v16, %v767_v15 }
 0x1e0   : > { %v718_v14 = vsub.f32 %v710_v11, %v3418_v3  ;;  %v902_v11 = vadd.f32 %v900_v38, %v896_v31  ;;  %v730_v53 = vadd.f32 %v728_v33, %v724_v10 }
 0x1e1   : > { %v685_v44 = vpop.permute.xlu0 %684 }
 0x1e2   : > { %v702_v46 = vadd.f32 %v685_v44, %v670_v2  ;;  %v949_v27 = vmul.f32 %v948_v20, %v718_v14  ;;  %v906_v32 = vmul.f32 %v905_v24, %v718_v14  ;;  %v1035_v23 = vmul.f32 %v1034_v25, %v718_v14 }
 0x1e3   : > { %v647_v42 = vpop.permute.xlu1 %646  ;;  %v992_v57 = vmul.f32 %v991_v26, %v718_v14  ;;  %v734_v58 = vmul.f32 %v733_v30, %v718_v14  ;;  %v777_v31 = vmul.f32 %v776_v49, %v718_v14  ;;  %v637_v2 = vadd.f32 %v619_v51, %v605_v45 }
 0x1e4   : > { %v712_v38 = vmul.f32 %v3619_v9, %v702_v46  ;;  %v820_v10 = vmul.f32 %v819_v47, %v718_v14  ;;  %v863_v33 = vmul.f32 %v862_v56, %v718_v14  ;;  %v667_v44 = vadd.f32 %v647_v42, %v635_v12 }
 0x1e5   : > { %v651_v61 = vpop.permute.xlu0 %650  ;;  %v951_v9 = vadd.f32 %v949_v27, %v945_v63  ;;  %v908_v15 = vadd.f32 %v906_v32, %v902_v11  ;;  %v1037_v16 = vadd.f32 %v1035_v23, %v1031_v29  ;;  %v994_v21 = vadd.f32 %v992_v57, %v988_v55  ;;  %v705_v23 = vld [vmem:[%s5341_s14 + $0x8] sm:$0xff]  ;;  %s3797_s14 = sld [smem:[#allocation10 + $0x3]] }
 0x1e6   : > { %v3745_v60 = vsub.f32 %v712_v38, %v3436_v7  ;;  %v736_v39 = vadd.f32 %v734_v58, %v730_v53  ;;  %v3747_v45 = vadd.f32 %v777_v31, %v773_v50  ;;  %v3767_v18 = vadd.f32 %v820_v10, %v816_v37 }
 0x1e7   : > { %v623_v43 = vpop.permute.xlu1 %622  ;;  %v3769_v19 = vadd.f32 %v863_v33, %v859_v40  ;;  %v669_v53 = vadd.f32 %v651_v61, %v637_v2  ;;  %v5346_v57 = vstv %s3631_s8  ;;  %v5347_v50 = vstv %s5342_s7 }
 0x1e8   : > { %v955_v13 = vmul.f32 %v954_v34, %v3745_v60  ;;  %v912_v51 = vmul.f32 %v911_v35, %v3745_v60  ;;  %v1041_v12 = vmul.f32 %v1040_v41, %v3745_v60  ;;  %v998_v14 = vmul.f32 %v997_v48, %v3745_v60 }
 0x1e9   : > { %v639_v63 = vadd.f32 %v623_v43, %v607_v36  ;;  %v679_v32 = vpop.permute.xlu0 %678  ;;  %v740_v54 = vmul.f32 %v739_v59, %v3745_v60  ;;  %v3776_v58 = vmul.f32 %v5346_v57, %v3745_v60  ;;  %v5348_v40 = vstv %s5343_s5 }
 0x1ea   : > { %v699_v11 = vadd.f32 %v679_v32, %v667_v44  ;;  %v957_v29 = vadd.f32 %v955_v13, %v951_v9  ;;  %v914_v55 = vadd.f32 %v912_v51, %v908_v15  ;;  %v1043_v36 = vadd.f32 %v1041_v12, %v1037_v16 }
 0x1eb   : > { %v675_v27 = vpop.permute.xlu1 %674  ;;  %v1000_v46 = vadd.f32 %v998_v14, %v994_v21  ;;  %v5349_v33 = vstv %s5344_s20  ;;  %v5350_v9 = vstv %s5345_s0  ;;  %v742_v13 = vadd.f32 %v740_v54, %v736_v39 }
 0x1ec   : > { %v697_v42 = vadd.f32 %v675_v27, %v665_v28  ;;  %v709_v38 = vmul.f32 %v705_v23, %v699_v11  ;;  %v961_v37 = vadd.f32 %v5347_v50, %v957_v29  ;;  %v918_v28 = vadd.f32 %v5348_v40, %v914_v55 }
 0x1ed   : > { %v683_v10 = vpop.permute.xlu0 %682  ;;  %v1047_v44 = vadd.f32 %v5349_v33, %v1043_v36  ;;  %v1004_v15 = vadd.f32 %v5350_v9, %v1000_v46  ;;  %v5351_v2 = vstv %s3643_s1  ;;  %v831_v46 = vstv %s3771_s13  ;;  %s4191_s13 = sld [smem:[#allocation12 + $0x106]] }
 0x1ee   : > { %v707_v31 = vmul.f32 %v705_v23, %v697_v42  ;;  %v3789_v61 = vmul.f32 %v5351_v2, %v3745_v60  ;;  %v3795_v21 = vsub.f32 %v709_v38, %v3431_v6  ;;  %v701_v12 = vadd.f32 %v683_v10, %v669_v53 }
 0x1ef   : > { %v655_v43 = vpop.permute.xlu1 %654  ;;  %vm963_vm5 = vcmp.ge.f32.partialorder %v961_v37, 0.0  ;;  %v965_v14 = vmul.f32 0.2, %v961_v37  ;;  %vm920_vm6 = vcmp.ge.f32.partialorder %v918_v28, 0.0  ;;  %v922_v27 = vmul.f32 0.2, %v918_v28 }
 0x1f0   : > { %v3792_v16 = vsub.f32 %v707_v31, %v3411_v1  ;;  %v671_v51 = vadd.f32 %v655_v43, %v639_v63  ;;  %v711_v39 = vmul.f32 %v705_v23, %v701_v12  ;;  %vm1049_vm7 = vcmp.ge.f32.partialorder %v1047_v44, 0.0 }
 0x1f1   : > { %v1051_v32 = vmul.f32 0.2, %v1047_v44  ;;  %vm1006_vm8 = vcmp.ge.f32.partialorder %v1004_v15, 0.0  ;;  %v967_v42 = vsel %vm963_vm5, %v961_v37, %v965_v14  ;;  %v924_v11 = vsel %vm920_vm6, %v918_v28, %v922_v27 }
 0x1f2   : > { %v1008_v63 = vmul.f32 0.2, %v1004_v15  ;;  %v940_v29 = vmul.f32 %v938_v62, %v3792_v16  ;;  %v3803_v55 = vsub.f32 %v711_v39, %v3421_v4  ;;  %971 = vrot.lane.b32.xlu1 %v967_v42, %s3142_s16  ;;  %928 = vrot.lane.b32.xlu0 %v924_v11, %s3142_s16  ;;  %v5352_v31 = vstv %s3543_s11  ;;  %s4123_s11 = sld [smem:[#allocation12 + $0x200]] }
 0x1f3   : > { %v687_v54 = vpop.permute.xlu1 %686  ;;  %v1053_v36 = vsel %vm1049_vm7, %v1047_v44, %v1051_v32  ;;  %v944_v38 = vmul.f32 %v5352_v31, %v3795_v21  ;;  %v5353_v62 = vstv %s5334_s15  ;;  %v5354_v37 = vstv %s3547_s21  ;;  %s4064_s15 = sld [smem:[#allocation12 + $0x81]]  ;;  %s4137_s21 = sld [smem:[#allocation12 + $0x104]] }
 0x1f4   : > { %v703_v53 = vadd.f32 %v687_v54, %v671_v51  ;;  %v1010_v57 = vsel %vm1006_vm8, %v1004_v15, %v1008_v63  ;;  %v897_v50 = vmul.f32 %v5353_v62, %v3792_v16  ;;  %v901_v40 = vmul.f32 %v5354_v37, %v3795_v21 }
 0x1f5   : > { %v950_v43 = vmul.f32 %v948_v20, %v3803_v55  ;;  %v907_v10 = vmul.f32 %v905_v24, %v3803_v55  ;;  %v5355_v33 = vstv %s3549_s10  ;;  %v946_v9 = vadd.f32 %v944_v38, %v940_v29  ;;  %s4139_s10 = sld [smem:[#allocation12 + $0x280]] }
 0x1f6   : > { %v713_v28 = vmul.f32 %v705_v23, %v703_v53  ;;  %v1026_v44 = vmul.f32 %v5355_v33, %v3792_v16  ;;  %v903_v15 = vadd.f32 %v901_v40, %v897_v50  ;;  %v5356_v2 = vstv %s5335_s12  ;;  %1057 = vrot.lane.b32.xlu1 %v1053_v36, %s3142_s16  ;;  %1014 = vrot.lane.b32.xlu0 %v1010_v57, %s3142_s16  ;;  %s4060_s12 = sld [smem:[#allocation12 + $0x100]] }
 0x1f7   : > { %v1030_v51 = vmul.f32 %v5356_v2, %v3795_v21  ;;  %v1036_v23 = vmul.f32 %v1034_v25, %v3803_v55  ;;  %v5357_v24 = vstv %s5336_s26  ;;  %v5358_v14 = vstv %s5337_s18  ;;  %s4081_s26 = sld [smem:[#allocation12 + $0x82]]  ;;  %s4101_s18 = sld [smem:[#allocation12 + $0x83]] }
 0x1f8   : > { %v3833_v20 = vsub.f32 %v713_v28, %v3439_v8  ;;  %v983_v12 = vmul.f32 %v5357_v24, %v3792_v16  ;;  %v987_v27 = vmul.f32 %v5358_v14, %v3795_v21  ;;  %v874_v39 = vstv %s3797_s14  ;;  %s4207_s14 = sld [smem:[#allocation12 + $0x87]] }
 0x1f9   : > { %v952_v32 = vadd.f32 %v950_v43, %v946_v9  ;;  %v909_v25 = vadd.f32 %v907_v10, %v903_v15  ;;  %v1032_v54 = vadd.f32 %v1030_v51, %v1026_v44  ;;  %v993_v42 = vmul.f32 %v991_v26, %v3803_v55 }
 0x1fa   : > { %v956_v11 = vmul.f32 %v954_v34, %v3833_v20  ;;  %v913_v63 = vmul.f32 %v911_v35, %v3833_v20  ;;  %v1042_v29 = vmul.f32 %v1040_v41, %v3833_v20  ;;  %v989_v53 = vadd.f32 %v987_v27, %v983_v12 }
 0x1fb   : > { %v1038_v36 = vadd.f32 %v1036_v23, %v1032_v54  ;;  %v999_v57 = vmul.f32 %v997_v48, %v3833_v20  ;;  %v725_v26 = vmul.f32 %v723_v17, %v3792_v16  ;;  %v5360_v34 = vstv %s3651_s17 }
 0x1fc   : > { %v869_v31 = vmul.f32 %v5360_v34, %v3745_v60  ;;  %v958_v35 = vadd.f32 %v956_v11, %v952_v32  ;;  %v915_v38 = vadd.f32 %v913_v63, %v909_v25  ;;  %v995_v62 = vadd.f32 %v993_v42, %v989_v53 }
 0x1fd   : > { %v5362_v41 = vstv %s3559_s24  ;;  %v1044_v37 = vadd.f32 %v1042_v29, %v1038_v36  ;;  %v5363_v40 = vstv %s5359_s2  ;;  %v735_v48 = vmul.f32 %v733_v30, %v3803_v55  ;;  %s4090_s24 = sld [smem:[#allocation12 + $0x102]]  ;;  %s4222_s2 = sld [smem:[#allocation12 + $0x201]] }
 0x1fe   : > { %v729_v50 = vmul.f32 %v5362_v41, %v3795_v21  ;;  %v746_v28 = vadd.f32 %v5363_v40, %v742_v13  ;;  %v785_v17 = vadd.f32 %v3776_v58, %v3747_v45  ;;  %v5364_v43 = vstv %s5342_s7  ;;  %s5373_s7 = sld [smem:[#allocation44_spill]] }
 0x1ff   : > { %v962_v60 = vadd.f32 %v5364_v43, %v958_v35  ;;  %v5366_v10 = vstv %s5343_s5  ;;  %v1001_v44 = vadd.f32 %v999_v57, %v995_v62  ;;  %v741_v9 = vmul.f32 %v739_v59, %v3833_v20  ;;  %s4260_s5 = sld [smem:[#allocation12 + $0x401]] }
 0x200   : > { %v919_v33 = vadd.f32 %v5366_v10, %v915_v38  ;;  %v5367_v15 = vstv %s5344_s20  ;;  %v731_v51 = vadd.f32 %v729_v50, %v725_v26  ;;  %v768_v13 = vmul.f32 %v766_v22, %v3792_v16  ;;  %s4159_s20 = sld [smem:[#allocation12 + $0x380]] }
 0x201   : > { %v1048_v2 = vadd.f32 %v5367_v15, %v1044_v37  ;;  %v5368_v30 = vstv %s5361_s3  ;;  %vm964_vm9 = vcmp.ge.f32.partialorder %v962_v60, 0.0  ;;  %v966_v45 = vmul.f32 0.2, %v962_v60  ;;  %s4235_s3 = sld [smem:[#allocation12 + $0x281]] }
 0x202   : > { %v772_v23 = vmul.f32 %v5368_v30, %v3795_v21  ;;  %vm921_vm10 = vcmp.ge.f32.partialorder %v919_v33, 0.0  ;;  %v923_v58 = vmul.f32 0.2, %v919_v33  ;;  %v5369_v24 = vstv %s5345_s0  ;;  %s4318_s0 = sld [smem:[#allocation12 + $0x402]] }
 0x203   : > { %v1005_v12 = vadd.f32 %v5369_v24, %v1001_v44  ;;  %vm748_vm11 = vcmp.ge.f32.partialorder %v746_v28, 0.0  ;;  %v737_v14 = vadd.f32 %v735_v48, %v731_v51  ;;  %v5371_v59 = vstv %s5365_s4  ;;  %s4249_s4 = sld [smem:[#allocation12 + $0x381]] }
 0x204   : > { %v789_v27 = vadd.f32 %v5371_v59, %v785_v17  ;;  %v968_v32 = vsel %vm964_vm9, %v962_v60, %v966_v45  ;;  %v925_v25 = vsel %vm921_vm10, %v919_v33, %v923_v58  ;;  %v1052_v22 = vmul.f32 0.2, %v1048_v2 }
 0x205   : > { %v750_v54 = vmul.f32 0.2, %v746_v28  ;;  %973 = vrot.lane.b32.xlu1 %v968_v32, %s3142_s16  ;;  %930 = vrot.lane.b32.xlu0 %v925_v25, %s3142_s16  ;;  %vm1050_vm12 = vcmp.ge.f32.partialorder %v1048_v2, 0.0  ;;  %vm1007_vm13 = vcmp.ge.f32.partialorder %v1005_v12, 0.0  ;;  %v1009_v42 = vmul.f32 0.2, %v1005_v12 }
 0x206   : > { %v743_v11 = vadd.f32 %v741_v9, %v737_v14  ;;  %v774_v63 = vadd.f32 %v772_v23, %v768_v13  ;;  %v778_v29 = vmul.f32 %v776_v49, %v3803_v55  ;;  %v5375_v53 = vstv %s3631_s8  ;;  %s4173_s8 = sld [smem:[#allocation12 + $0x86]] }
 0x207   : > { %v784_v36 = vmul.f32 %v5375_v53, %v3833_v20  ;;  %v828_v57 = vadd.f32 %v3789_v61, %v3767_v18  ;;  %v5376_v26 = vmov %v5363_v40  ;;  %v871_v35 = vadd.f32 %v869_v31, %v3769_v19 }
 0x208   : > { %v747_v34 = vadd.f32 %v5376_v26, %v743_v11  ;;  %v5377_v38 = vstv %s5372_s6  ;;  %v5378_v41 = vstv %s5373_s7  ;;  %v1054_v49 = vsel %vm1050_vm12, %v1048_v2, %v1052_v22  ;;  %s4288_s6 = sld [smem:[#allocation12 + $0x202]] }
 0x209   : > { %v811_v62 = vmul.f32 %v5377_v38, %v3792_v16  ;;  %v815_v50 = vmul.f32 %v5378_v41, %v3795_v21  ;;  %v1011_v37 = vsel %vm1007_vm13, %v1005_v12, %v1009_v42  ;;  %v780_v40 = vadd.f32 %v778_v29, %v774_v63  ;;  %1059 = vrot.lane.b32.xlu1 %v1054_v49, %s3142_s16  ;;  %s4298_s7 = sld [smem:[#allocation12 + $0x282]] }
 0x20a   : > { %v821_v48 = vmul.f32 %v819_v47, %v3803_v55  ;;  %1016 = vrot.lane.b32.xlu0 %v1011_v37, %s3142_s16  ;;  %vm749_vm14 = vcmp.ge.f32.partialorder %v747_v34, 0.0  ;;  %v751_v18 = vmul.f32 0.2, %v747_v34  ;;  %v5382_v61 = vstv %s3643_s1  ;;  %s5386_s1 = smov 127  }
 0x20b   : > { %v817_v19 = vadd.f32 %v815_v50, %v811_v62  ;;  %v827_v31 = vmul.f32 %v5382_v61, %v3833_v20  ;;  %v752_v17 = vsel %vm748_vm11, %v746_v28, %v750_v54  ;;  %vm791_vm15 = vcmp.ge.f32.partialorder %v789_v27, 0.0 }
 0x20c   : > { %v793_v43 = vmul.f32 0.2, %v789_v27  ;;  %v786_v60 = vadd.f32 %v784_v36, %v780_v40  ;;  %v832_v47 = vadd.f32 %v831_v46, %v828_v57  ;;  %v875_v10 = vadd.f32 %v874_v39, %v871_v35 }
 0x20d   : > { %v823_v33 = vadd.f32 %v821_v48, %v817_v19  ;;  %v854_v44 = vmul.f32 %v852_v52, %v3792_v16  ;;  %v753_v9 = vsel %vm749_vm14, %v747_v34, %v751_v18  ;;  %v5383_v15 = vmov %v5371_v59 }
 0x20e   : > { %v790_v2 = vadd.f32 %v5383_v15, %v786_v60  ;;  %v5384_v51 = vstv %s5380_s28  ;;  %v864_v28 = vmul.f32 %v862_v56, %v3803_v55  ;;  %756 = vrot.lane.b32.xlu0 %v752_v17, %s3142_s16  ;;  %758 = vrot.lane.b32.xlu1 %v753_v9, %s3142_s16  ;;  %v5385_v52 = vstv %s3651_s17  ;;  %s4157_s17 = sld [smem:[#allocation12 + $0x105]]  ;;  %s4352_s28 = sld [smem:[#allocation12 + $0x204]] }
 0x20f   : > { %v858_v13 = vmul.f32 %v5384_v51, %v3795_v21  ;;  %v829_v30 = vadd.f32 %v827_v31, %v823_v33  ;;  %v870_v16 = vmul.f32 %v5385_v52, %v3833_v20  ;;  %v795_v58 = vsel %vm791_vm15, %v789_v27, %v793_v43 }
 0x210   : > { %vm792_vm0 = vcmp.ge.f32.partialorder %v790_v2, 0.0  ;;  %v794_v23 = vmul.f32 0.2, %v790_v2  ;;  %v836_v24 = vmul.f32 0.2, %v832_v47  ;;  %vm834_vm2 = vcmp.ge.f32.partialorder %v832_v47, 0.0 }
 0x211   : > { %v860_v45 = vadd.f32 %v858_v13, %v854_v44  ;;  %v879_v21 = vmul.f32 0.2, %v875_v10  ;;  %v833_v14 = vadd.f32 %v831_v46, %v829_v30  ;;  %vm877_vm3 = vcmp.ge.f32.partialorder %v875_v10, 0.0 }
 0x212   : > { %v796_v12 = vsel %vm792_vm0, %v790_v2, %v794_v23  ;;  %799 = vrot.lane.b32.xlu0 %v795_v58, %s3142_s16  ;;  %v838_v59 = vsel %vm834_vm2, %v832_v47, %v836_v24  ;;  %vm762_vm6 = vcmask 138248   ;;  %vm1074_vm7 = vcmask 131080  }
 0x213   : > { %v866_v56 = vadd.f32 %v864_v28, %v860_v45  ;;  %801 = vrot.lane.b32.xlu1 %v796_v12, %s3142_s16  ;;  %v881_v32 = vsel %vm877_vm3, %v875_v10, %v879_v21  ;;  %v837_v25 = vmul.f32 0.2, %v833_v14  ;;  %vm835_vm4 = vcmp.ge.f32.partialorder %v833_v14, 0.0 }
 0x214   : > { %vm1219_vm8 = vcmask 7168   ;;  %vm1222_vm9 = vcmask 1024   ;;  %vm1365_vm10 = vcmask 146568   ;;  %vm1368_vm11 = vcmask 140424  }
 0x215   : > { %v872_v55 = vadd.f32 %v870_v16, %v866_v56  ;;  %v839_v27 = vsel %vm835_vm4, %v833_v14, %v837_v25 }
 0x216   : > { %842 = vrot.lane.b32.xlu0 %v838_v59, %s3142_s16 }
 0x217   : > { %v876_v20 = vadd.f32 %v874_v39, %v872_v55  ;;  %885 = vrot.lane.b32.xlu1 %v881_v32, %s3142_s16 }
 0x219   : > { %vm878_vm5 = vcmp.ge.f32.partialorder %v876_v20, 0.0  ;;  %v880_v46 = vmul.f32 0.2, %v876_v20 }
 0x21a   : > { %844 = vrot.lane.b32.xlu0 %v839_v27, %s3142_s16 }
 0x21b   : > { %v882_v22 = vsel %vm878_vm5, %v876_v20, %v880_v46 }
 0x21c   : > { %887 = vrot.lane.b32.xlu1 %v882_v22, %s3142_s16 }
 0x264   : > { %v972_v54 = vpop.permute.xlu1 %971  ;;  %v929_v42 = vpop.permute.xlu0 %928 }
 0x265   : > { %978 = vst.msk [vmem:[#allocation4 + $0x79] sm:$0xff] %vm762_vm6, %v972_v54  ;;  %935 = vst.msk [vmem:[#allocation4 + $0x61] sm:$0xff] %vm762_vm6, %v929_v42 }
 0x268   : > { %v1058_v39 = vpop.permute.xlu1 %1057  ;;  %v1015_v11 = vpop.permute.xlu0 %1014 }
 0x269   : > { %1064 = vst.msk [vmem:[#allocation4 + $0xa9] sm:$0xff] %vm762_vm6, %v1058_v39  ;;  %1021 = vst.msk [vmem:[#allocation4 + $0x91] sm:$0xff] %vm762_vm6, %v1015_v11 }
 0x26c   : > { %v1071_v63 = vld [vmem:[#allocation4 + $0x79] sm:$0x1]  ;;  %v1070_v29 = vld [vmem:[#allocation4 + $0x61] sm:$0x1] }
 0x26d   : > { %1079 = vst.msk [vmem:[#allocation4 + $0x60] sm:$0x1] %vm1074_vm7, %v1070_v29  ;;  %1080 = vst.msk [vmem:[#allocation4 + $0x78] sm:$0x1] %vm1074_vm7, %v1071_v63 }
 0x270   : > { %v1073_v53 = vld [vmem:[#allocation4 + $0xa9] sm:$0x1]  ;;  %v1072_v36 = vld [vmem:[#allocation4 + $0x91] sm:$0x1] }
 0x271   : > { %1081 = vst.msk [vmem:[#allocation4 + $0x90] sm:$0x1] %vm1074_vm7, %v1072_v36  ;;  %1082 = vst.msk [vmem:[#allocation4 + $0xa8] sm:$0x1] %vm1074_vm7, %v1073_v53 }
 0x274   : > { %v1111_v55 = vld [vmem:[#allocation4 + $0x60] sm:$0xff]  ;;  %v1114_v59 = vld [vmem:[#allocation4 + $0x78] sm:$0xff] }
 0x277   : > { %v974_v57 = vpop.permute.xlu1 %973  ;;  %v931_v26 = vpop.permute.xlu0 %930 }
 0x278   : > { %979 = vst.msk [vmem:[#allocation4 + $0x81] sm:$0xff] %vm762_vm6, %v974_v57  ;;  %936 = vst.msk [vmem:[#allocation4 + $0x69] sm:$0xff] %vm762_vm6, %v931_v26  ;;  %v1117_v20 = vld [vmem:[#allocation4 + $0x90] sm:$0xff]  ;;  %v1120_v46 = vld [vmem:[#allocation4 + $0xa8] sm:$0xff] }
 0x27b   : > { %v1060_v34 = vpop.permute.xlu1 %1059 }
 0x27c   : > { %v1017_v35 = vpop.permute.xlu0 %1016  ;;  %1065 = vst.msk [vmem:[#allocation4 + $0xb1] sm:$0xff] %vm762_vm6, %v1060_v34 }
 0x27d   : > { %1022 = vst.msk [vmem:[#allocation4 + $0x99] sm:$0xff] %vm762_vm6, %v1017_v35 }
 0x27f   : > { %v1088_v38 = vld [vmem:[#allocation4 + $0x88] sm:$0x1]  ;;  %v1087_v62 = vld [vmem:[#allocation4 + $0x70] sm:$0x1]  ;;  %v1115_v28 = vld [vmem:[#allocation4 + $0x80] sm:$0xff] }
 0x280   : > { %v759_v41 = vpop.permute.xlu1 %758  ;;  %v757_v50 = vpop.permute.xlu0 %756  ;;  %1095 = vst.msk [vmem:[#allocation4 + $0x71] sm:$0x1] %vm1074_vm7, %v1087_v62  ;;  %1096 = vst.msk [vmem:[#allocation4 + $0x89] sm:$0x1] %vm1074_vm7, %v1088_v38  ;;  %v1112_v30 = vld [vmem:[#allocation4 + $0x68] sm:$0xff] }
 0x281   : > { %764 = vst.msk [vmem:[#allocation4 + $0x9] sm:$0xff] %vm762_vm6, %v759_v41  ;;  %763 = vst.msk [vmem:[#allocation4 + $0x1] sm:$0xff] %vm762_vm6, %v757_v50 }
 0x283   : > { %v1090_v49 = vld [vmem:[#allocation4 + $0xb8] sm:$0x1]  ;;  %v1121_v23 = vld [vmem:[#allocation4 + $0xb0] sm:$0xff] }
 0x284   : > { %v1089_v37 = vld [vmem:[#allocation4 + $0xa0] sm:$0x1]  ;;  %v800_v48 = vpop.permute.xlu0 %799  ;;  %1098 = vst.msk [vmem:[#allocation4 + $0xb9] sm:$0x1] %vm1074_vm7, %v1090_v49  ;;  %v1118_v45 = vld [vmem:[#allocation4 + $0x98] sm:$0xff] }
 0x285   : > { %v802_v40 = vpop.permute.xlu1 %801  ;;  %806 = vst.msk [vmem:[#allocation4 + $0x19] sm:$0xff] %vm762_vm6, %v800_v48 }
 0x286   : > { %807 = vst.msk [vmem:[#allocation4 + $0x21] sm:$0xff] %vm762_vm6, %v802_v40 }
 0x287   : > { %1097 = vst.msk [vmem:[#allocation4 + $0xa1] sm:$0x1] %vm1074_vm7, %v1089_v37  ;;  %v1113_v32 = vld [vmem:[#allocation4 + $0x70] sm:$0x3]  ;;  %v1116_v25 = vld [vmem:[#allocation4 + $0x88] sm:$0x3] }
 0x288   : > { %v1083_v18 = vld [vmem:[#allocation4 + $0x10] sm:$0x1]  ;;  %v1066_v19 = vld [vmem:[#allocation4 + $0x1] sm:$0x1]  ;;  %v843_v31 = vpop.permute.xlu0 %842  ;;  %v1100_v17 = vld [vmem:[#allocation4 + $0x8] sm:$0xff] }
 0x289   : > { %v886_v61 = vpop.permute.xlu1 %885  ;;  %849 = vst.msk [vmem:[#allocation4 + $0x31] sm:$0xff] %vm762_vm6, %v843_v31  ;;  %1149 = vrot.lane.b32.xlu1 %v1100_v17, %s5386_s1 }
 0x28a   : > { %892 = vst.msk [vmem:[#allocation4 + $0x49] sm:$0xff] %vm762_vm6, %v886_v61 }
 0x28b   : > { %1075 = vst.msk [vmem:[#allocation4] sm:$0x1] %vm1074_vm7, %v1066_v19  ;;  %1091 = vst.msk [vmem:[#allocation4 + $0x11] sm:$0x1] %vm1074_vm7, %v1083_v18  ;;  %v1122_v22 = vld [vmem:[#allocation4 + $0xb8] sm:$0x3] }
 0x28c   : > { %v1067_v60 = vld [vmem:[#allocation4 + $0x19] sm:$0x1]  ;;  %v845_v10 = vpop.permute.xlu0 %844 }
 0x28d   : > { %v1084_v43 = vld [vmem:[#allocation4 + $0x28] sm:$0x1]  ;;  %v1103_v33 = vld [vmem:[#allocation4 + $0x20] sm:$0xff]  ;;  %850 = vst.msk [vmem:[#allocation4 + $0x39] sm:$0xff] %vm762_vm6, %v845_v10 }
 0x28e   : > { %v888_v47 = vpop.permute.xlu1 %887  ;;  %1155 = vrot.lane.b32.xlu0 %v1103_v33, %s5386_s1  ;;  %1076 = vst.msk [vmem:[#allocation4 + $0x18] sm:$0x1] %vm1074_vm7, %v1067_v60  ;;  %1092 = vst.msk [vmem:[#allocation4 + $0x29] sm:$0x1] %vm1074_vm7, %v1084_v43  ;;  %v1119_v27 = vld [vmem:[#allocation4 + $0xa0] sm:$0x3] }
 0x28f   : > { %893 = vst.msk [vmem:[#allocation4 + $0x51] sm:$0xff] %vm762_vm6, %v888_v47 }
 0x290   : > { %v1068_v9 = vld [vmem:[#allocation4 + $0x31] sm:$0x1] }
 0x291   : > { %v1069_v44 = vld [vmem:[#allocation4 + $0x49] sm:$0x1]  ;;  %1077 = vst.msk [vmem:[#allocation4 + $0x30] sm:$0x1] %vm1074_vm7, %v1068_v9 }
 0x292   : > { %1078 = vst.msk [vmem:[#allocation4 + $0x48] sm:$0x1] %vm1074_vm7, %v1069_v44  ;;  %v1099_v52 = vld [vmem:[#allocation4] sm:$0xff]  ;;  %v1101_v58 = vld [vmem:[#allocation4 + $0x10] sm:$0x3] }
 0x294   : > { %v1085_v2 = vld [vmem:[#allocation4 + $0x40] sm:$0x1]  ;;  %v1106_v13 = vld [vmem:[#allocation4 + $0x38] sm:$0xff] }
 0x295   : > { %1093 = vst.msk [vmem:[#allocation4 + $0x41] sm:$0x1] %vm1074_vm7, %v1085_v2  ;;  %1161 = vrot.lane.b32.xlu1 %v1106_v13, %s5386_s1  ;;  %v1102_v16 = vld [vmem:[#allocation4 + $0x18] sm:$0xff]  ;;  %v1104_v24 = vld [vmem:[#allocation4 + $0x28] sm:$0x3] }
 0x296   : > { %v1086_v15 = vld [vmem:[#allocation4 + $0x58] sm:$0x1]  ;;  %v1109_v51 = vld [vmem:[#allocation4 + $0x50] sm:$0xff] }
 0x297   : > { %1167 = vrot.lane.b32.xlu0 %v1109_v51, %s5386_s1  ;;  %1094 = vst.msk [vmem:[#allocation4 + $0x59] sm:$0x1] %vm1074_vm7, %v1086_v15 }
 0x298   : > { %v1105_v12 = vld [vmem:[#allocation4 + $0x30] sm:$0xff] }
 0x299   : > { %1173 = vrot.lane.b32.xlu1 %v1112_v30, %s5386_s1  ;;  %v1108_v21 = vld [vmem:[#allocation4 + $0x48] sm:$0xff] }
 0x29b   : > { %1179 = vrot.lane.b32.xlu0 %v1115_v28, %s5386_s1 }
 0x29c   : > { %v1107_v14 = vld [vmem:[#allocation4 + $0x40] sm:$0x3] }
 0x29d   : > { %1185 = vrot.lane.b32.xlu1 %v1118_v45, %s5386_s1 }
 0x29e   : > { %v1110_v56 = vld [vmem:[#allocation4 + $0x58] sm:$0x3] }
 0x29f   : > { %1191 = vrot.lane.b32.xlu0 %v1121_v23, %s5386_s1 }
 0x2a1   : > { %1153 = vrot.lane.b32.xlu1 %v1102_v16, %s5386_s1 }
 0x2a3   : > { %1147 = vrot.lane.b32.xlu0 %v1099_v52, %s5386_s1 }
 0x2a5   : > { %1157 = vrot.lane.b32.xlu1 %v1104_v24, %s5386_s1 }
 0x2a7   : > { %1151 = vrot.lane.b32.xlu0 %v1101_v58, %s5386_s1 }
 0x2a9   : > { %1165 = vrot.lane.b32.xlu1 %v1108_v21, %s5386_s1 }
 0x2ab   : > { %1159 = vrot.lane.b32.xlu0 %v1105_v12, %s5386_s1 }
 0x2ad   : > { %1169 = vrot.lane.b32.xlu1 %v1110_v56, %s5386_s1 }
 0x2af   : > { %1163 = vrot.lane.b32.xlu0 %v1107_v14, %s5386_s1 }
 0x2b1   : > { %1177 = vrot.lane.b32.xlu1 %v1114_v59, %s5386_s1 }
 0x2b3   : > { %1171 = vrot.lane.b32.xlu0 %v1111_v55, %s5386_s1 }
 0x2b5   : > { %1181 = vrot.lane.b32.xlu1 %v1116_v25, %s5386_s1 }
 0x2b7   : > { %1175 = vrot.lane.b32.xlu0 %v1113_v32, %s5386_s1  ;;  %v1398_v32 = vstv %s4057_s30  ;;  %s4368_s30 = sld [smem:[#allocation12]] }
 0x2b9   : > { %1189 = vrot.lane.b32.xlu1 %v1120_v46, %s5386_s1  ;;  %v1412_v46 = vstv %s4060_s12  ;;  %s4375_s12 = sld [smem:[#allocation12 + $0x284]] }
 0x2bb   : > { %1183 = vrot.lane.b32.xlu0 %v1117_v20, %s5386_s1 }
 0x2bd   : > { %1193 = vrot.lane.b32.xlu1 %v1122_v22, %s5386_s1 }
 0x2bf   : > { %1187 = vrot.lane.b32.xlu0 %v1119_v27, %s5386_s1 }
 0x2fb   : > { %v1150_v54 = vpop.permute.xlu1 %1149 }
 0x2fc   : > { %1221 = vst.msk [vmem:[#allocation4 + $0x8] sm:$0xff] %vm1219_vm8, %v1150_v54 }
 0x300   : > { %v1156_v42 = vpop.permute.xlu0 %1155 }
 0x301   : > { %1225 = vst.msk [vmem:[#allocation4 + $0x20] sm:$0xff] %vm1219_vm8, %v1156_v42 }
 0x303   : > { %v1246_v39 = vld [vmem:[#allocation4 + $0x8] sm:$0xff] }
 0x304   : > { %1295 = vrot.lane.b32.xlu1 %v1246_v39, %s3142_s16  ;;  %v1508_v39 = vstv %s4064_s15  ;;  %s4386_s15 = sld [smem:[#allocation12 + $0x285]] }
 0x307   : > { %v1162_v29 = vpop.permute.xlu1 %1161 }
 0x308   : > { %v1249_v63 = vld [vmem:[#allocation4 + $0x20] sm:$0xff]  ;;  %1228 = vst.msk [vmem:[#allocation4 + $0x38] sm:$0xff] %vm1219_vm8, %v1162_v29 }
 0x309   : > { %v1168_v11 = vpop.permute.xlu0 %1167  ;;  %1301 = vrot.lane.b32.xlu0 %v1249_v63, %s3142_s16 }
 0x30a   : > { %1231 = vst.msk [vmem:[#allocation4 + $0x50] sm:$0xff] %vm1219_vm8, %v1168_v11 }
 0x30b   : > { %v1174_v36 = vpop.permute.xlu1 %1173 }
 0x30c   : > { %1234 = vst.msk [vmem:[#allocation4 + $0x68] sm:$0xff] %vm1219_vm8, %v1174_v36 }
 0x30d   : > { %v1180_v53 = vpop.permute.xlu0 %1179 }
 0x30e   : > { %1237 = vst.msk [vmem:[#allocation4 + $0x80] sm:$0xff] %vm1219_vm8, %v1180_v53  ;;  %v1522_v53 = vstv %s4070_s19  ;;  %s4395_s19 = sld [smem:[#allocation12 + $0x1]] }
 0x30f   : > { %v1186_v34 = vpop.permute.xlu1 %1185  ;;  %v1252_v35 = vld [vmem:[#allocation4 + $0x38] sm:$0xff] }
 0x310   : > { %1240 = vst.msk [vmem:[#allocation4 + $0x98] sm:$0xff] %vm1219_vm8, %v1186_v34  ;;  %1307 = vrot.lane.b32.xlu1 %v1252_v35, %s3142_s16  ;;  %v1618_v35 = vstv %s4081_s26  ;;  %s4397_s26 = sld [smem:[#allocation12 + $0x180]] }
 0x311   : > { %v1192_v57 = vpop.permute.xlu0 %1191  ;;  %v1255_v26 = vld [vmem:[#allocation4 + $0x50] sm:$0xff] }
 0x312   : > { %1243 = vst.msk [vmem:[#allocation4 + $0xb0] sm:$0xff] %vm1219_vm8, %v1192_v57  ;;  %1313 = vrot.lane.b32.xlu0 %v1255_v26, %s3142_s16 }
 0x313   : > { %v1154_v41 = vpop.permute.xlu1 %1153  ;;  %v1258_v50 = vld [vmem:[#allocation4 + $0x68] sm:$0xff] }
 0x314   : > { %1224 = vst.msk [vmem:[#allocation4 + $0x18] sm:$0xff] %vm1219_vm8, %v1154_v41  ;;  %1319 = vrot.lane.b32.xlu1 %v1258_v50, %s3142_s16  ;;  %v1632_v50 = vstv %s4090_s24  ;;  %s4407_s24 = sld [smem:[#allocation12 + $0x206]] }
 0x315   : > { %v1148_v38 = vpop.permute.xlu0 %1147  ;;  %v1261_v62 = vld [vmem:[#allocation4 + $0x80] sm:$0xff] }
 0x316   : > { %1220 = vst.msk [vmem:[#allocation4] sm:$0xff] %vm1219_vm8, %v1148_v38  ;;  %1325 = vrot.lane.b32.xlu0 %v1261_v62, %s3142_s16 }
 0x317   : > { %v1158_v40 = vpop.permute.xlu1 %1157  ;;  %v1264_v48 = vld [vmem:[#allocation4 + $0x98] sm:$0xff] }
 0x318   : > { %1226 = vst.msk [vmem:[#allocation4 + $0x28] sm:$0x3] %vm1222_vm9, %v1158_v40  ;;  %1331 = vrot.lane.b32.xlu1 %v1264_v48, %s3142_s16 }
 0x319   : > { %v1152_v49 = vpop.permute.xlu0 %1151  ;;  %v1267_v37 = vld [vmem:[#allocation4 + $0xb0] sm:$0xff] }
 0x31a   : > { %1223 = vst.msk [vmem:[#allocation4 + $0x10] sm:$0x3] %vm1222_vm9, %v1152_v49  ;;  %1337 = vrot.lane.b32.xlu0 %v1267_v37, %s3142_s16 }
 0x31b   : > { %v1166_v61 = vpop.permute.xlu1 %1165  ;;  %v1248_v31 = vld [vmem:[#allocation4 + $0x18] sm:$0xff] }
 0x31c   : > { %1230 = vst.msk [vmem:[#allocation4 + $0x48] sm:$0xff] %vm1219_vm8, %v1166_v61  ;;  %1299 = vrot.lane.b32.xlu1 %v1248_v31, %s3142_s16 }
 0x31d   : > { %v1160_v18 = vpop.permute.xlu0 %1159  ;;  %v1245_v19 = vld [vmem:[#allocation4] sm:$0xff] }
 0x31e   : > { %1227 = vst.msk [vmem:[#allocation4 + $0x30] sm:$0xff] %vm1219_vm8, %v1160_v18  ;;  %1293 = vrot.lane.b32.xlu0 %v1245_v19, %s3142_s16  ;;  %v1728_v18 = vstv %s4101_s18  ;;  %s4418_s18 = sld [smem:[#allocation12 + $0x286]] }
 0x31f   : > { %v1170_v60 = vpop.permute.xlu1 %1169  ;;  %v1250_v47 = vld [vmem:[#allocation4 + $0x28] sm:$0x3] }
 0x320   : > { %1232 = vst.msk [vmem:[#allocation4 + $0x58] sm:$0x3] %vm1222_vm9, %v1170_v60  ;;  %1303 = vrot.lane.b32.xlu1 %v1250_v47, %s3142_s16  ;;  %v1838_v47 = vstv %s4110_s22  ;;  %s4427_s22 = sld [smem:[#allocation12 + $0x2]] }
 0x321   : > { %v1164_v17 = vpop.permute.xlu0 %1163  ;;  %v1247_v43 = vld [vmem:[#allocation4 + $0x10] sm:$0x3] }
 0x322   : > { %1229 = vst.msk [vmem:[#allocation4 + $0x40] sm:$0x3] %vm1222_vm9, %v1164_v17  ;;  %1297 = vrot.lane.b32.xlu0 %v1247_v43, %s3142_s16 }
 0x323   : > { %v1178_v44 = vpop.permute.xlu1 %1177  ;;  %v1254_v9 = vld [vmem:[#allocation4 + $0x48] sm:$0xff] }
 0x324   : > { %1236 = vst.msk [vmem:[#allocation4 + $0x78] sm:$0xff] %vm1219_vm8, %v1178_v44  ;;  %1311 = vrot.lane.b32.xlu1 %v1254_v9, %s3142_s16 }
 0x325   : > { %v1172_v10 = vpop.permute.xlu0 %1171  ;;  %v1251_v33 = vld [vmem:[#allocation4 + $0x30] sm:$0xff] }
 0x326   : > { %1233 = vst.msk [vmem:[#allocation4 + $0x60] sm:$0xff] %vm1219_vm8, %v1172_v10  ;;  %1305 = vrot.lane.b32.xlu0 %v1251_v33, %s3142_s16 }
 0x327   : > { %v1182_v51 = vpop.permute.xlu1 %1181  ;;  %v1256_v13 = vld [vmem:[#allocation4 + $0x58] sm:$0x3] }
 0x328   : > { %1238 = vst.msk [vmem:[#allocation4 + $0x88] sm:$0x3] %vm1222_vm9, %v1182_v51  ;;  %1315 = vrot.lane.b32.xlu1 %v1256_v13, %s3142_s16  ;;  %v1434_v13 = vstv %s4123_s11  ;;  %s4445_s11 = sld [smem:[#allocation12 + $0x207]] }
 0x329   : > { %v1176_v15 = vpop.permute.xlu0 %1175  ;;  %v1253_v2 = vld [vmem:[#allocation4 + $0x40] sm:$0x3] }
 0x32a   : > { %1235 = vst.msk [vmem:[#allocation4 + $0x70] sm:$0x3] %vm1222_vm9, %v1176_v15  ;;  %1309 = vrot.lane.b32.xlu0 %v1253_v2, %s3142_s16  ;;  %v1948_v2 = vstv %s4121_s23  ;;  %s4430_s23 = sld [smem:[#allocation12 + $0x181]] }
 0x32b   : > { %v1190_v23 = vpop.permute.xlu1 %1189  ;;  %v1260_v45 = vld [vmem:[#allocation4 + $0x78] sm:$0xff] }
 0x32c   : > { %1242 = vst.msk [vmem:[#allocation4 + $0xa8] sm:$0xff] %vm1219_vm8, %v1190_v23  ;;  %1323 = vrot.lane.b32.xlu1 %v1260_v45, %s3142_s16 }
 0x32d   : > { %v1184_v28 = vpop.permute.xlu0 %1183  ;;  %v1257_v30 = vld [vmem:[#allocation4 + $0x60] sm:$0xff] }
 0x32e   : > { %1239 = vst.msk [vmem:[#allocation4 + $0x90] sm:$0xff] %vm1219_vm8, %v1184_v28  ;;  %1317 = vrot.lane.b32.xlu0 %v1257_v30, %s3142_s16 }
 0x32f   : > { %v1194_v58 = vpop.permute.xlu1 %1193  ;;  %v1262_v24 = vld [vmem:[#allocation4 + $0x88] sm:$0x3] }
 0x330   : > { %1244 = vst.msk [vmem:[#allocation4 + $0xb8] sm:$0x3] %vm1222_vm9, %v1194_v58  ;;  %1327 = vrot.lane.b32.xlu1 %v1262_v24, %s3142_s16 }
 0x331   : > { %v1188_v52 = vpop.permute.xlu0 %1187  ;;  %v1259_v16 = vld [vmem:[#allocation4 + $0x70] sm:$0x3] }
 0x332   : > { %1241 = vst.msk [vmem:[#allocation4 + $0xa0] sm:$0x3] %vm1222_vm9, %v1188_v52  ;;  %1321 = vrot.lane.b32.xlu0 %v1259_v16, %s3142_s16  ;;  %v1852_v52 = vstv %s4137_s21  ;;  %v1448_v16 = vstv %s4139_s10  ;;  %s4460_s21 = sld [smem:[#allocation12 + $0x384]]  ;;  %s4467_s10 = sld [smem:[#allocation12 + $0x3]] }
 0x333   : > { %v1266_v21 = vld [vmem:[#allocation4 + $0xa8] sm:$0xff] }
 0x334   : > { %1335 = vrot.lane.b32.xlu1 %v1266_v21, %s3142_s16 }
 0x335   : > { %v1263_v12 = vld [vmem:[#allocation4 + $0x90] sm:$0xff] }
 0x336   : > { %1329 = vrot.lane.b32.xlu0 %v1263_v12, %s3142_s16 }
 0x337   : > { %v1268_v56 = vld [vmem:[#allocation4 + $0xb8] sm:$0x3] }
 0x338   : > { %1339 = vrot.lane.b32.xlu1 %v1268_v56, %s3142_s16 }
 0x339   : > { %v1265_v14 = vld [vmem:[#allocation4 + $0xa0] sm:$0x3] }
 0x33a   : > { %1333 = vrot.lane.b32.xlu0 %v1265_v14, %s3142_s16  ;;  %v1962_v14 = vstv %s4157_s17  ;;  %s4220_s16 = sld [smem:[#allocation12 + $0x107]]  ;;  %s4470_s17 = sld [smem:[#allocation12 + $0x182]] }
 0x376   : > { %v1296_v55 = vpop.permute.xlu1 %1295 }
 0x377   : > { %1367 = vst.msk [vmem:[#allocation4 + $0x8] sm:$0xff] %vm1365_vm10, %v1296_v55  ;;  %v1470_v55 = vstv %s4159_s20  ;;  %s4485_s20 = sld [smem:[#allocation12 + $0x385]] }
 0x37b   : > { %v1302_v59 = vpop.permute.xlu0 %1301 }
 0x37c   : > { %1371 = vst.msk [vmem:[#allocation4 + $0x20] sm:$0xff] %vm1365_vm10, %v1302_v59 }
 0x37e   : > { %v4066_v25 = vld [vmem:[#allocation4 + $0x8] sm:$0xff] }
 0x37f   : > { %v1400_v20 = vmul.f32 %v1398_v32, %v4066_v25  ;;  %v1414_v54 = vmul.f32 %v1412_v46, %v4066_v25 }
 0x381   : > { %1405 = vrot.lane.b32.xlu1 %v1400_v20, %s5386_s1 }
 0x382   : > { %v1308_v22 = vpop.permute.xlu1 %1307 }
 0x383   : > { %1374 = vst.msk [vmem:[#allocation4 + $0x38] sm:$0xff] %vm1365_vm10, %v1308_v22  ;;  %v4078_v42 = vld [vmem:[#allocation4 + $0x20] sm:$0xff]  ;;  %v2058_v22 = vstv %s4173_s8  ;;  %s4495_s8 = sld [smem:[#allocation12 + $0x4]] }
 0x384   : > { %v1314_v27 = vpop.permute.xlu0 %1313  ;;  %v1510_v29 = vmul.f32 %v1508_v39, %v4078_v42  ;;  %v1524_v26 = vmul.f32 %v1522_v53, %v4078_v42 }
 0x385   : > { %1377 = vst.msk [vmem:[#allocation4 + $0x50] sm:$0xff] %vm1365_vm10, %v1314_v27  ;;  %1419 = vrot.lane.b32.xlu1 %v1414_v54, %s5387_s25  ;;  %v1484_v54 = vstv %s4175_s9  ;;  %s4502_s9 = sld [smem:[#allocation12 + $0x287]] }
 0x386   : > { %v1320_v63 = vpop.permute.xlu1 %1319 }
 0x387   : > { %1380 = vst.msk [vmem:[#allocation4 + $0x68] sm:$0xff] %vm1365_vm10, %v1320_v63 }
 0x388   : > { %v1326_v11 = vpop.permute.xlu0 %1325 }
 0x389   : > { %1383 = vst.msk [vmem:[#allocation4 + $0x80] sm:$0xff] %vm1365_vm10, %v1326_v11  ;;  %1515 = vrot.lane.b32.xlu1 %v1510_v29, %s5386_s1 }
 0x38a   : > { %v1332_v57 = vpop.permute.xlu1 %1331  ;;  %v4098_v34 = vld [vmem:[#allocation4 + $0x38] sm:$0xff] }
 0x38b   : > { %1386 = vst.msk [vmem:[#allocation4 + $0x98] sm:$0xff] %vm1365_vm10, %v1332_v57  ;;  %v1620_v41 = vmul.f32 %v1618_v35, %v4098_v34  ;;  %v1634_v40 = vmul.f32 %v1632_v50, %v4098_v34  ;;  %v2072_v57 = vstv %s4191_s13  ;;  %s4511_s13 = sld [smem:[#allocation12 + $0x5]] }
 0x38c   : > { %v1338_v36 = vpop.permute.xlu0 %1337  ;;  %v4118_v48 = vld [vmem:[#allocation4 + $0x50] sm:$0xff] }
 0x38d   : > { %1389 = vst.msk [vmem:[#allocation4 + $0xb0] sm:$0xff] %vm1365_vm10, %v1338_v36  ;;  %1529 = vrot.lane.b32.xlu1 %v1524_v26, %s5387_s25  ;;  %v1730_v17 = vmul.f32 %v1728_v18, %v4118_v48 }
 0x38e   : > { %v1300_v62 = vpop.permute.xlu1 %1299  ;;  %v4134_v60 = vld [vmem:[#allocation4 + $0x68] sm:$0xff] }
 0x38f   : > { %1370 = vst.msk [vmem:[#allocation4 + $0x18] sm:$0xff] %vm1365_vm10, %v1300_v62  ;;  %v1840_v44 = vmul.f32 %v1838_v47, %v4134_v60  ;;  %v1854_v12 = vmul.f32 %v1852_v52, %v4134_v60 }
 0x390   : > { %v1294_v38 = vpop.permute.xlu0 %1293  ;;  %v4151_v15 = vld [vmem:[#allocation4 + $0x80] sm:$0xff] }
 0x391   : > { %1366 = vst.msk [vmem:[#allocation4] sm:$0xff] %vm1365_vm10, %v1294_v38  ;;  %1625 = vrot.lane.b32.xlu1 %v1620_v41, %s5386_s1  ;;  %v1950_v23 = vmul.f32 %v1948_v2, %v4151_v15  ;;  %v1964_v20 = vmul.f32 %v1962_v14, %v4151_v15 }
 0x392   : > { %v1304_v37 = vpop.permute.xlu1 %1303  ;;  %v4203_v27 = vld [vmem:[#allocation4 + $0x98] sm:$0xff] }
 0x393   : > { %1372 = vst.msk [vmem:[#allocation4 + $0x28] sm:$0x3] %vm1368_vm11, %v1304_v37  ;;  %v2060_v29 = vmul.f32 %v2058_v22, %v4203_v27  ;;  %v2074_v38 = vmul.f32 %v2072_v57, %v4203_v27 }
 0x394   : > { %v1298_v49 = vpop.permute.xlu0 %1297  ;;  %v4232_v41 = vld [vmem:[#allocation4 + $0xb0] sm:$0xff] }
 0x395   : > { %1369 = vst.msk [vmem:[#allocation4 + $0x10] sm:$0x3] %vm1368_vm11, %v1298_v49  ;;  %1639 = vrot.lane.b32.xlu1 %v1634_v40, %s5387_s25  ;;  %v2168_v49 = vstv %s4207_s14  ;;  %s4528_s14 = sld [smem:[#allocation12 + $0x404]] }
 0x396   : > { %v1312_v31 = vpop.permute.xlu1 %1311  ;;  %v4218_v26 = vld [vmem:[#allocation4 + $0x18] sm:$0xff]  ;;  %v2170_v37 = vmul.f32 %v2168_v49, %v4232_v41 }
 0x397   : > { %1376 = vst.msk [vmem:[#allocation4 + $0x48] sm:$0xff] %vm1365_vm10, %v1312_v31  ;;  %v1509_v62 = vmul.f32 %v1508_v39, %v4218_v26  ;;  %v1523_v40 = vmul.f32 %v1522_v53, %v4218_v26  ;;  %v4246_v31 = vld [vmem:[#allocation4 + $0x19] sm:$0xff]  ;;  %v1544_v39 = vstv %s4222_s2  ;;  %s4549_s2 = sld [smem:[#allocation12 + $0x405]] }
 0x398   : > { %v1306_v19 = vpop.permute.xlu0 %1305  ;;  %v4126_v61 = vld [vmem:[#allocation4] sm:$0xff] }
 0x399   : > { %1373 = vst.msk [vmem:[#allocation4 + $0x30] sm:$0xff] %vm1365_vm10, %v1306_v19  ;;  %v1399_v43 = vmul.f32 %v1398_v32, %v4126_v61  ;;  %1735 = vrot.lane.b32.xlu1 %v1730_v17, %s5386_s1  ;;  %v1413_v9 = vmul.f32 %v1412_v46, %v4126_v61  ;;  %v4154_v51 = vld [vmem:[#allocation4 + $0x1] sm:$0xff]  ;;  %v2182_v19 = vstv %s4220_s16  ;;  %s4543_s16 = sld [smem:[#allocation12 + $0x300]] }
 0x39a   : > { %v1316_v33 = vpop.permute.xlu1 %1315  ;;  %v1435_v45 = vmul.f32 %v1434_v13, %v4154_v51  ;;  %v1449_v21 = vmul.f32 %v1448_v16, %v4154_v51  ;;  %v4188_v56 = vld [vmem:[#allocation4 + $0x2] sm:$0xff]  ;;  %v2184_v17 = vmul.f32 %v2182_v19, %v4232_v41 }
 0x39b   : > { %1403 = vrot.lane.b32.xlu0 %v1399_v43, %s5386_s1  ;;  %1378 = vst.msk [vmem:[#allocation4 + $0x58] sm:$0x3] %vm1368_vm11, %v1316_v33  ;;  %v1471_v46 = vmul.f32 %v1470_v55, %v4188_v56  ;;  %v1485_v36 = vmul.f32 %v1484_v54, %v4188_v56  ;;  %v1545_v43 = vmul.f32 %v1544_v39, %v4246_v31 }
 0x39c   : > { %v1310_v10 = vpop.permute.xlu0 %1309  ;;  %v4258_v33 = vld [vmem:[#allocation4 + $0x9] sm:$0xff] }
 0x39d   : > { %1375 = vst.msk [vmem:[#allocation4 + $0x40] sm:$0x3] %vm1368_vm11, %v1310_v10  ;;  %1845 = vrot.lane.b32.xlu1 %v1840_v44, %s5386_s1  ;;  %v1558_v10 = vstv %s4235_s3  ;;  %v1436_v44 = vmul.f32 %v1434_v13, %v4258_v33  ;;  %s4558_s3 = sld [smem:[#allocation12 + $0x184]] }
 0x39e   : > { %v1324_v30 = vpop.permute.xlu1 %1323  ;;  %v1559_v53 = vmul.f32 %v1558_v10, %v4246_v31 }
 0x39f   : > { %1417 = vrot.lane.b32.xlu0 %v1413_v9, %s5387_s25  ;;  %1382 = vst.msk [vmem:[#allocation4 + $0x78] sm:$0xff] %vm1365_vm10, %v1324_v30  ;;  %v4268_v9 = vld [vmem:[#allocation4 + $0x1a] sm:$0xff] }
 0x3a0   : > { %v1318_v28 = vpop.permute.xlu0 %1317 }
 0x3a1   : > { %1379 = vst.msk [vmem:[#allocation4 + $0x60] sm:$0xff] %vm1365_vm10, %v1318_v28  ;;  %1955 = vrot.lane.b32.xlu1 %v1950_v23, %s5386_s1  ;;  %v1580_v28 = vstv %s4249_s4  ;;  %v1450_v23 = vmul.f32 %v1448_v16, %v4258_v33  ;;  %s4571_s4 = sld [smem:[#allocation12 + $0x386]] }
 0x3a2   : > { %v1328_v24 = vpop.permute.xlu1 %1327  ;;  %v1581_v30 = vmul.f32 %v1580_v28, %v4268_v9 }
 0x3a3   : > { %1439 = vrot.lane.b32.xlu0 %v1435_v45, %s5386_s1  ;;  %1384 = vst.msk [vmem:[#allocation4 + $0x88] sm:$0x3] %vm1368_vm11, %v1328_v24  ;;  %v1594_v45 = vstv %s4260_s5  ;;  %s4579_s5 = sld [smem:[#allocation12 + $0x6]] }
 0x3a4   : > { %v1322_v58 = vpop.permute.xlu0 %1321  ;;  %v1595_v13 = vmul.f32 %v1594_v45, %v4268_v9 }
 0x3a5   : > { %1381 = vst.msk [vmem:[#allocation4 + $0x70] sm:$0x3] %vm1368_vm11, %v1322_v58  ;;  %1859 = vrot.lane.b32.xlu1 %v1854_v12, %s5387_s25  ;;  %v4278_v58 = vld [vmem:[#allocation4 + $0xa] sm:$0xff] }
 0x3a6   : > { %v1336_v32 = vpop.permute.xlu1 %1335  ;;  %v1472_v24 = vmul.f32 %v1470_v55, %v4278_v58  ;;  %v4286_v12 = vld [vmem:[#allocation4 + $0x30] sm:$0xff]  ;;  %v1486_v16 = vmul.f32 %v1484_v54, %v4278_v58 }
 0x3a7   : > { %1453 = vrot.lane.b32.xlu0 %v1449_v21, %s5387_s25  ;;  %1388 = vst.msk [vmem:[#allocation4 + $0xa8] sm:$0xff] %vm1365_vm10, %v1336_v32  ;;  %v1619_v21 = vmul.f32 %v1618_v35, %v4286_v12  ;;  %v1633_v32 = vmul.f32 %v1632_v50, %v4286_v12 }
 0x3a8   : > { %v1330_v59 = vpop.permute.xlu0 %1329 }
 0x3a9   : > { %1385 = vst.msk [vmem:[#allocation4 + $0x90] sm:$0xff] %vm1365_vm10, %v1330_v59  ;;  %1969 = vrot.lane.b32.xlu1 %v1964_v20, %s5387_s25  ;;  %v4296_v59 = vld [vmem:[#allocation4 + $0x21] sm:$0xff]  ;;  %v4306_v20 = vld [vmem:[#allocation4 + $0x31] sm:$0xff] }
 0x3aa   : > { %v1340_v63 = vpop.permute.xlu1 %1339  ;;  %v1546_v55 = vmul.f32 %v1544_v39, %v4296_v59  ;;  %v1560_v35 = vmul.f32 %v1558_v10, %v4296_v59  ;;  %v4332_v39 = vld [vmem:[#allocation4 + $0x39] sm:$0xff]  ;;  %v4338_v10 = vld [vmem:[#allocation4 + $0x48] sm:$0xff] }
 0x3ab   : > { %1475 = vrot.lane.b32.xlu0 %v1471_v46, %s5386_s1  ;;  %1390 = vst.msk [vmem:[#allocation4 + $0xb8] sm:$0x3] %vm1368_vm11, %v1340_v63  ;;  %v1654_v46 = vstv %s4288_s6  ;;  %v1668_v63 = vstv %s4298_s7  ;;  %s4581_s6 = sld [smem:[#allocation12 + $0x185]]  ;;  %s4587_s7 = sld [smem:[#allocation12 + $0x406]] }
 0x3ac   : > { %v1334_v11 = vpop.permute.xlu0 %1333  ;;  %v1655_v54 = vmul.f32 %v1654_v46, %v4306_v20 }
 0x3ad   : > { %1387 = vst.msk [vmem:[#allocation4 + $0xa0] sm:$0x3] %vm1368_vm11, %v1334_v11  ;;  %2065 = vrot.lane.b32.xlu1 %v2060_v29, %s5386_s1  ;;  %v4315_v11 = vld [vmem:[#allocation4 + $0x22] sm:$0xff]  ;;  %v1669_v29 = vmul.f32 %v1668_v63, %v4306_v20 }
 0x3ae   : > { %v1582_v50 = vmul.f32 %v1580_v28, %v4315_v11  ;;  %v4346_v28 = vld [vmem:[#allocation4 + $0x3a] sm:$0xff] }
 0x3af   : > { %1489 = vrot.lane.b32.xlu0 %v1485_v36, %s5387_s25  ;;  %v4324_v36 = vld [vmem:[#allocation4 + $0x32] sm:$0xff] }
 0x3b1   : > { %2079 = vrot.lane.b32.xlu1 %v2074_v38, %s5387_s25  ;;  %v1690_v38 = vstv %s4309_s27  ;;  %s4609_s27 = sld [smem:[#allocation12 + $0x387]] }
 0x3b3   : > { %1513 = vrot.lane.b32.xlu0 %v1509_v62, %s5386_s1  ;;  %v1596_v62 = vmul.f32 %v1594_v45, %v4315_v11 }
 0x3b5   : > { %2175 = vrot.lane.b32.xlu1 %v2170_v37, %s5386_s1  ;;  %v1691_v37 = vmul.f32 %v1690_v38, %v4324_v36 }
 0x3b7   : > { %1527 = vrot.lane.b32.xlu0 %v1523_v40, %s5387_s25  ;;  %v1704_v40 = vstv %s4318_s0  ;;  %s4620_s0 = sld [smem:[#allocation12 + $0x7]] }
 0x3b9   : > { %2189 = vrot.lane.b32.xlu1 %v2184_v17, %s5387_s25  ;;  %v1705_v17 = vmul.f32 %v1704_v40, %v4324_v36 }
 0x3bb   : > { %1549 = vrot.lane.b32.xlu0 %v1545_v43, %s5386_s1  ;;  %v1656_v43 = vmul.f32 %v1654_v46, %v4332_v39 }
 0x3bd   : > { %1441 = vrot.lane.b32.xlu1 %v1436_v44, %s5386_s1  ;;  %v1670_v44 = vmul.f32 %v1668_v63, %v4332_v39  ;;  %v1888_v63 = vstv %s4375_s12  ;;  %s4668_s12 = sld [smem:[#allocation12 + $0x187]] }
 0x3bf   : > { %1563 = vrot.lane.b32.xlu0 %v1559_v53, %s5387_s25  ;;  %v1729_v53 = vmul.f32 %v1728_v18, %v4338_v10  ;;  %v4358_v18 = vld [vmem:[#allocation4 + $0x78] sm:$0xff] }
 0x3c0   : > { %v1963_v46 = vmul.f32 %v1962_v14, %v4358_v18 }
 0x3c1   : > { %1455 = vrot.lane.b32.xlu1 %v1450_v23, %s5387_s25  ;;  %v1692_v23 = vmul.f32 %v1690_v38, %v4346_v28 }
 0x3c3   : > { %1585 = vrot.lane.b32.xlu0 %v1581_v30, %s5386_s1  ;;  %v4348_v30 = vld [vmem:[#allocation4 + $0x60] sm:$0xff] }
 0x3c4   : > { %v1839_v45 = vmul.f32 %v1838_v47, %v4348_v30  ;;  %v4370_v47 = vld [vmem:[#allocation4 + $0x69] sm:$0xff] }
 0x3c5   : > { %1477 = vrot.lane.b32.xlu1 %v1472_v24, %s5386_s1  ;;  %v1949_v24 = vmul.f32 %v1948_v2, %v4358_v18  ;;  %v4381_v2 = vld [vmem:[#allocation4 + $0x81] sm:$0xff] }
 0x3c7   : > { %1599 = vrot.lane.b32.xlu0 %v1595_v13, %s5387_s25  ;;  %v1706_v13 = vmul.f32 %v1704_v40, %v4346_v28 }
 0x3c9   : > { %1491 = vrot.lane.b32.xlu1 %v1486_v16, %s5387_s25  ;;  %v1874_v16 = vstv %s4352_s28  ;;  %s4623_s28 = sld [smem:[#allocation12 + $0x186]] }
 0x3cb   : > { %1623 = vrot.lane.b32.xlu0 %v1619_v21, %s5386_s1  ;;  %v1853_v21 = vmul.f32 %v1852_v52, %v4348_v30 }
 0x3cd   : > { %1551 = vrot.lane.b32.xlu1 %v1546_v55, %s5386_s1  ;;  %v1876_v55 = vmul.f32 %v1874_v16, %v4370_v47 }
 0x3cf   : > { %1637 = vrot.lane.b32.xlu0 %v1633_v32, %s5387_s25  ;;  %v1984_v32 = vstv %s4362_s29  ;;  %s4636_s29 = sld [smem:[#allocation12 + $0x407]] }
 0x3d0   : > { %v1986_v52 = vmul.f32 %v1984_v32, %v4381_v2 }
 0x3d1   : > { %1565 = vrot.lane.b32.xlu1 %v1560_v35, %s5387_s25  ;;  %v1394_v35 = vstv %s4368_s30  ;;  %s4652_s30 = sld [smem:[#allocation12 + $0x103]] }
 0x3d2   : > { %v1396_v14 = vmul.f32 %v1394_v35, %v4066_v25 }
 0x3d3   : > { %1659 = vrot.lane.b32.xlu0 %v1655_v54, %s5386_s1  ;;  %v4399_v54 = vld [vmem:[#allocation4 + $0x90] sm:$0xff] }
 0x3d4   : > { %v2059_v38 = vmul.f32 %v2058_v22, %v4399_v54  ;;  %v1504_v22 = vstv %s4395_s19  ;;  %s4681_s19 = sld [smem:[#allocation12 + $0x203]] }
 0x3d5   : > { %1587 = vrot.lane.b32.xlu1 %v1582_v50, %s5386_s1 }
 0x3d7   : > { %1673 = vrot.lane.b32.xlu0 %v1669_v29, %s5387_s25  ;;  %v1890_v29 = vmul.f32 %v1888_v63, %v4370_v47 }
 0x3d9   : > { %1601 = vrot.lane.b32.xlu1 %v1596_v62, %s5387_s25 }
 0x3db   : > { %1695 = vrot.lane.b32.xlu0 %v1691_v37, %s5386_s1  ;;  %v1998_v37 = vstv %s4386_s15  ;;  %s4675_s15 = sld [smem:[#allocation12 + $0x301]] }
 0x3dc   : > { %v2000_v40 = vmul.f32 %v1998_v37, %v4381_v2 }
 0x3dd   : > { %1661 = vrot.lane.b32.xlu1 %v1656_v43, %s5386_s1  ;;  %v1428_v43 = vstv %s4397_s26  ;;  %s4697_s26 = sld [smem:[#allocation12 + $0x283]] }
 0x3df   : > { %1709 = vrot.lane.b32.xlu0 %v1705_v17, %s5387_s25  ;;  %v2073_v17 = vmul.f32 %v2072_v57, %v4399_v54  ;;  %v1506_v57 = vmul.f32 %v1504_v22, %v4078_v42  ;;  %v2108_v42 = vstv %s4418_s18  ;;  %s4732_s18 = sld [smem:[#allocation12 + $0x403]] }
 0x3e1   : > { %1675 = vrot.lane.b32.xlu1 %v1670_v44, %s5387_s25  ;;  %v4432_v44 = vld [vmem:[#allocation4 + $0xa8] sm:$0xff] }
 0x3e3   : > { %1733 = vrot.lane.b32.xlu0 %v1729_v53, %s5386_s1 }
 0x3e5   : > { %1697 = vrot.lane.b32.xlu1 %v1692_v23, %s5386_s1  ;;  %v4434_v23 = vld [vmem:[#allocation4 + $0x99] sm:$0xff] }
 0x3e7   : > { %1843 = vrot.lane.b32.xlu0 %v1839_v45, %s5386_s1  ;;  %v1430_v45 = vmul.f32 %v1428_v43, %v4258_v33 }
 0x3e9   : > { %1711 = vrot.lane.b32.xlu1 %v1706_v13, %s5387_s25  ;;  %v2094_v13 = vstv %s4407_s24  ;;  %s4715_s24 = sld [smem:[#allocation12 + $0x383]] }
 0x3ea   : > { %v2096_v33 = vmul.f32 %v2094_v13, %v4434_v23 }
 0x3eb   : > { %1953 = vrot.lane.b32.xlu0 %v1949_v24, %s5386_s1 }
 0x3ed   : > { %1881 = vrot.lane.b32.xlu1 %v1876_v55, %s5386_s1  ;;  %v2169_v55 = vmul.f32 %v2168_v49, %v4432_v44  ;;  %v2110_v49 = vmul.f32 %v2108_v42, %v4434_v23 }
 0x3ef   : > { %1857 = vrot.lane.b32.xlu0 %v1853_v21, %s5387_s25 }
 0x3f1   : > { %1991 = vrot.lane.b32.xlu1 %v1986_v52, %s5386_s1  ;;  %v4455_v52 = vld [vmem:[#allocation4 + $0x61] sm:$0xff] }
 0x3f3   : > { %1967 = vrot.lane.b32.xlu0 %v1963_v46, %s5387_s25  ;;  %v1406_v50 = vpop.permute.xlu1 %1405 }
 0x3f4   : > { %v1410_v62 = vadd.f32 %v1406_v50, %v1396_v14  ;;  %v1875_v50 = vmul.f32 %v1874_v16, %v4455_v52 }
 0x3f5   : > { %1895 = vrot.lane.b32.xlu1 %v1890_v29, %s5387_s25  ;;  %v5256_v29 = vstv %s4427_s22 }
 0x3f7   : > { %2063 = vrot.lane.b32.xlu0 %v2059_v38, %s5386_s1  ;;  %v1420_v25 = vpop.permute.xlu1 %1419  ;;  %v1538_v38 = vstv %s4430_s23  ;;  %s4768_s23 = sld [smem:[#allocation12 + $0x302]] }
 0x3f8   : > { %v1424_v53 = vadd.f32 %v1420_v25, %v1410_v62  ;;  %v4472_v25 = vld [vmem:[#allocation4 + $0x79] sm:$0xff]  ;;  %v1540_v16 = vmul.f32 %v1538_v38, %v4296_v59 }
 0x3f9   : > { %2005 = vrot.lane.b32.xlu1 %v2000_v40, %s5387_s25  ;;  %v4474_v40 = vld [vmem:[#allocation4 + $0xb1] sm:$0xff]  ;;  %v1985_v59 = vmul.f32 %v1984_v32, %v4472_v25 }
 0x3fa   : > { %v4447_v24 = vadd.f32 %v1430_v45, %v1424_v53  ;;  %v2204_v53 = vstv %s4445_s11  ;;  %s4848_s11 = sld [smem:[#allocation12 + $0x307]] }
 0x3fb   : > { %2077 = vrot.lane.b32.xlu0 %v2073_v17, %s5387_s25  ;;  %v1516_v21 = vpop.permute.xlu1 %1515  ;;  %v1616_v17 = vmul.f32 %v5256_v29, %v4098_v34  ;;  %v4497_v34 = vld [vmem:[#allocation4 + $0x6a] sm:$0xff] }
 0x3fc   : > { %v1520_v46 = vadd.f32 %v1516_v21, %v1506_v57  ;;  %v2206_v21 = vmul.f32 %v2204_v53, %v4474_v40 }
 0x3fd   : > { %2101 = vrot.lane.b32.xlu1 %v2096_v33, %s5386_s1  ;;  %v1910_v33 = vstv %s4460_s21  ;;  %s4853_s21 = sld [smem:[#allocation13 + $0x4]] }
 0x3ff   : > { %2173 = vrot.lane.b32.xlu0 %v2169_v55, %s5386_s1  ;;  %v1530_v14 = vpop.permute.xlu1 %1529 }
 0x400   : > { %v1534_v62 = vadd.f32 %v1530_v14, %v1520_v46  ;;  %v2183_v46 = vmul.f32 %v2182_v19, %v4432_v44  ;;  %v1912_v14 = vmul.f32 %v1910_v33, %v4497_v34 }
 0x401   : > { %2115 = vrot.lane.b32.xlu1 %v2110_v49, %s5387_s25  ;;  %v5253_v49 = vstv %s4470_s17 }
 0x402   : > { %v4487_v45 = vadd.f32 %v1540_v16, %v1534_v62  ;;  %v4514_v16 = vld [vmem:[#allocation4 + $0x82] sm:$0xff] }
 0x403   : > { %1879 = vrot.lane.b32.xlu0 %v1875_v50, %s5386_s1  ;;  %v1626_v57 = vpop.permute.xlu1 %1625  ;;  %v5251_v50 = vstv %s4467_s10 }
 0x404   : > { %v1630_v55 = vadd.f32 %v1626_v57, %v1616_v17  ;;  %v1650_v17 = vmul.f32 %v5253_v49, %v4332_v39  ;;  %v1726_v19 = vmul.f32 %v5251_v50, %v4118_v48  ;;  %v1395_v57 = vmul.f32 %v1394_v35, %v4126_v61 }
 0x405   : > { %2211 = vrot.lane.b32.xlu1 %v2206_v21, %s5386_s1  ;;  %v1924_v49 = vstv %s4528_s14  ;;  %s4888_s14 = sld [smem:[#allocation13 + $0x1]] }
 0x407   : > { %1989 = vrot.lane.b32.xlu0 %v1985_v59, %s5386_s1  ;;  %v1640_v32 = vpop.permute.xlu1 %1639  ;;  %v2020_v59 = vstv %s4485_s20  ;;  %s4876_s20 = sld [smem:[#allocation13 + $0x7]] }
 0x408   : > { %v1644_v62 = vadd.f32 %v1640_v32, %v1630_v55  ;;  %v1889_v32 = vmul.f32 %v1888_v63, %v4455_v52 }
 0x409   : > { %1917 = vrot.lane.b32.xlu1 %v1912_v14, %s5386_s1  ;;  %v5252_v14 = vstv %s4495_s8 }
 0x40a   : > { %v4530_v21 = vadd.f32 %v1650_v17, %v1644_v62  ;;  %v1836_v35 = vmul.f32 %v5252_v14, %v4134_v60  ;;  %v2218_v62 = vstv %s4502_s9  ;;  %v1429_v60 = vmul.f32 %v1428_v43, %v4154_v51  ;;  %s4882_s9 = sld [smem:[#allocation13]] }
 0x40b   : > { %2187 = vrot.lane.b32.xlu0 %v2183_v46, %s5387_s25  ;;  %v1736_v55 = vpop.permute.xlu1 %1735  ;;  %v2022_v46 = vmul.f32 %v2020_v59, %v4514_v16  ;;  %v1926_v43 = vmul.f32 %v1924_v49, %v4497_v34 }
 0x40c   : > { %v4539_v50 = vadd.f32 %v1736_v55, %v1726_v19  ;;  %v1999_v19 = vmul.f32 %v1998_v37, %v4472_v25  ;;  %v5254_v55 = vstv %s4511_s13 }
 0x40d   : > { %v1404_v39 = vpop.permute.xlu0 %1403  ;;  %2027 = vrot.lane.b32.xlu1 %v2022_v46, %s5386_s1  ;;  %v4563_v46 = vld [vmem:[#allocation4 + $0x91] sm:$0xff]  ;;  %v1946_v37 = vmul.f32 %v5254_v55, %v4151_v15 }
 0x40e   : > { %v1409_v61 = vadd.f32 %v1404_v39, %v1395_v57  ;;  %v2220_v57 = vmul.f32 %v2218_v62, %v4474_v40  ;;  %v2095_v51 = vmul.f32 %v2094_v13, %v4563_v46 }
 0x40f   : > { %1893 = vrot.lane.b32.xlu0 %v1889_v32, %s5387_s25  ;;  %v1846_v63 = vpop.permute.xlu1 %1845 }
 0x410   : > { %v1850_v39 = vadd.f32 %v1846_v63, %v1836_v35 }
 0x411   : > { %v1418_v17 = vpop.permute.xlu0 %1417  ;;  %2225 = vrot.lane.b32.xlu1 %v2220_v57, %s5387_s25 }
 0x412   : > { %v1423_v32 = vadd.f32 %v1418_v17, %v1409_v61  ;;  %v1464_v17 = vstv %s4543_s16  ;;  %s4892_s16 = sld [smem:[#allocation15]] }
 0x413   : > { %2003 = vrot.lane.b32.xlu0 %v1999_v19, %s5387_s25  ;;  %v1956_v61 = vpop.permute.xlu1 %1955  ;;  %v2034_v19 = vstv %s4549_s2  ;;  %s4894_s2 = sld [smem:[#allocation15 + $0x1]] }
 0x414   : > { %v1431_v14 = vadd.f32 %v1429_v60, %v1423_v32  ;;  %v1960_v15 = vadd.f32 %v1956_v61, %v1946_v37  ;;  %v2109_v32 = vmul.f32 %v2108_v42, %v4563_v46  ;;  %v2036_v60 = vmul.f32 %v2034_v19, %v4514_v16 }
 0x415   : > { %v1440_v35 = vpop.permute.xlu0 %1439  ;;  %1931 = vrot.lane.b32.xlu1 %v1926_v43, %s5387_s25  ;;  %v4601_v43 = vld [vmem:[#allocation4 + $0x9a] sm:$0xff] }
 0x416   : > { %v1445_v63 = vadd.f32 %v1440_v35, %v1431_v14  ;;  %v5255_v14 = vstv %s4558_s3  ;;  %v1465_v35 = vmul.f32 %v1464_v17, %v4188_v56 }
 0x417   : > { %2099 = vrot.lane.b32.xlu0 %v2095_v51, %s5386_s1  ;;  %v1860_v13 = vpop.permute.xlu1 %1859  ;;  %v4599_v51 = vld [vmem:[#allocation4 + $0xa9] sm:$0xff]  ;;  %v1870_v42 = vmul.f32 %v5255_v14, %v4370_v47  ;;  %v2144_v14 = vstv %s4587_s7  ;;  %s4911_s7 = sld [smem:[#allocation15 + $0x82]] }
 0x418   : > { %v1864_v37 = vadd.f32 %v1860_v13, %v1850_v39  ;;  %v2130_v39 = vstv %s4571_s4  ;;  %s4901_s4 = sld [smem:[#allocation15 + $0x3]] }
 0x419   : > { %v1454_v57 = vpop.permute.xlu0 %1453  ;;  %2041 = vrot.lane.b32.xlu1 %v2036_v60, %s5387_s25  ;;  %v2132_v47 = vmul.f32 %v2130_v39, %v4601_v43  ;;  %v1978_v60 = vstv %s4581_s6  ;;  %s4909_s6 = sld [smem:[#allocation15 + $0x81]] }
 0x41a   : > { %v1459_v61 = vadd.f32 %v1454_v57, %v1445_v63  ;;  %v4611_v63 = vadd.f32 %v1870_v42, %v1864_v37  ;;  %v2205_v57 = vmul.f32 %v2204_v53, %v4599_v51  ;;  %v1980_v42 = vmul.f32 %v1978_v60, %v4381_v2 }
 0x41b   : > { %2113 = vrot.lane.b32.xlu0 %v2109_v32, %s5387_s25  ;;  %v1970_v56 = vpop.permute.xlu1 %1969  ;;  %v5257_v32 = vstv %s4579_s5 }
 0x41c   : > { %v1467_v55 = vadd.f32 %v1465_v35, %v1459_v61  ;;  %v1974_v61 = vadd.f32 %v1970_v56, %v1960_v15  ;;  %v4625_v35 = vld [vmem:[#allocation4 + $0x62] sm:$0xff]  ;;  %v2056_v53 = vmul.f32 %v5257_v32, %v4203_v27  ;;  %v2146_v56 = vmul.f32 %v2144_v14, %v4601_v43 }
 0x41d   : > { %v1476_v13 = vpop.permute.xlu0 %1475  ;;  %2137 = vrot.lane.b32.xlu1 %v2132_v47, %s5386_s1  ;;  %v1911_v2 = vmul.f32 %v1910_v33, %v4625_v35  ;;  %v4650_v47 = vld [vmem:[#allocation4 + $0xb2] sm:$0xff]  ;;  %v1505_v33 = vmul.f32 %v1504_v22, %v4218_v26 }
 0x41e   : > { %v1481_v37 = vadd.f32 %v1476_v13, %v1467_v55  ;;  %v4638_v29 = vadd.f32 %v1980_v42, %v1974_v61  ;;  %v2240_v61 = vstv %s4609_s27  ;;  %s4913_s27 = sld [smem:[#allocation15 + $0x83]] }
 0x41f   : > { %2209 = vrot.lane.b32.xlu0 %v2205_v57, %s5386_s1  ;;  %v2066_v55 = vpop.permute.xlu1 %2065  ;;  %v4648_v57 = vld [vmem:[#allocation4 + $0x7a] sm:$0xff] }
 0x420   : > { %v2070_v13 = vadd.f32 %v2066_v55, %v2056_v53  ;;  %v2021_v53 = vmul.f32 %v2020_v59, %v4648_v57  ;;  %v2242_v55 = vmul.f32 %v2240_v61, %v4650_v47  ;;  %v2254_v59 = vstv %s4636_s29  ;;  %s4939_s29 = sld [smem:[#allocation15 + $0x101]] }
 0x421   : > { %v1490_v15 = vpop.permute.xlu0 %1489  ;;  %2151 = vrot.lane.b32.xlu1 %v2146_v56, %s5387_s25 }
 0x422   : > { %v4646_v27 = vadd.f32 %v1490_v15, %v1481_v37  ;;  %v5258_v15 = vstv %s4620_s0 }
 0x423   : > { %1915 = vrot.lane.b32.xlu0 %v1911_v2, %s5386_s1  ;;  %v2080_v42 = vpop.permute.xlu1 %2079  ;;  %v5260_v2 = vstv %s4623_s28  ;;  %v2166_v22 = vmul.f32 %v5258_v15, %v4232_v41  ;;  %v1539_v41 = vmul.f32 %v1538_v38, %v4246_v31  ;;  %v1742_v15 = vstv %s4652_s30  ;;  %s4945_s30 = sld [smem:[#allocation15 + $0x102]] }
 0x424   : > { %v2084_v56 = vadd.f32 %v2080_v42, %v2070_v13  ;;  %v2090_v26 = vmul.f32 %v5260_v2, %v4434_v23  ;;  %v2219_v23 = vmul.f32 %v2218_v62, %v4599_v51  ;;  %v1744_v31 = vmul.f32 %v1742_v15, %v4118_v48 }
 0x425   : > { %v1514_v37 = vpop.permute.xlu0 %1513  ;;  %2247 = vrot.lane.b32.xlu1 %v2242_v55, %s5386_s1  ;;  %v5259_v38 = vstv %s4668_s12 }
 0x426   : > { %v1519_v32 = vadd.f32 %v1514_v37, %v1505_v33  ;;  %v4683_v13 = vadd.f32 %v2090_v26, %v2084_v56  ;;  %v2256_v37 = vmul.f32 %v2254_v59, %v4650_v47 }
 0x427   : > { %2025 = vrot.lane.b32.xlu0 %v2021_v53, %s5386_s1  ;;  %v2176_v33 = vpop.permute.xlu1 %2175 }
 0x428   : > { %v2180_v53 = vadd.f32 %v2176_v33, %v2166_v22  ;;  %v1925_v22 = vmul.f32 %v1924_v49, %v4625_v35 }
 0x429   : > { %v1528_v42 = vpop.permute.xlu0 %1527  ;;  %2261 = vrot.lane.b32.xlu1 %v2256_v37, %s5387_s25  ;;  %v1574_v37 = vstv %s4675_s15  ;;  %s4961_s15 = sld [smem:[#allocation13 + $0x3]] }
 0x42a   : > { %v1533_v55 = vadd.f32 %v1528_v42, %v1519_v32  ;;  %v4706_v42 = vld [vmem:[#allocation4 + $0x51] sm:$0xff]  ;;  %v1576_v2 = vmul.f32 %v1574_v37, %v4315_v11 }
 0x42b   : > { %2223 = vrot.lane.b32.xlu0 %v2219_v23, %s5387_s25  ;;  %v2190_v62 = vpop.permute.xlu1 %2189  ;;  %v2200_v23 = vmul.f32 %v5259_v38, %v4474_v40 }
 0x42c   : > { %v1541_v56 = vadd.f32 %v1539_v41, %v1533_v55  ;;  %v2194_v32 = vadd.f32 %v2190_v62, %v2180_v53  ;;  %v1764_v55 = vstv %s4681_s19  ;;  %v2035_v41 = vmul.f32 %v2034_v19, %v4648_v57  ;;  %s4976_s19 = sld [smem:[#allocation15 + $0x180]] }
 0x42d   : > { %v1550_v26 = vpop.permute.xlu0 %1549  ;;  %1749 = vrot.lane.b32.xlu1 %v1744_v31, %s5387_s25  ;;  %v1766_v40 = vmul.f32 %v1764_v55, %v4706_v42 }
 0x42e   : > { %v1555_v33 = vadd.f32 %v1550_v26, %v1541_v56  ;;  %v4717_v49 = vadd.f32 %v2200_v23, %v2194_v32  ;;  %v1575_v26 = vmul.f32 %v1574_v37, %v4268_v9  ;;  %v1778_v32 = vstv %s4697_s26  ;;  %s4979_s26 = sld [smem:[#allocation15 + $0x181]] }
 0x42f   : > { %1929 = vrot.lane.b32.xlu0 %v1925_v22, %s5387_s25  ;;  %v1442_v48 = vpop.permute.xlu1 %1441  ;;  %v4727_v22 = vld [vmem:[#allocation4 + $0x92] sm:$0xff] }
 0x430   : > { %v1446_v56 = vadd.f32 %v1442_v48, %v4447_v24  ;;  %v2131_v24 = vmul.f32 %v2130_v39, %v4727_v22 }
 0x431   : > { %v1564_v53 = vpop.permute.xlu0 %1563  ;;  %1771 = vrot.lane.b32.xlu1 %v1766_v40, %s5386_s1 }
 0x432   : > { %v1569_v62 = vadd.f32 %v1564_v53, %v1555_v33  ;;  %v1780_v33 = vmul.f32 %v1778_v32, %v4706_v42  ;;  %v1466_v53 = vmul.f32 %v1464_v17, %v4278_v58  ;;  %v4752_v58 = vld [vmem:[#allocation4 + $0xaa] sm:$0xff]  ;;  %v5388_v17 = vstv %s4427_s22  ;;  %s4836_s22 = sld [smem:[#allocation12 + $0x306]] }
 0x433   : > { %2039 = vrot.lane.b32.xlu0 %v2035_v41, %s5387_s25  ;;  %v1456_v19 = vpop.permute.xlu1 %1455  ;;  %v4741_v41 = vld [vmem:[#allocation4 + $0x52] sm:$0xff] }
 0x434   : > { %v1577_v31 = vadd.f32 %v1575_v26, %v1569_v62  ;;  %v1460_v9 = vadd.f32 %v1456_v19, %v1446_v56  ;;  %v1800_v62 = vstv %s4715_s24  ;;  %v2145_v56 = vmul.f32 %v2144_v14, %v4727_v22  ;;  %s4982_s24 = sld [smem:[#allocation15 + $0x182]] }
 0x435   : > { %v1586_v23 = vpop.permute.xlu0 %1585  ;;  %1785 = vrot.lane.b32.xlu1 %v1780_v33, %s5387_s25  ;;  %v1814_v33 = vstv %s4732_s18  ;;  %v2241_v14 = vmul.f32 %v2240_v61, %v4752_v58  ;;  %s4985_s18 = sld [smem:[#allocation15 + $0x183]] }
 0x436   : > { %v1591_v48 = vadd.f32 %v1586_v23, %v1577_v31  ;;  %v1468_v40 = vadd.f32 %v1466_v53, %v1460_v9  ;;  %v1802_v31 = vmul.f32 %v1800_v62, %v4741_v41 }
 0x437   : > { %2135 = vrot.lane.b32.xlu0 %v2131_v24, %s5386_s1  ;;  %v1478_v26 = vpop.permute.xlu1 %1477  ;;  %v1615_v24 = vmul.f32 %v5388_v17, %v4286_v12  ;;  %v5389_v17 = vstv %s4470_s17  ;;  %s4868_s17 = sld [smem:[#allocation13 + $0x6]] }
 0x438   : > { %v1482_v19 = vadd.f32 %v1478_v26, %v1468_v40 }
 0x439   : > { %v1600_v39 = vpop.permute.xlu0 %1599  ;;  %1807 = vrot.lane.b32.xlu1 %v1802_v31, %s5386_s1 }
 0x43a   : > { %v4750_v23 = vadd.f32 %v1600_v39, %v1591_v48  ;;  %v1816_v48 = vmul.f32 %v1814_v33, %v4741_v41 }
 0x43b   : > { %2149 = vrot.lane.b32.xlu0 %v2145_v56, %s5387_s25  ;;  %v1492_v9 = vpop.permute.xlu1 %1491  ;;  %v2255_v56 = vmul.f32 %v2254_v59, %v4752_v58  ;;  %v4782_v59 = vld [vmem:[#allocation4 + $0x49] sm:$0xff] }
 0x43c   : > { %v4764_v40 = vadd.f32 %v1492_v9, %v1482_v19  ;;  %v1649_v19 = vmul.f32 %v5389_v17, %v4306_v20 }
 0x43d   : > { %v1624_v53 = vpop.permute.xlu0 %1623  ;;  %1821 = vrot.lane.b32.xlu1 %v1816_v48, %s5387_s25 }
 0x43e   : > { %v1629_v26 = vadd.f32 %v1624_v53, %v1615_v24 }
 0x43f   : > { %2245 = vrot.lane.b32.xlu0 %v2241_v14, %s5386_s1  ;;  %v1552_v12 = vpop.permute.xlu1 %1551  ;;  %v1743_v14 = vmul.f32 %v1742_v15, %v4338_v10 }
 0x440   : > { %v1556_v61 = vadd.f32 %v1552_v12, %v4487_v45  ;;  %v1684_v45 = vstv %s4768_s23  ;;  %s4987_s23 = sld [smem:[#allocation16]] }
 0x441   : > { %v1638_v39 = vpop.permute.xlu0 %1637  ;;  %v1685_v17 = vmul.f32 %v1684_v45, %v4324_v36 }
 0x442   : > { %v1643_v31 = vadd.f32 %v1638_v39, %v1629_v26  ;;  %v1765_v39 = vmul.f32 %v1764_v55, %v4782_v59 }
 0x443   : > { %2259 = vrot.lane.b32.xlu0 %v2255_v56, %s5387_s25  ;;  %v1566_v9 = vpop.permute.xlu1 %1565 }
 0x444   : > { %v1651_v24 = vadd.f32 %v1649_v19, %v1643_v31  ;;  %v1570_v48 = vadd.f32 %v1566_v9, %v1556_v61  ;;  %v1779_v61 = vmul.f32 %v1778_v32, %v4782_v59  ;;  %v5390_v32 = vstv %s4467_s10  ;;  %s4857_s10 = sld [smem:[#allocation13 + $0x5]] }
 0x445   : > { %v1660_v53 = vpop.permute.xlu0 %1659 }
 0x446   : > { %v1665_v38 = vadd.f32 %v1660_v53, %v1651_v24  ;;  %v1578_v26 = vadd.f32 %v1576_v2, %v1570_v48  ;;  %v4794_v24 = vld [vmem:[#allocation4 + $0x4a] sm:$0xff] }
 0x447   : > { %1747 = vrot.lane.b32.xlu0 %v1743_v14, %s5387_s25  ;;  %v1588_v12 = vpop.permute.xlu1 %1587  ;;  %v1801_v36 = vmul.f32 %v1800_v62, %v4794_v24  ;;  %v1725_v14 = vmul.f32 %v5390_v32, %v4338_v10  ;;  %v5391_v62 = vstv %s4495_s8  ;;  %s4880_s8 = sld [smem:[#allocation12 + $0x183]] }
 0x448   : > { %v1592_v56 = vadd.f32 %v1588_v12, %v1578_v26  ;;  %v1815_v12 = vmul.f32 %v1814_v33, %v4794_v24 }
 0x449   : > { %v1674_v20 = vpop.permute.xlu0 %1673 }
 0x44a   : > { %v1679_v31 = vadd.f32 %v1674_v20, %v1665_v38 }
 0x44b   : > { %1769 = vrot.lane.b32.xlu0 %v1765_v39, %s5386_s1  ;;  %v1602_v11 = vpop.permute.xlu1 %1601 }
 0x44c   : > { %v1687_v15 = vadd.f32 %v1685_v17, %v1679_v31  ;;  %v4792_v19 = vadd.f32 %v1602_v11, %v1592_v56  ;;  %v1686_v56 = vmul.f32 %v1684_v45, %v4346_v28  ;;  %v1835_v31 = vmul.f32 %v5391_v62, %v4348_v30 }
 0x44d   : > { %v1696_v37 = vpop.permute.xlu0 %1695 }
 0x44e   : > { %v1701_v2 = vadd.f32 %v1696_v37, %v1687_v15  ;;  %v5392_v37 = vstv %s4511_s13  ;;  %s4885_s13 = sld [smem:[#allocation12 + $0x303]] }
 0x44f   : > { %1783 = vrot.lane.b32.xlu0 %v1779_v61, %s5387_s25  ;;  %v1662_v55 = vpop.permute.xlu1 %1661  ;;  %v1945_v33 = vmul.f32 %v5392_v37, %v4358_v18 }
 0x450   : > { %v1666_v9 = vadd.f32 %v1662_v55, %v4530_v21 }
 0x451   : > { %v1710_v38 = vpop.permute.xlu0 %1709 }
 0x452   : > { %v4799_v53 = vadd.f32 %v1710_v38, %v1701_v2 }
 0x453   : > { %1805 = vrot.lane.b32.xlu0 %v1801_v36, %s5386_s1  ;;  %v1676_v48 = vpop.permute.xlu1 %1675  ;;  %s4818_s1 = sld [smem:[#allocation12 + $0x304]]  ;;  %v5393_v36 = vstv %s4558_s3  ;;  %s4899_s3 = sld [smem:[#allocation15 + $0x2]] }
 0x454   : > { %v1680_v20 = vadd.f32 %v1676_v48, %v1666_v9  ;;  %v1869_v9 = vmul.f32 %v5393_v36, %v4455_v52  ;;  %v5394_v52 = vstv %s4579_s5  ;;  %s4907_s5 = sld [smem:[#allocation15 + $0x80]] }
 0x455   : > { %v1734_v26 = vpop.permute.xlu0 %1733 }
 0x456   : > { %v4806_v39 = vadd.f32 %v1734_v26, %v1725_v14  ;;  %v1688_v21 = vadd.f32 %v1686_v56, %v1680_v20  ;;  %v1979_v26 = vmul.f32 %v1978_v60, %v4472_v25 }
 0x457   : > { %1819 = vrot.lane.b32.xlu0 %v1815_v12, %s5387_s25  ;;  %v1698_v17 = vpop.permute.xlu1 %1697  ;;  %s4823_s25 = sld [smem:[#allocation12 + $0x305]] }
 0x458   : > { %v1702_v11 = vadd.f32 %v1698_v17, %v1688_v21  ;;  %v2055_v17 = vmul.f32 %v5394_v52, %v4399_v54 }
 0x459   : > { %v1844_v15 = vpop.permute.xlu0 %1843  ;;  %v1904_v62 = vstv %s4818_s1  ;;  %s4989_s1 = sld [smem:[#allocation16 + $0x1]] }
 0x45a   : > { %v1849_v10 = vadd.f32 %v1844_v15, %v1835_v31  ;;  %v1906_v15 = vmul.f32 %v1904_v62, %v4497_v34 }
 0x45b   : > { %v1712_v61 = vpop.permute.xlu1 %1711 }
 0x45c   : > { %v4816_v55 = vadd.f32 %v1712_v61, %v1702_v11 }
 0x45d   : > { %v1954_v2 = vpop.permute.xlu0 %1953  ;;  %v2014_v25 = vstv %s4823_s25  ;;  %s5001_s25 = sld [smem:[#allocation16 + $0x2]] }
 0x45e   : > { %v1959_v28 = vadd.f32 %v1954_v2, %v1945_v33  ;;  %v2016_v2 = vmul.f32 %v2014_v25, %v4514_v16  ;;  %v5396_v16 = vstv %s4620_s0  ;;  %s4929_s0 = sld [smem:[#allocation13 + $0x2]] }
 0x45f   : > { %v1882_v45 = vpop.permute.xlu1 %1881 }
 0x460   : > { %v1886_v12 = vadd.f32 %v1882_v45, %v4611_v63 }
 0x461   : > { %v1858_v38 = vpop.permute.xlu0 %1857 }
 0x462   : > { %v1863_v30 = vadd.f32 %v1858_v38, %v1849_v10 }
 0x463   : > { %v1992_v14 = vpop.permute.xlu1 %1991 }
 0x464   : > { %v1871_v32 = vadd.f32 %v1869_v9, %v1863_v30  ;;  %v1996_v11 = vadd.f32 %v1992_v14, %v4638_v29  ;;  %v2124_v14 = vstv %s4836_s22  ;;  %s5003_s22 = sld [smem:[#allocation16 + $0x3]] }
 0x465   : > { %v1968_v48 = vpop.permute.xlu0 %1967 }
 0x466   : > { %v1973_v18 = vadd.f32 %v1968_v48, %v1959_v28  ;;  %v5395_v28 = vstv %s4623_s28  ;;  %s4937_s28 = sld [smem:[#allocation15 + $0x100]] }
 0x467   : > { %v1896_v56 = vpop.permute.xlu1 %1895  ;;  %v2089_v54 = vmul.f32 %v5395_v28, %v4563_v46 }
 0x468   : > { %v1981_v20 = vadd.f32 %v1979_v26, %v1973_v18  ;;  %v1900_v31 = vadd.f32 %v1896_v56, %v1886_v12  ;;  %v2126_v18 = vmul.f32 %v2124_v14, %v4601_v43 }
 0x469   : > { %v2064_v21 = vpop.permute.xlu0 %2063 }
 0x46a   : > { %v2069_v10 = vadd.f32 %v2064_v21, %v2055_v17  ;;  %v1908_v37 = vadd.f32 %v1906_v15, %v1900_v31  ;;  %v2165_v21 = vmul.f32 %v5396_v16, %v4432_v44  ;;  %v1905_v44 = vmul.f32 %v1904_v62, %v4625_v35 }
 0x46b   : > { %v2006_v33 = vpop.permute.xlu1 %2005  ;;  %v2048_v16 = vstv %s4857_s10 }
 0x46c   : > { %v2010_v63 = vadd.f32 %v2006_v33, %v1996_v11 }
 0x46d   : > { %v2078_v61 = vpop.permute.xlu0 %2077 }
 0x46e   : > { %v2083_v60 = vadd.f32 %v2078_v61, %v2069_v10  ;;  %v2018_v45 = vadd.f32 %v2016_v2, %v2010_v63 }
 0x46f   : > { %v2102_v38 = vpop.permute.xlu1 %2101 }
 0x470   : > { %v2091_v34 = vadd.f32 %v2089_v54, %v2083_v60  ;;  %v2106_v30 = vadd.f32 %v2102_v38, %v4683_v13  ;;  %v5397_v13 = vstv %s4668_s12  ;;  %s4948_s12 = sld [smem:[#allocation15 + $0x103]] }
 0x471   : > { %v2174_v29 = vpop.permute.xlu0 %2173  ;;  %v2199_v15 = vmul.f32 %v5397_v13, %v4599_v51  ;;  %v2234_v51 = vstv %s4848_s11  ;;  %s5398_s11 = sld [smem:[#allocation34_spill]] }
 0x472   : > { %v2179_v46 = vadd.f32 %v2174_v29, %v2165_v21  ;;  %v2236_v29 = vmul.f32 %v2234_v51, %v4650_v47 }
 0x473   : > { %v2116_v36 = vpop.permute.xlu1 %2115 }
 0x474   : > { %v2120_v48 = vadd.f32 %v2116_v36, %v2106_v30  ;;  %v2015_v30 = vmul.f32 %v2014_v25, %v4648_v57  ;;  %v2125_v25 = vmul.f32 %v2124_v14, %v4727_v22 }
 0x475   : > { %v1880_v9 = vpop.permute.xlu0 %1879 }
 0x476   : > { %v2128_v26 = vadd.f32 %v2126_v18, %v2120_v48  ;;  %v1885_v11 = vadd.f32 %v1880_v9, %v1871_v32 }
 0x477   : > { %v2212_v12 = vpop.permute.xlu1 %2211 }
 0x478   : > { %v2216_v63 = vadd.f32 %v2212_v12, %v4717_v49  ;;  %v1938_v49 = vstv %s4853_s21  ;;  %s5399_s21 = sshll.u32 %s5398_s11, 6 }
 0x479   : > { %v1990_v56 = vpop.permute.xlu0 %1989  ;;  %s5058_s10 = scalar_lea.vmem [#allocation18], %s5399_s21 }
 0x47a   : > { %v1995_v60 = vadd.f32 %v1990_v56, %v1981_v20 }
 0x47b   : > { %v1918_v31 = vpop.permute.xlu1 %1917 }
 0x47c   : > { %v1922_v36 = vadd.f32 %v1918_v31, %v1908_v37 }
 0x47d   : > { %v2188_v52 = vpop.permute.xlu0 %2187 }
 0x47e   : > { %v2193_v17 = vadd.f32 %v2188_v52, %v2179_v46 }
 0x47f   : > { %v2028_v33 = vpop.permute.xlu1 %2027 }
 0x480   : > { %v2201_v10 = vadd.f32 %v2199_v15, %v2193_v17  ;;  %v2032_v18 = vadd.f32 %v2028_v33, %v2018_v45  ;;  %v2158_v15 = vstv %s4868_s17  ;;  %s5400_s17 = sld [smem:[#allocation29_spill]] }
 0x481   : > { %v1894_v43 = vpop.permute.xlu0 %1893 }
 0x482   : > { %v1899_v61 = vadd.f32 %v1894_v43, %v1885_v11 }
 0x483   : > { %v2226_v28 = vpop.permute.xlu1 %2225 }
 0x484   : > { %v1907_v2 = vadd.f32 %v1905_v44, %v1899_v61  ;;  %v2230_v32 = vadd.f32 %v2226_v28, %v2216_v63 }
 0x485   : > { %v2004_v54 = vpop.permute.xlu0 %2003 }
 0x486   : > { %v2009_v38 = vadd.f32 %v2004_v54, %v1995_v60  ;;  %v2238_v9 = vadd.f32 %v2236_v29, %v2230_v32  ;;  %v2268_v54 = vstv %s4876_s20  ;;  %s2772_s20 = sshll.u32 %s5400_s17, 10 }
 0x487   : > { %v1932_v20 = vpop.permute.xlu1 %1931 }
 0x488   : > { %v4862_v35 = vadd.f32 %v2015_v30, %v2009_v38  ;;  %v1936_v48 = vadd.f32 %v1932_v20, %v1922_v36  ;;  %v2235_v20 = vmul.f32 %v2234_v51, %v4752_v58 }
 0x489   : > { %v2100_v62 = vpop.permute.xlu0 %2099 }
 0x48a   : > { %v1940_v12 = vadd.f32 %v1938_v49, %v1936_v48  ;;  %v2105_v56 = vadd.f32 %v2100_v62, %v2091_v34 }
 0x48b   : > { %v2042_v21 = vpop.permute.xlu1 %2041 }
 0x48c   : > { %v2735_v57 = vmul.f32 -1.442695, %v1940_v12  ;;  %v2046_v47 = vadd.f32 %v2042_v21, %v2032_v18 }
 0x48d   : > { %v2114_v46 = vpop.permute.xlu0 %2113 }
 0x48e   : > { %v2119_v37 = vadd.f32 %v2114_v46, %v2105_v56  ;;  %2891 = vpow2.f32 %v2735_v57  ;;  %v2050_v31 = vadd.f32 %v2048_v16, %v2046_v47  ;;  %v1758_v56 = vstv %s4880_s8  ;;  %s2464_s8 = sshll.u32 %s5058_s10, 4  ;;  %s5114_s8 = int_to_ptr.vmem [resolvable:$true] %s2464_s8 }
 0x48f   : > { %v2138_v45 = vpop.permute.xlu1 %2137  ;;  %v1760_v21 = vmul.f32 %v1758_v56, %v4706_v42  ;;  %v1498_v47 = vstv %s4882_s9  ;;  %s5401_s9 = sld [smem:[#allocation32_spill]] }
 0x490   : > { %v4873_v52 = vadd.f32 %v2125_v25, %v2119_v37  ;;  %v2737_v34 = vmul.f32 -1.442695, %v2050_v31  ;;  %v2142_v13 = vadd.f32 %v2138_v45, %v2128_v26  ;;  %v1500_v31 = vadd.f32 %v1498_v47, %v4764_v40 }
 0x491   : > { %v2210_v17 = vpop.permute.xlu0 %2209 }
 0x492   : > { %2893 = vpow2.f32 %v2737_v34  ;;  %v2215_v28 = vadd.f32 %v2210_v17, %v2201_v10  ;;  %v1794_v34 = vstv %s4885_s13 }
 0x493   : > { %v2152_v11 = vpop.permute.xlu1 %2151 }
 0x494   : > { %v2156_v43 = vadd.f32 %v2152_v11, %v2142_v13  ;;  %v1608_v13 = vstv %s4888_s14 }
 0x495   : > { %v1916_v33 = vpop.permute.xlu0 %1915  ;;  %p5403_p0 = scmp.ne.s32.totalorder %s5401_s9, 0 }
 0x496   : > { %v2160_v61 = vadd.f32 %v2158_v15, %v2156_v43  ;;  %v1921_v62 = vadd.f32 %v1916_v33, %v1907_v2 }
 0x497   : > { %v2248_v22 = vpop.permute.xlu1 %2247 }
 0x498   : > { %v2892_v44 = vpop.eup %2891  ;;  %v2739_v63 = vmul.f32 -1.442695, %v2160_v61  ;;  %v2252_v26 = vadd.f32 %v2248_v22, %v2238_v9 }
 0x499   : > { %v2026_v14 = vpop.permute.xlu0 %2025  ;;  %v2278_v60 = vadd.f32 1.0, %v2892_v44  ;;  %v2358_v44 = vstv %s4894_s2 }
 0x49a   : > { %2895 = vpow2.f32 %v2739_v63  ;;  %v2031_v46 = vadd.f32 %v2026_v14, %v4862_v35  ;;  %v2328_v14 = vstv %s4892_s16  ;;  %v2389_v63 = vstv %s4899_s3  ;;  %s5402_s16 = sld [smem:[#allocation65_spill]]  ;;  %s2451_s3 = scalar_lea.sflag [#allocation7], %s5398_s11 }
 0x49b   : > { %2897 = vrcp.f32 %v2278_v60  ;;  %v2262_v32 = vpop.permute.xlu1 %2261 }
 0x49c   : > { %v2894_v29 = vpop.eup %2893  ;;  %v2266_v30 = vadd.f32 %v2262_v32, %v2252_v26  ;;  %v2332_v32 = vstv %s4907_s5  ;;  %s3143_s5 = smov [#allocation18]  }
 0x49d   : > { %v2224_v38 = vpop.permute.xlu0 %2223  ;;  %v2292_v10 = vadd.f32 1.0, %v2894_v29  ;;  %v2393_v29 = vstv %s4911_s7 }
 0x49e   : > { %v2229_v36 = vadd.f32 %v2224_v38, %v2215_v28  ;;  %v2270_v9 = vadd.f32 %v2268_v54, %v2266_v30  ;;  %v2362_v38 = vstv %s4909_s6  ;;  %v2424_v30 = vstv %s4913_s27  ;;  %s3047_s6 = sshll.u32 %s3143_s5, 4  ;;  %s3048_s6 = int_to_ptr.vmem [resolvable:$false] %s3047_s6 }
 0x49f   : > { %2899 = vrcp.f32 %v2292_v10  ;;  %v1750_v18 = vpop.permute.xlu1 %1749  ;;  %s3049_s7 = scalar_lea.vmem %s3048_s6, 2048  ;;  %p3050_p4 = scmp.lt.s32.totalorder %s5114_s8, %s3048_s6 }
 0x4a0   : > { %v4896_v48 = vadd.f32 %v2235_v20, %v2229_v36  ;;  %v2741_v58 = vmul.f32 -1.442695, %v2270_v9  ;;  %v1754_v2 = vadd.f32 %v1750_v18, %v4539_v50  ;;  %s5112_s2 = scalar_lea.hbm %s5402_s16, %s2772_s20 }
 0x4a1   : > { %v1930_v12 = vpop.permute.xlu0 %1929 }
 0x4a2   : > { %v1935_v51 = vadd.f32 %v1930_v12, %v1921_v62  ;;  %2901 = vpow2.f32 %v2741_v58  ;;  %v1762_v57 = vadd.f32 %v1760_v21, %v1754_v2 }
 0x4a3   : > { %v1772_v42 = vpop.permute.xlu1 %1771 }
 0x4a4   : > { %v1939_v50 = vadd.f32 %v1938_v49, %v1935_v51  ;;  %v2896_v25 = vpop.eup %2895  ;;  %v1796_v49 = vmul.f32 %v1794_v34, %v4741_v41  ;;  %v1776_v43 = vadd.f32 %v1772_v42, %v1762_v57  ;;  %v1610_v41 = vadd.f32 %v1608_v13, %v4792_v19 }
 0x4a5   : > { %v2040_v37 = vpop.permute.xlu0 %2039  ;;  %v2898_v35 = vpop.eup %2897  ;;  %v2306_v11 = vadd.f32 1.0, %v2896_v25 }
 0x4a6   : > { %v2734_v45 = vmul.f32 -1.442695, %v1939_v50  ;;  %v2045_v17 = vadd.f32 %v2040_v37, %v2031_v46  ;;  %v2284_v33 = vmul.f32 %v2898_v35, %v1500_v31  ;;  %v1718_v31 = vstv %s4929_s0 }
 0x4a7   : > { %v1786_v61 = vpop.permute.xlu1 %1785 }
 0x4a8   : > { %2903 = vpow2.f32 %v2734_v45  ;;  %v2049_v40 = vadd.f32 %v2048_v16, %v2045_v17  ;;  %v1790_v28 = vadd.f32 %v1786_v61, %v1776_v43  ;;  %v2420_v16 = vstv %s4901_s4  ;;  %s3043_s4 = scalar_lea.vmem %s5114_s8, 1024 }
 0x4a9   : > { %2905 = vrcp.f32 %v2306_v11  ;;  %v2136_v22 = vpop.permute.xlu0 %2135  ;;  %v2900_v26 = vpop.eup %2899  ;;  %v2330_v9 = vmul.f32 %v2328_v14, %v2284_v33  ;;  %v2360_v18 = vmul.f32 %v2358_v44, %v2284_v33  ;;  %v2391_v21 = vmul.f32 %v2389_v63, %v2284_v33  ;;  %p3044_p13 = scmp.ne.s32.totalorder %s5114_s8, %s3043_s4  ;;  %p3051_p8 = scmp.lt.s32.totalorder %s3049_s7, %s3043_s4 }
 0x4aa   : > { %v2736_v60 = vmul.f32 -1.442695, %v2049_v40  ;;  %v2298_v19 = vmul.f32 %v2900_v26, %v1610_v41  ;;  %v2141_v36 = vadd.f32 %v2136_v22, %v4873_v52  ;;  %v1798_v20 = vadd.f32 %v1796_v49, %v1790_v28 }
 0x4ab   : > { %v1808_v10 = vpop.permute.xlu1 %1807  ;;  %v2422_v50 = vmul.f32 %v2420_v16, %v2284_v33  ;;  %v1720_v49 = vadd.f32 %v1718_v31, %v4816_v55  ;;  %v2338_v40 = vstv %s4937_s28  ;;  %v2368_v33 = vstv %s4939_s29  ;;  %p3045_p1 = pnand %p3044_p13, %p5403_p0  ;;  %p3052_p10 = por %p3051_p8, %p3050_p4 }
 0x4ac   : > { %2907 = vpow2.f32 %v2736_v60  ;;  %v2902_v12 = vpop.eup %2901  ;;  %v2334_v2 = vmul.f32 %v2332_v32, %v2298_v19  ;;  %v2364_v51 = vmul.f32 %v2362_v38, %v2298_v19  ;;  %v2395_v52 = vmul.f32 %v2393_v29, %v2298_v19 }
 0x4ad   : > { %v2150_v62 = vpop.permute.xlu0 %2149  ;;  %v2320_v46 = vadd.f32 1.0, %v2902_v12  ;;  %v2426_v57 = vmul.f32 %v2424_v30, %v2298_v19  ;;  %v1812_v41 = vadd.f32 %v1808_v10, %v1798_v20  ;;  %v2399_v60 = vstv %s4945_s30  ;;  %p3046_p3 = pneg %p3045_p1 }
 0x4ae   : > { %v2155_v58 = vadd.f32 %v2150_v62, %v2141_v36  ;;  %v2336_v37 = vadd.f32 %v2334_v2, %v2330_v9  ;;  %v2366_v25 = vadd.f32 %v2364_v51, %v2360_v18  ;;  %v2397_v45 = vadd.f32 %v2395_v52, %v2391_v21 }
 0x4af   : > { %2909 = vrcp.f32 %v2320_v46  ;;  %v2428_v17 = vadd.f32 %v2426_v57, %v2422_v50  ;;  %v2430_v28 = vstv %s4948_s12  ;;  %v2344_v57 = vstv %s4976_s19  ;;  %p3053_p11 = pnand %p3052_p10, %p3046_p3 }
 0x4b0   : > { %v2159_v42 = vadd.f32 %v2158_v15, %v2155_v58  ;;  %v1822_v15 = vpop.permute.xlu1 %1821  ;;  %v1828_v58 = vstv %s4961_s15 }
 0x4b1   : > { %v2246_v35 = vpop.permute.xlu0 %2245  ;;  %v1826_v26 = vadd.f32 %v1822_v15, %v1812_v41  ;;  %v1499_v15 = vadd.f32 %v1498_v47, %v4646_v27  ;;  %v2411_v27 = vstv %s5001_s25  ;;  %v2442_v47 = vstv %s5003_s22 }
 0x4b2   : > { %v2904_v11 = vpop.eup %2903  ;;  %v2738_v43 = vmul.f32 -1.442695, %v2159_v42  ;;  %v2251_v19 = vadd.f32 %v2246_v35, %v4896_v48 }
 0x4b3   : > { %v2906_v61 = vpop.eup %2905  ;;  %v2277_v22 = vadd.f32 1.0, %v2904_v11  ;;  %v1830_v42 = vadd.f32 %v1828_v58, %v1826_v26  ;;  %v2436_v11 = vstv %s4985_s18 }
 0x4b4   : > { %v2312_v55 = vmul.f32 %v2906_v61, %v1720_v49  ;;  %2911 = vpow2.f32 %v2738_v43  ;;  %v2350_v61 = vstv %s4987_s23 }
 0x4b5   : > { %2913 = vrcp.f32 %v2277_v22  ;;  %v2260_v36 = vpop.permute.xlu0 %2259 }
 0x4b6   : > { %v2908_v20 = vpop.eup %2907  ;;  %v2340_v10 = vmul.f32 %v2338_v40, %v2312_v55  ;;  %v2370_v62 = vmul.f32 %v2368_v33, %v2312_v55  ;;  %v2401_v9 = vmul.f32 %v2399_v60, %v2312_v55  ;;  %v2432_v18 = vmul.f32 %v2430_v28, %v2312_v55 }
 0x4b7   : > { %v2291_v12 = vadd.f32 1.0, %v2908_v20  ;;  %v2265_v48 = vadd.f32 %v2260_v36, %v2251_v19 }
 0x4b8   : > { %v2342_v2 = vadd.f32 %v2340_v10, %v2336_v37  ;;  %v2372_v51 = vadd.f32 %v2370_v62, %v2366_v25  ;;  %v2403_v21 = vadd.f32 %v2401_v9, %v2397_v45  ;;  %v2434_v46 = vadd.f32 %v2432_v18, %v2428_v17 }
 0x4b9   : > { %2915 = vrcp.f32 %v2291_v12  ;;  %v2269_v52 = vadd.f32 %v2268_v54, %v2265_v48  ;;  %v1748_v50 = vpop.permute.xlu0 %1747  ;;  %v1759_v37 = vmul.f32 %v1758_v56, %v4782_v59  ;;  %v2910_v25 = vpop.eup %2909  ;;  %v2374_v45 = vstv %s4979_s26 }
 0x4ba   : > { %v1753_v35 = vadd.f32 %v1748_v50, %v4806_v39  ;;  %v2405_v17 = vstv %s4982_s24  ;;  %v2326_v54 = vmul.f32 %v2910_v25, %v1830_v42  ;;  %v2380_v39 = vstv %s4989_s1 }
 0x4bb   : > { %v2740_v49 = vmul.f32 -1.442695, %v2269_v52  ;;  %v1609_v12 = vadd.f32 %v1608_v13, %v4750_v23  ;;  %v1795_v23 = vmul.f32 %v1794_v34, %v4794_v24 }
 0x4bc   : > { %v1761_v43 = vadd.f32 %v1759_v37, %v1753_v35  ;;  %v2346_v56 = vmul.f32 %v2344_v57, %v2326_v54  ;;  %v2376_v41 = vmul.f32 %v2374_v45, %v2326_v54  ;;  %v2407_v55 = vmul.f32 %v2405_v17, %v2326_v54 }
 0x4bd   : > { %2917 = vpow2.f32 %v2740_v49  ;;  %v1770_v22 = vpop.permute.xlu0 %1769  ;;  %v2438_v26 = vmul.f32 %v2436_v11, %v2326_v54 }
 0x4be   : > { %v2912_v59 = vpop.eup %2911  ;;  %v1775_v20 = vadd.f32 %v1770_v22, %v1761_v43  ;;  %v2348_v62 = vadd.f32 %v2346_v56, %v2342_v2  ;;  %v2378_v9 = vadd.f32 %v2376_v41, %v2372_v51  ;;  %v2409_v18 = vadd.f32 %v2407_v55, %v2403_v21 }
 0x4bf   : > { %v2914_v19 = vpop.eup %2913  ;;  %v2305_v36 = vadd.f32 1.0, %v2912_v59  ;;  %v2440_v48 = vadd.f32 %v2438_v26, %v2434_v46 }
 0x4c0   : > { %v2283_v10 = vmul.f32 %v2914_v19, %v1499_v15  ;;  %v2352_v50 = vadd.f32 %v2350_v61, %v2348_v62  ;;  %v2382_v42 = vadd.f32 %v2380_v39, %v2378_v9  ;;  %v2413_v35 = vadd.f32 %v2411_v27, %v2409_v18 }
 0x4c1   : > { %2919 = vrcp.f32 %v2305_v36  ;;  %v1784_v52 = vpop.permute.xlu0 %1783  ;;  %v2444_v2 = vadd.f32 %v2442_v47, %v2440_v48 }
 0x4c2   : > { %v1789_v37 = vadd.f32 %v1784_v52, %v1775_v20  ;;  %v2329_v13 = vmul.f32 %v2328_v14, %v2283_v10  ;;  %v2354_v21 = vadd.f32 %v2352_v50, %v3411_v1  ;;  %v2384_v46 = vadd.f32 %v2382_v42, %v3431_v6 }
 0x4c3   : > { %v2916_v25 = vpop.eup %2915  ;;  %v2415_v49 = vadd.f32 %v2413_v35, %v3421_v4  ;;  %v2446_v54 = vadd.f32 %v2444_v2, %v3439_v8  ;;  %v2359_v15 = vmul.f32 %v2358_v44, %v2283_v10  ;;  %v2390_v24 = vmul.f32 %v2389_v63, %v2283_v10 }
 0x4c4   : > { %v2297_v51 = vmul.f32 %v2916_v25, %v1609_v12  ;;  %v1797_v43 = vadd.f32 %v1795_v23, %v1789_v37  ;;  %2356 = vst.msk [vmem:[%s5058_s10 + $0x8] sm:$0xff] %vm420_vm1, %v2354_v21  ;;  %2751 = vst.msk [vmem:[%s5058_s10 + $0x18] sm:$0xff] %vm420_vm1, %v2384_v46  ;;  %v2421_v44 = vmul.f32 %v2420_v16, %v2283_v10 }
 0x4c5   : > { %2758 = vst.msk [vmem:[%s5058_s10 + $0x28] sm:$0xff] %vm420_vm1, %v2415_v49  ;;  %v1806_v1 = vpop.permute.xlu0 %1805  ;;  %2765 = vst.msk [vmem:[%s5058_s10 + $0x38] sm:$0xff] %vm420_vm1, %v2446_v54 }
 0x4c6   : > { %v2333_v4 = vmul.f32 %v2332_v32, %v2297_v51  ;;  %v2363_v6 = vmul.f32 %v2362_v38, %v2297_v51  ;;  %v2394_v8 = vmul.f32 %v2393_v29, %v2297_v51  ;;  %v2425_v34 = vmul.f32 %v2424_v30, %v2297_v51 }
 0x4c7   : > { %v2918_v14 = vpop.eup %2917  ;;  %v1719_v38 = vadd.f32 %v1718_v31, %v4799_v53  ;;  %v1811_v55 = vadd.f32 %v1806_v1, %v1797_v43 }
 0x4c8   : > { %v2319_v63 = vadd.f32 1.0, %v2918_v14  ;;  %v2335_v22 = vadd.f32 %v2333_v4, %v2329_v13  ;;  %v2365_v59 = vadd.f32 %v2363_v6, %v2359_v15  ;;  %v2396_v56 = vadd.f32 %v2394_v8, %v2390_v24 }
 0x4c9   : > { %v2427_v32 = vadd.f32 %v2425_v34, %v2421_v44  ;;  %v1820_v41 = vpop.permute.xlu0 %1819 }
 0x4ca   : > { %2921 = vrcp.f32 %v2319_v63  ;;  %v1825_v20 = vadd.f32 %v1820_v41, %v1811_v55 }
 0x4cb   : > { %v2920_v29 = vpop.eup %2919 }
 0x4cc   : > { %v2311_v30 = vmul.f32 %v2920_v29, %v1719_v38  ;;  %v1829_v9 = vadd.f32 %v1828_v58, %v1825_v20 }
 0x4ce   : > { %v2339_v16 = vmul.f32 %v2338_v40, %v2311_v30  ;;  %v2369_v26 = vmul.f32 %v2368_v33, %v2311_v30  ;;  %v2400_v19 = vmul.f32 %v2399_v60, %v2311_v30  ;;  %v2431_v36 = vmul.f32 %v2430_v28, %v2311_v30 }
 0x4d0   : > { %v2341_v53 = vadd.f32 %v2339_v16, %v2335_v22  ;;  %v2371_v31 = vadd.f32 %v2369_v26, %v2365_v59  ;;  %v2402_v10 = vadd.f32 %v2400_v19, %v2396_v56  ;;  %v2433_v62 = vadd.f32 %v2431_v36, %v2427_v32 }
 0x4d4   : > { %v2922_v40 = vpop.eup %2921 }
 0x4d5   : > { %v2325_v18 = vmul.f32 %v2922_v40, %v1829_v9 }
 0x4d7   : > { %v2345_v33 = vmul.f32 %v2344_v57, %v2325_v18  ;;  %v2375_v60 = vmul.f32 %v2374_v45, %v2325_v18  ;;  %v2406_v28 = vmul.f32 %v2405_v17, %v2325_v18  ;;  %v2437_v12 = vmul.f32 %v2436_v11, %v2325_v18 }
 0x4d9   : > { %v2347_v48 = vadd.f32 %v2345_v33, %v2341_v53  ;;  %v2377_v52 = vadd.f32 %v2375_v60, %v2371_v31  ;;  %v2408_v50 = vadd.f32 %v2406_v28, %v2402_v10  ;;  %v2439_v42 = vadd.f32 %v2437_v12, %v2433_v62 }
 0x4db   : > { %v2351_v58 = vadd.f32 %v2350_v61, %v2347_v48  ;;  %v2381_v57 = vadd.f32 %v2380_v39, %v2377_v52  ;;  %v2412_v45 = vadd.f32 %v2411_v27, %v2408_v50  ;;  %v2443_v17 = vadd.f32 %v2442_v47, %v2439_v42 }
 0x4dd   : > { %v2353_v11 = vadd.f32 %v2351_v58, %v3408_v0  ;;  %v2383_v61 = vadd.f32 %v2381_v57, %v3424_v5  ;;  %v2414_v39 = vadd.f32 %v2412_v45, %v3418_v3  ;;  %v2445_v27 = vadd.f32 %v2443_v17, %v3436_v7 }
 0x4df   : > { %2355 = vst.msk [vmem:[%s5058_s10] sm:$0xff] %vm420_vm1, %v2353_v11  ;;  %2750 = vst.msk [vmem:[%s5058_s10 + $0x10] sm:$0xff] %vm420_vm1, %v2383_v61 }
 0x4e0   : > { %2757 = vst.msk [vmem:[%s5058_s10 + $0x20] sm:$0xff] %vm420_vm1, %v2414_v39  ;;  %2764 = vst.msk [vmem:[%s5058_s10 + $0x30] sm:$0xff] %vm420_vm1, %v2445_v27 }
 0x4e1   : > { %3056 = shalt.err (!%p3053_p11)
}
 0x4e2   : > { %s3057_s27 = scalar_lea.hbm %s5112_s2, 1024  ;;  %s3061_s29 = scalar_lea.hbm %s5402_s16, 2048 }
 0x4e3   : > { %p3058_p12 = scmp.ne.s32.totalorder %s5112_s2, %s3057_s27  ;;  %p3062_p7 = scmp.lt.u32.totalorder %s5112_s2, %s5402_s16 }
 0x4e4   : > { %p3063_p6 = scmp.lt.u32.totalorder %s3061_s29, %s3057_s27  ;;  %p3065_p13 = scmp.lt.u32.totalorder %s3057_s27, %s5112_s2 }
 0x4e5   : > { %p3059_p2 = pnand %p3058_p12, %p5403_p0 }
 0x4e6   : > { %p3064_p9 = por %p3063_p6, %p3062_p7 }
 0x4e7   : > { %p3060_p5 = pneg %p3059_p2 }
 0x4e8   : > { %p3066_p1 = por %p3065_p13, %p3064_p9 }
 0x4ea   : > { %p3067_p3 = pnand %p3066_p1, %p3060_p5 }
 0x4ec   : > { %3070 = shalt.err (!%p3067_p3)
}
 0x4ed   : > { %s3144_s15 = smov 128   ;;  %s3145_s19 = smov 8  }
 0x4ee   : > { %2799 = dma.vmem_to_hbm [thread:$0]  (%p5403_p0), %s5114_s8, 1024, %s5112_s2, %s2451_s3, %s3144_s15, %s3144_s15, %s3145_s19  }
 0x4ef PF: > { %s5404_s26 = sld [smem:[#allocation25_spill]]  ;;  %s5405_s24 = sld [smem:[#allocation33_spill]] }
 0x4f0   : > { %s5406_s18 = sld [smem:[#allocation28_spill]] }
 0x4f5   : > { %s2479_s23 = sand.u32 1, %s5404_s26   ;;  %p5407_p4 = scmp.ne.s32.totalorder %s5405_s24, 0 }
 0x4f6   : > { %p5408_p8 = scmp.ge.s32.totalorder %s5406_s18, 2  ;;  %s2480_s1 = scalar_lea.sflag [#allocation7], %s2479_s23 }
 0x4f8   : > { %p2825_p10 = pnand %p5408_p8, %p5407_p4 }
 0x4fa   : > { %3108 = dma.done.wait (!%p2825_p10), %s2480_s1, 1024  }
 0x4fb   : > { %3110 = vsyncadd (!%p2825_p10), %s2480_s1, 4294966272  ;;  %s5409_s30 = sld [smem:[#allocation30_spill]]  ;;  %s5410_s27 = sld [smem:[#allocation26_spill]] }
 0x4fc   : > { %s5411_s28 = sld [smem:[#allocation27_spill]]  ;;  %s5412_s29 = sld [smem:[#allocation31_spill]] }
 0x501   : > { %p25_p11 = scmp.ge.s32.totalorder %s5409_s30, 4  }
 0x503   :  { %27 = sbr.rel (!%p25_p11) target bundleno = 19 (0x13), region = 132 }
 0x50a   :  { %2485 = vsyncpa [#allocation6], 1 }
 0x50b   :  { %2487 = vsyncpa [#allocation6 + $0x1], 1 }
 0x50c   :  { %2488 = vsyncpa [#allocation7], 1 }
 0x50d   :  { %2490 = vsyncpa [#allocation7 + $0x1], 1 }
 0x50e   :  { %2491 = vsyncpa [#allocation8], 1 }
 0x50f   :  { %2493 = vsyncpa [#allocation8 + $0x1], 1 }
 0x510   :  { %2494 = vsyncpa [#allocation11], 1 }
 0x511   :  { %2495 = vsyncpa [#allocation14], 1 }
 0x512   :  { %2496 = vsyncpa [#allocation17], 1 }

</bundles_post_ra>
